<compile_context>
chip_gen: v5e
topology: v5e:2x2
jax: 0.10.0
libtpu: 0.0.40
codegen_flags: <defaults>
</compile_context>

<pallas_src>
import jax
import jax.numpy as jnp
from jax.experimental import pallas as pl
from jax.experimental.pallas import tpu as pltpu

BLOCK_DEPTH = 7
MID_DEPTH = 4
C8 = 2 * MID_DEPTH                     # 8  : channels after conv_layer / CReLU
K_BLK = 9 * C8                         # 72 : stacked-tap K of each block conv
K_UP = BLOCK_DEPTH * K_BLK             # 504: stacked-tap K of the upscaler

# row offsets inside the consolidated weight / bias slabs
W0_ROW = 0                             # conv_layer weights   (8 rows)
BLK_ROW0 = C8                          # block i -> rows BLK_ROW0 + 8*i (8 rows: [W; -W])
UP_ROW = C8 + 8 * BLOCK_DEPTH          # 64: upscaler weights (4 rows)
SLAB_ROWS = UP_ROW + 8                 # 72
SLAB_COLS = 512                        # >= K_UP, lane-dense


# ---------------------------------------------------------------------------
# Fused whole-network kernel (one grid step per group of B_sub batch elements)
# ---------------------------------------------------------------------------
def _make_cnn_kernel(h, w, bsub, compute_dtype):
    hw = h * w
    ncols = bsub * hw
    taps = [(t // 3 - 1, t % 3 - 1) for t in range(9)]   # t = kh*3 + kw

    def kernel(x_ref, res_ref, w_ref, b_ref, m_ref, out_ref,
               xt_ref, ct_ref, ft_ref):

        def write_taps(act, dst_ref, base):
            # act: (C, ncols) value.  Store its 9 shifted + masked tap copies
            # at dst rows [base + t*C, base + (t+1)*C).  Shifts use pltpu.roll
            # (XLU); image/row/column boundary wraps are zeroed by the
            # precomputed per-tap mask, so no halo padding / zeroing exists.
            c = act.shape[0]
            for t, (di, dj) in enumerate(taps):
                s = di * w + dj
                if s == 0:
                    v = act
                else:
                    v = pltpu.roll(act, (-s) % ncols, axis=1) * m_ref[t:t + 1, :]
                dst_ref[base + t * c: base + (t + 1) * c, :] = v

        # ---- taps of the 1-channel input ---------------------------------
        write_taps(x_ref[0].astype(compute_dtype), xt_ref, 0)

        # ---- conv_layer: 1 -> 8, one (8, 9) x (9, N) GEMM (no activation) --
        h0 = jnp.dot(w_ref[W0_ROW:W0_ROW + C8, 0:9], xt_ref[...],
                     preferred_element_type=jnp.float32)
        h0 = h0 + b_ref[W0_ROW:W0_ROW + C8, :]
        write_taps(h0.astype(compute_dtype), ct_ref, 0)

        # ---- 7 blocks: conv(8->4) + CReLU as one (8, 72) x (72, N) GEMM ----
        # CReLU is folded into the weights: [W; -W], [b; -b] then relu.
        # NOTE: kept Python-unrolled — after K-stacking each body is ~1 dot +
        # 9 rolls/stores; switch to lax.fori_loop with pl.ds-indexed slab rows
        # only if bundle dumps ever show spill stores (review item).
        for i in range(BLOCK_DEPTH):
            rhs = ct_ref[...] if i == 0 else ft_ref[K_BLK * (i - 1):K_BLK * i, :]
            r = BLK_ROW0 + 8 * i
            y8 = jnp.dot(w_ref[r:r + C8, 0:K_BLK], rhs,
                         preferred_element_type=jnp.float32)
            crelu = jnp.maximum(y8 + b_ref[r:r + C8, :], 0.0)        # (8, N)
            write_taps(crelu.astype(compute_dtype), ft_ref, K_BLK * i)

        # ---- upscaler: nearest-x2 + 3x3 conv folded to 4 parity phases,
        #      one (4, 504) x (504, N) GEMM over the resident feature taps ---
        up = jnp.dot(w_ref[UP_ROW:UP_ROW + 4, 0:K_UP], ft_ref[...],
                     preferred_element_type=jnp.float32)
        up = up + b_ref[UP_ROW:UP_ROW + 1, :]
        out_ref[0] = (up + res_ref[0]).astype(out_ref.dtype)

    return kernel


# ---------------------------------------------------------------------------
# Host-side (layout-only) helpers
# ---------------------------------------------------------------------------
def _parity_upscaler_weights(w_up):
    """Fold nearest-x2 upsample + 3x3 conv into 4 effective low-res 3x3 kernels,
    one per output sub-pixel phase (pI, pJ).  Returns (9, 4, C_in)."""
    c_in = w_up.shape[1]
    m = jnp.array([[[1., 0., 0.], [0., 1., 1.], [0., 0., 0.]],    # even rows/cols
                   [[0., 0., 0.], [1., 1., 0.], [0., 0., 1.]]],   # odd  rows/cols
                  dtype=w_up.dtype)
    k = jnp.einsum("pia,qjb,ocab->pqocij", m, m, w_up)            # (2,2,1,C,3,3)
    k = jnp.transpose(k[:, :, 0], (3, 4, 0, 1, 2))                # (3,3,2,2,C)
    return k.reshape(9, 4, c_in)


def _pack_param_slabs(params, compute_dtype):
    """All conv weights into one lane-dense (72, 512) slab whose K ordering
    (tap-major within each 8-channel chunk) matches the stacked-tap scratch,
    and all biases into a (72, 1) slab.  CReLU folded as [W; -W] / [b; -b]."""
    wslab = jnp.zeros((SLAB_ROWS, SLAB_COLS), jnp.float32)
    bslab = jnp.zeros((SLAB_ROWS, 1), jnp.float32)

    # conv_layer (8, 1, 3, 3): column = tap
    w0p = params["conv_layer"]["w"].reshape(C8, 9)
    wslab = wslab.at[W0_ROW:W0_ROW + C8, 0:9].set(w0p)
    bslab = bslab.at[W0_ROW:W0_ROW + C8, 0].set(params["conv_layer"]["b"])

    # blocks (4, 8, 3, 3): column = 8*tap + c_in ; rows = [W; -W]
    for i, blk in enumerate(params["blocks"]):
        wbp = jnp.transpose(blk["w"], (0, 2, 3, 1)).reshape(MID_DEPTH, K_BLK)
        r = BLK_ROW0 + 8 * i
        wslab = wslab.at[r:r + MID_DEPTH, 0:K_BLK].set(wbp)
        wslab = wslab.at[r + MID_DEPTH:r + C8, 0:K_BLK].set(-wbp)
        bslab = bslab.at[r:r + MID_DEPTH, 0].set(blk["b"])
        bslab = bslab.at[r + MID_DEPTH:r + C8, 0].set(-blk["b"])

    # upscaler, parity-folded: column = 72*block + 8*tap + c_local
    wup = _parity_upscaler_weights(params["upscaler"]["w"])          # (9, 4, 56)
    wup = jnp.transpose(wup.reshape(9, 4, BLOCK_DEPTH, C8),
                        (1, 2, 0, 3)).reshape(4, K_UP)
    wslab = wslab.at[UP_ROW:UP_ROW + 4, 0:K_UP].set(wup)
    bslab = bslab.at[UP_ROW, 0].set(params["upscaler"]["b"][0])
    return wslab.astype(compute_dtype), bslab


def _tap_masks(h, w, bsub, compute_dtype):
    """(9, bsub*hw) 0/1 validity mask per tap; kills roll wrap-arounds across
    row / column / image boundaries."""
    hw = h * w
    q = jnp.arange(hw, dtype=jnp.int32)
    yy, xx = q // w, q % w
    rows = []
    for t in range(9):
        di, dj = t // 3 - 1, t % 3 - 1
        ok = (yy + di >= 0) & (yy + di < h) & (xx + dj >= 0) & (xx + dj < w)
        rows.append(ok)
    m = jnp.stack(rows).astype(compute_dtype)                        # (9, hw)
    return jnp.tile(m, (1, bsub))                                    # (9, bsub*hw)


def _choose_bsub(n):
    # Fatten the GEMM N dimension (review item): pack up to 8 images per grid
    # step, but prefer >= 2 grid steps so both v7x TensorCores get work.
    for b in (8, 4, 2, 1):
        if n % b == 0 and n // b >= 2:
            return b
    for b in (8, 4, 2, 1):
        if n % b == 0:
            return b
    return 1


def bilinear_upsample_x2(x):
    """PyTorch interpolate(mode='bilinear', scale_factor=2, align_corners=False)."""
    n, c, h, w = x.shape

    def coords(in_size):
        d = jnp.arange(2 * in_size, dtype=jnp.float32)
        src = jnp.maximum(0.5 * (d + 0.5) - 0.5, 0.0)
        i0 = jnp.floor(src).astype(jnp.int32)
        i1 = jnp.minimum(i0 + 1, in_size - 1)
        frac = src - i0.astype(jnp.float32)
        return i0, i1, frac

    h0, h1, fh = coords(h)
    w0, w1, fw = coords(w)
    top = (x[:, :, h0, :] * (1.0 - fh)[None, None, :, None]
           + x[:, :, h1, :] * fh[None, None, :, None])
    out = (top[:, :, :, w0] * (1.0 - fw)[None, None, None, :]
           + top[:, :, :, w1] * fw[None, None, None, :])
    return out


# ---------------------------------------------------------------------------
# Forward pass (mirrors CNN.forward)
# ---------------------------------------------------------------------------
def cnn_forward(params, x, compute_dtype=jnp.float32):
    n, c, h, w = x.shape
    assert c == 1
    hw = h * w
    bsub = _choose_bsub(n)
    g = n // bsub
    ncols = bsub * hw

    wslab, bslab = _pack_param_slabs(params, compute_dtype)
    masks = _tap_masks(h, w, bsub, compute_dtype)

    # bilinear residual of the input, as the 4 output sub-pixel parity planes
    bil = bilinear_upsample_x2(x)                                     # (N,1,2H,2W)
    res = bil.reshape(n, 1, h, 2, w, 2)
    res = jnp.transpose(res, (0, 1, 3, 5, 2, 4)).reshape(n, 4, hw)    # (N,4,HW)

    # pack bsub images per grid step along the lane axis (column = b*HW + pix)
    res_g = res.reshape(g, bsub, 4, hw).transpose(0, 2, 1, 3).reshape(g, 4, ncols)
    x_g = x.reshape(g, 1, ncols)

    kernel = _make_cnn_kernel(h, w, bsub, compute_dtype)

    flops = 2 * n * hw * (C8 * 9 + BLOCK_DEPTH * C8 * K_BLK + 4 * K_UP)
    ins = (x_g, res_g, wslab, bslab, masks)
    bytes_accessed = sum(a.size * a.dtype.itemsize for a in ins) + n * 4 * hw * 4

    out_par = pl.pallas_call(
        kernel,
        out_shape=jax.ShapeDtypeStruct((g, 4, ncols), x.dtype),
        grid=(g,),
        in_specs=[
            pl.BlockSpec((1, 1, ncols), lambda i: (i, 0, 0)),
            pl.BlockSpec((1, 4, ncols), lambda i: (i, 0, 0)),
            pl.BlockSpec((SLAB_ROWS, SLAB_COLS), lambda i: (0, 0)),
            pl.BlockSpec((SLAB_ROWS, 1), lambda i: (0, 0)),
            pl.BlockSpec((9, ncols), lambda i: (0, 0)),
        ],
        out_specs=pl.BlockSpec((1, 4, ncols), lambda i: (i, 0, 0)),
        scratch_shapes=[
            pltpu.VMEM((9, ncols), compute_dtype),      # stacked taps of input x
            pltpu.VMEM((K_BLK, ncols), compute_dtype),  # stacked taps of conv_layer out
            pltpu.VMEM((K_UP, ncols), compute_dtype),   # stacked taps of 56-ch features
        ],
        compiler_params=pltpu.CompilerParams(dimension_semantics=("parallel",)),
        cost_estimate=pl.CostEstimate(flops=flops, transcendentals=0,
                                      bytes_accessed=bytes_accessed),
    )(*ins)

    # un-pack the batched columns, then depth-to-space the 4 parity planes
    out = out_par.reshape(g, 4, bsub, hw).transpose(0, 2, 1, 3).reshape(n, 4, hw)
    out = out.reshape(n, 2, 2, h, w).transpose(0, 3, 1, 4, 2)
    return out.reshape(n, 1, 2 * h, 2 * w)


# ---------------------------------------------------------------------------
# Pure-JAX (XLA) reference for the in-script numerics check
# ---------------------------------------------------------------------------
def cnn_reference(params, x):
    def conv(z, wgt, b):
        y = jax.lax.conv_general_dilated(
            z, wgt, window_strides=(1, 1), padding=((1, 1), (1, 1)),
            dimension_numbers=("NCHW", "OIHW", "NCHW"))
        return y + b.reshape(1, -1, 1, 1)

    hcur = conv(x, params["conv_layer"]["w"], params["conv_layer"]["b"])
    feats = []
    for blk in params["blocks"]:
        y = conv(hcur, blk["w"], blk["b"])
        hcur = jnp.concatenate([jnp.maximum(y, 0.0), jnp.maximum(-y, 0.0)], axis=1)
        feats.append(hcur)
    f = jnp.concatenate(feats, axis=1)
    f = jnp.repeat(jnp.repeat(f, 2, axis=2), 2, axis=3)        # nearest x2
    out = conv(f, params["upscaler"]["w"], params["upscaler"]["b"])
    return out + bilinear_upsample_x2(x)


# ---------------------------------------------------------------------------
# Parameters (deterministic, PyTorch-default-style uniform init)
# ---------------------------------------------------------------------------
def _conv_init(key, c_out, c_in):
    kw, kb = jax.random.split(key)
    bound = 1.0 / jnp.sqrt(jnp.float32(c_in * 9))
    wgt = jax.random.uniform(kw, (c_out, c_in, 3, 3), jnp.float32, -bound, bound)
    b = jax.random.uniform(kb, (c_out,), jnp.float32, -bound, bound)
    return {"w": wgt, "b": b}


def init_params(key, upscale_factor=2):
    del upscale_factor  # the forward pass hardcodes scale_factor=2
    keys = jax.random.split(key, BLOCK_DEPTH + 2)
    return {
        "conv_layer": _conv_init(keys[0], MID_DEPTH * 2, 1),
        "blocks": [_conv_init(keys[1 + i], MID_DEPTH, MID_DEPTH * 2)
                   for i in range(BLOCK_DEPTH)],
        "upscaler": _conv_init(keys[-1], 1, MID_DEPTH * BLOCK_DEPTH * 2),
    }


if __name__ == "__main__":
    key = jax.random.PRNGKey(0)
    kx, kp = jax.random.split(key)
    x = jax.random.normal(kx, (4, 1, 16, 16), jnp.float32)   # NCHW, 1 channel
    params = init_params(kp, upscale_factor=2)

    fwd = jax.jit(cnn_forward)
    out = jax.block_until_ready(fwd(params, x))

    assert out.shape == (4, 1, 32, 32), out.shape
    assert out.dtype == jnp.float32
    assert bool(jnp.all(jnp.isfinite(out)))

    # Numerics check vs. a pure-XLA reference (verifies the stacked-tap
    # layout, roll/mask boundary handling, CReLU weight folding, batched
    # column packing and the parity-folded nearest-upsample/upscaler).
    ref = jax.block_until_ready(jax.jit(cnn_reference)(params, x))
    err = float(jnp.max(jnp.abs(out - ref)))
    assert err < 5e-4, f"max |pallas - reference| = {err}"

    print("KERNEL_OK")
</pallas_src>

<mosaic_0001>
module attributes {stable_mosaic.version = 11 : i64} {
  func.func @kernel(%arg0: i32, %arg1: memref<1x1x512xf32, #tpu.memory_space<vmem>>, %arg2: memref<1x4x512xf32, #tpu.memory_space<vmem>>, %arg3: memref<72x512xf32, #tpu.memory_space<vmem>>, %arg4: memref<72x1xf32, #tpu.memory_space<vmem>>, %arg5: memref<9x512xf32, #tpu.memory_space<vmem>>, %arg6: memref<1x4x512xf32, #tpu.memory_space<vmem>>, %arg7: memref<9x512xf32, #tpu.memory_space<vmem>>, %arg8: memref<72x512xf32, #tpu.memory_space<vmem>>, %arg9: memref<504x512xf32, #tpu.memory_space<vmem>>) attributes {dimension_semantics = [#tpu.dimension_semantics<parallel>], iteration_bounds = array<i64: 2>, scalar_prefetch = 0 : i64, scratch_operands = 3 : i64, tpu.core_type = #tpu.core_type<tc>, window_params = [{transform_indices = @transform_0, window_bounds = array<i64: 1, 1, 512>}, {transform_indices = @transform_1, window_bounds = array<i64: 1, 4, 512>}, {pipeline_mode = #tpu.pipeline_mode<synchronous>, transform_indices = @transform_2, window_bounds = array<i64: 72, 512>}, {pipeline_mode = #tpu.pipeline_mode<synchronous>, transform_indices = @transform_3, window_bounds = array<i64: 72, 1>}, {pipeline_mode = #tpu.pipeline_mode<synchronous>, transform_indices = @transform_4, window_bounds = array<i64: 9, 512>}, {transform_indices = @transform_5, window_bounds = array<i64: 1, 4, 512>}]} {
    %c0 = arith.constant 0 : index
    %c0_0 = arith.constant 0 : index
    %c0_1 = arith.constant 0 : index
    %0 = vector.load %arg1[%c0, %c0_0, %c0_1] : memref<1x1x512xf32, #tpu.memory_space<vmem>>, vector<1x1x512xf32>
    %1 = vector.shape_cast %0 : vector<1x1x512xf32> to vector<1x512xf32>
    %c17_i32 = arith.constant 17 : i32
    %2 = tpu.dynamic_rotate %1 by %c17_i32 dim 1 : vector<1x512xf32>, i32 -> vector<1x512xf32>
    %c0_2 = arith.constant 0 : index
    %c0_3 = arith.constant 0 : index
    %3 = vector.load %arg5[%c0_2, %c0_3] : memref<9x512xf32, #tpu.memory_space<vmem>>, vector<1x512xf32>
    %4 = arith.mulf %2, %3 : vector<1x512xf32>
    %c0_4 = arith.constant 0 : index
    %c0_5 = arith.constant 0 : index
    %5 = vector.load %arg7[%c0_4, %c0_5] : memref<9x512xf32, #tpu.memory_space<vmem>>, vector<1x512xf32>
    tpu.vector_store %arg7[%c0_4, %c0_5], %4 {strides = array<i32>} : memref<9x512xf32, #tpu.memory_space<vmem>>, vector<1x512xf32>,
    %c16_i32 = arith.constant 16 : i32
    %6 = tpu.dynamic_rotate %1 by %c16_i32 dim 1 : vector<1x512xf32>, i32 -> vector<1x512xf32>
    %c1 = arith.constant 1 : index
    %c0_6 = arith.constant 0 : index
    %7 = vector.load %arg5[%c1, %c0_6] : memref<9x512xf32, #tpu.memory_space<vmem>>, vector<1x512xf32>
    %8 = arith.mulf %6, %7 : vector<1x512xf32>
    %c1_7 = arith.constant 1 : index
    %c0_8 = arith.constant 0 : index
    %9 = vector.load %arg7[%c1_7, %c0_8] : memref<9x512xf32, #tpu.memory_space<vmem>>, vector<1x512xf32>
    tpu.vector_store %arg7[%c1_7, %c0_8], %8 {strides = array<i32>} : memref<9x512xf32, #tpu.memory_space<vmem>>, vector<1x512xf32>,
    %c15_i32 = arith.constant 15 : i32
    %10 = tpu.dynamic_rotate %1 by %c15_i32 dim 1 : vector<1x512xf32>, i32 -> vector<1x512xf32>
    %c2 = arith.constant 2 : index
    %c0_9 = arith.constant 0 : index
    %11 = vector.load %arg5[%c2, %c0_9] : memref<9x512xf32, #tpu.memory_space<vmem>>, vector<1x512xf32>
    %12 = arith.mulf %10, %11 : vector<1x512xf32>
    %c2_10 = arith.constant 2 : index
    %c0_11 = arith.constant 0 : index
    %13 = vector.load %arg7[%c2_10, %c0_11] : memref<9x512xf32, #tpu.memory_space<vmem>>, vector<1x512xf32>
    tpu.vector_store %arg7[%c2_10, %c0_11], %12 {strides = array<i32>} : memref<9x512xf32, #tpu.memory_space<vmem>>, vector<1x512xf32>,
    %c1_i32 = arith.constant 1 : i32
    %14 = tpu.dynamic_rotate %1 by %c1_i32 dim 1 : vector<1x512xf32>, i32 -> vector<1x512xf32>
    %c3 = arith.constant 3 : index
    %c0_12 = arith.constant 0 : index
    %15 = vector.load %arg5[%c3, %c0_12] : memref<9x512xf32, #tpu.memory_space<vmem>>, vector<1x512xf32>
    %16 = arith.mulf %14, %15 : vector<1x512xf32>
    %c3_13 = arith.constant 3 : index
    %c0_14 = arith.constant 0 : index
    %17 = vector.load %arg7[%c3_13, %c0_14] : memref<9x512xf32, #tpu.memory_space<vmem>>, vector<1x512xf32>
    tpu.vector_store %arg7[%c3_13, %c0_14], %16 {strides = array<i32>} : memref<9x512xf32, #tpu.memory_space<vmem>>, vector<1x512xf32>,
    %c4 = arith.constant 4 : index
    %c0_15 = arith.constant 0 : index
    %18 = vector.load %arg7[%c4, %c0_15] : memref<9x512xf32, #tpu.memory_space<vmem>>, vector<1x512xf32>
    tpu.vector_store %arg7[%c4, %c0_15], %1 {strides = array<i32>} : memref<9x512xf32, #tpu.memory_space<vmem>>, vector<1x512xf32>,
    %c511_i32 = arith.constant 511 : i32
    %19 = tpu.dynamic_rotate %1 by %c511_i32 dim 1 : vector<1x512xf32>, i32 -> vector<1x512xf32>
    %c5 = arith.constant 5 : index
    %c0_16 = arith.constant 0 : index
    %20 = vector.load %arg5[%c5, %c0_16] : memref<9x512xf32, #tpu.memory_space<vmem>>, vector<1x512xf32>
    %21 = arith.mulf %19, %20 : vector<1x512xf32>
    %c5_17 = arith.constant 5 : index
    %c0_18 = arith.constant 0 : index
    %22 = vector.load %arg7[%c5_17, %c0_18] : memref<9x512xf32, #tpu.memory_space<vmem>>, vector<1x512xf32>
    tpu.vector_store %arg7[%c5_17, %c0_18], %21 {strides = array<i32>} : memref<9x512xf32, #tpu.memory_space<vmem>>, vector<1x512xf32>,
    %c497_i32 = arith.constant 497 : i32
    %23 = tpu.dynamic_rotate %1 by %c497_i32 dim 1 : vector<1x512xf32>, i32 -> vector<1x512xf32>
    %c6 = arith.constant 6 : index
    %c0_19 = arith.constant 0 : index
    %24 = vector.load %arg5[%c6, %c0_19] : memref<9x512xf32, #tpu.memory_space<vmem>>, vector<1x512xf32>
    %25 = arith.mulf %23, %24 : vector<1x512xf32>
    %c6_20 = arith.constant 6 : index
    %c0_21 = arith.constant 0 : index
    %26 = vector.load %arg7[%c6_20, %c0_21] : memref<9x512xf32, #tpu.memory_space<vmem>>, vector<1x512xf32>
    tpu.vector_store %arg7[%c6_20, %c0_21], %25 {strides = array<i32>} : memref<9x512xf32, #tpu.memory_space<vmem>>, vector<1x512xf32>,
    %c496_i32 = arith.constant 496 : i32
    %27 = tpu.dynamic_rotate %1 by %c496_i32 dim 1 : vector<1x512xf32>, i32 -> vector<1x512xf32>
    %c7 = arith.constant 7 : index
    %c0_22 = arith.constant 0 : index
    %28 = vector.load %arg5[%c7, %c0_22] : memref<9x512xf32, #tpu.memory_space<vmem>>, vector<1x512xf32>
    %29 = arith.mulf %27, %28 : vector<1x512xf32>
    %c7_23 = arith.constant 7 : index
    %c0_24 = arith.constant 0 : index
    %30 = vector.load %arg7[%c7_23, %c0_24] : memref<9x512xf32, #tpu.memory_space<vmem>>, vector<1x512xf32>
    tpu.vector_store %arg7[%c7_23, %c0_24], %29 {strides = array<i32>} : memref<9x512xf32, #tpu.memory_space<vmem>>, vector<1x512xf32>,
    %c495_i32 = arith.constant 495 : i32
    %31 = tpu.dynamic_rotate %1 by %c495_i32 dim 1 : vector<1x512xf32>, i32 -> vector<1x512xf32>
    %c8 = arith.constant 8 : index
    %c0_25 = arith.constant 0 : index
    %32 = vector.load %arg5[%c8, %c0_25] : memref<9x512xf32, #tpu.memory_space<vmem>>, vector<1x512xf32>
    %33 = arith.mulf %31, %32 : vector<1x512xf32>
    %c8_26 = arith.constant 8 : index
    %c0_27 = arith.constant 0 : index
    %34 = vector.load %arg7[%c8_26, %c0_27] : memref<9x512xf32, #tpu.memory_space<vmem>>, vector<1x512xf32>
    tpu.vector_store %arg7[%c8_26, %c0_27], %33 {strides = array<i32>} : memref<9x512xf32, #tpu.memory_space<vmem>>, vector<1x512xf32>,
    %c0_28 = arith.constant 0 : index
    %c0_29 = arith.constant 0 : index
    %35 = vector.load %arg3[%c0_28, %c0_29] : memref<72x512xf32, #tpu.memory_space<vmem>>, vector<8x9xf32>
    %c0_30 = arith.constant 0 : index
    %c0_31 = arith.constant 0 : index
    %36 = vector.load %arg7[%c0_30, %c0_31] : memref<9x512xf32, #tpu.memory_space<vmem>>, vector<9x512xf32>
    %cst = arith.constant dense<0.000000e+00> : vector<8x512xf32>
    %37 = tpu.matmul %35, %36, %cst {dimension_numbers = #tpu.dot_dimension_numbers<[1], [0], [0], [1], [0, 0, 1, 1], [], []>} : vector<8x9xf32>, vector<9x512xf32>, vector<8x512xf32> -> vector<8x512xf32>
    %c0_32 = arith.constant 0 : index
    %c0_33 = arith.constant 0 : index
    %38 = vector.load %arg4[%c0_32, %c0_33] : memref<72x1xf32, #tpu.memory_space<vmem>>, vector<8x1xf32>
    %39 = vector.broadcast %38 : vector<8x1xf32> to vector<8x512xf32>
    %40 = arith.addf %37, %39 : vector<8x512xf32>
    %c17_i32_34 = arith.constant 17 : i32
    %41 = tpu.dynamic_rotate %40 by %c17_i32_34 dim 1 : vector<8x512xf32>, i32 -> vector<8x512xf32>
    %c0_35 = arith.constant 0 : index
    %c0_36 = arith.constant 0 : index
    %42 = vector.load %arg5[%c0_35, %c0_36] : memref<9x512xf32, #tpu.memory_space<vmem>>, vector<1x512xf32>
    %43 = vector.broadcast %42 : vector<1x512xf32> to vector<8x512xf32>
    %44 = arith.mulf %41, %43 : vector<8x512xf32>
    %c0_37 = arith.constant 0 : index
    %c0_38 = arith.constant 0 : index
    %45 = vector.load %arg8[%c0_37, %c0_38] : memref<72x512xf32, #tpu.memory_space<vmem>>, vector<8x512xf32>
    tpu.vector_store %arg8[%c0_37, %c0_38], %44 {strides = array<i32>} : memref<72x512xf32, #tpu.memory_space<vmem>>, vector<8x512xf32>,
    %c16_i32_39 = arith.constant 16 : i32
    %46 = tpu.dynamic_rotate %40 by %c16_i32_39 dim 1 : vector<8x512xf32>, i32 -> vector<8x512xf32>
    %c1_40 = arith.constant 1 : index
    %c0_41 = arith.constant 0 : index
    %47 = vector.load %arg5[%c1_40, %c0_41] : memref<9x512xf32, #tpu.memory_space<vmem>>, vector<1x512xf32>
    %48 = vector.broadcast %47 : vector<1x512xf32> to vector<8x512xf32>
    %49 = arith.mulf %46, %48 : vector<8x512xf32>
    %c8_42 = arith.constant 8 : index
    %c0_43 = arith.constant 0 : index
    %50 = vector.load %arg8[%c8_42, %c0_43] : memref<72x512xf32, #tpu.memory_space<vmem>>, vector<8x512xf32>
    tpu.vector_store %arg8[%c8_42, %c0_43], %49 {strides = array<i32>} : memref<72x512xf32, #tpu.memory_space<vmem>>, vector<8x512xf32>,
    %c15_i32_44 = arith.constant 15 : i32
    %51 = tpu.dynamic_rotate %40 by %c15_i32_44 dim 1 : vector<8x512xf32>, i32 -> vector<8x512xf32>
    %c2_45 = arith.constant 2 : index
    %c0_46 = arith.constant 0 : index
    %52 = vector.load %arg5[%c2_45, %c0_46] : memref<9x512xf32, #tpu.memory_space<vmem>>, vector<1x512xf32>
    %53 = vector.broadcast %52 : vector<1x512xf32> to vector<8x512xf32>
    %54 = arith.mulf %51, %53 : vector<8x512xf32>
    %c16 = arith.constant 16 : index
    %c0_47 = arith.constant 0 : index
    %55 = vector.load %arg8[%c16, %c0_47] : memref<72x512xf32, #tpu.memory_space<vmem>>, vector<8x512xf32>
    tpu.vector_store %arg8[%c16, %c0_47], %54 {strides = array<i32>} : memref<72x512xf32, #tpu.memory_space<vmem>>, vector<8x512xf32>,
    %c1_i32_48 = arith.constant 1 : i32
    %56 = tpu.dynamic_rotate %40 by %c1_i32_48 dim 1 : vector<8x512xf32>, i32 -> vector<8x512xf32>
    %c3_49 = arith.constant 3 : index
    %c0_50 = arith.constant 0 : index
    %57 = vector.load %arg5[%c3_49, %c0_50] : memref<9x512xf32, #tpu.memory_space<vmem>>, vector<1x512xf32>
    %58 = vector.broadcast %57 : vector<1x512xf32> to vector<8x512xf32>
    %59 = arith.mulf %56, %58 : vector<8x512xf32>
    %c24 = arith.constant 24 : index
    %c0_51 = arith.constant 0 : index
    %60 = vector.load %arg8[%c24, %c0_51] : memref<72x512xf32, #tpu.memory_space<vmem>>, vector<8x512xf32>
    tpu.vector_store %arg8[%c24, %c0_51], %59 {strides = array<i32>} : memref<72x512xf32, #tpu.memory_space<vmem>>, vector<8x512xf32>,
    %c32 = arith.constant 32 : index
    %c0_52 = arith.constant 0 : index
    %61 = vector.load %arg8[%c32, %c0_52] : memref<72x512xf32, #tpu.memory_space<vmem>>, vector<8x512xf32>
    tpu.vector_store %arg8[%c32, %c0_52], %40 {strides = array<i32>} : memref<72x512xf32, #tpu.memory_space<vmem>>, vector<8x512xf32>,
    %c511_i32_53 = arith.constant 511 : i32
    %62 = tpu.dynamic_rotate %40 by %c511_i32_53 dim 1 : vector<8x512xf32>, i32 -> vector<8x512xf32>
    %c5_54 = arith.constant 5 : index
    %c0_55 = arith.constant 0 : index
    %63 = vector.load %arg5[%c5_54, %c0_55] : memref<9x512xf32, #tpu.memory_space<vmem>>, vector<1x512xf32>
    %64 = vector.broadcast %63 : vector<1x512xf32> to vector<8x512xf32>
    %65 = arith.mulf %62, %64 : vector<8x512xf32>
    %c40 = arith.constant 40 : index
    %c0_56 = arith.constant 0 : index
    %66 = vector.load %arg8[%c40, %c0_56] : memref<72x512xf32, #tpu.memory_space<vmem>>, vector<8x512xf32>
    tpu.vector_store %arg8[%c40, %c0_56], %65 {strides = array<i32>} : memref<72x512xf32, #tpu.memory_space<vmem>>, vector<8x512xf32>,
    %c497_i32_57 = arith.constant 497 : i32
    %67 = tpu.dynamic_rotate %40 by %c497_i32_57 dim 1 : vector<8x512xf32>, i32 -> vector<8x512xf32>
    %c6_58 = arith.constant 6 : index
    %c0_59 = arith.constant 0 : index
    %68 = vector.load %arg5[%c6_58, %c0_59] : memref<9x512xf32, #tpu.memory_space<vmem>>, vector<1x512xf32>
    %69 = vector.broadcast %68 : vector<1x512xf32> to vector<8x512xf32>
    %70 = arith.mulf %67, %69 : vector<8x512xf32>
    %c48 = arith.constant 48 : index
    %c0_60 = arith.constant 0 : index
    %71 = vector.load %arg8[%c48, %c0_60] : memref<72x512xf32, #tpu.memory_space<vmem>>, vector<8x512xf32>
    tpu.vector_store %arg8[%c48, %c0_60], %70 {strides = array<i32>} : memref<72x512xf32, #tpu.memory_space<vmem>>, vector<8x512xf32>,
    %c496_i32_61 = arith.constant 496 : i32
    %72 = tpu.dynamic_rotate %40 by %c496_i32_61 dim 1 : vector<8x512xf32>, i32 -> vector<8x512xf32>
    %c7_62 = arith.constant 7 : index
    %c0_63 = arith.constant 0 : index
    %73 = vector.load %arg5[%c7_62, %c0_63] : memref<9x512xf32, #tpu.memory_space<vmem>>, vector<1x512xf32>
    %74 = vector.broadcast %73 : vector<1x512xf32> to vector<8x512xf32>
    %75 = arith.mulf %72, %74 : vector<8x512xf32>
    %c56 = arith.constant 56 : index
    %c0_64 = arith.constant 0 : index
    %76 = vector.load %arg8[%c56, %c0_64] : memref<72x512xf32, #tpu.memory_space<vmem>>, vector<8x512xf32>
    tpu.vector_store %arg8[%c56, %c0_64], %75 {strides = array<i32>} : memref<72x512xf32, #tpu.memory_space<vmem>>, vector<8x512xf32>,
    %c495_i32_65 = arith.constant 495 : i32
    %77 = tpu.dynamic_rotate %40 by %c495_i32_65 dim 1 : vector<8x512xf32>, i32 -> vector<8x512xf32>
    %c8_66 = arith.constant 8 : index
    %c0_67 = arith.constant 0 : index
    %78 = vector.load %arg5[%c8_66, %c0_67] : memref<9x512xf32, #tpu.memory_space<vmem>>, vector<1x512xf32>
    %79 = vector.broadcast %78 : vector<1x512xf32> to vector<8x512xf32>
    %80 = arith.mulf %77, %79 : vector<8x512xf32>
    %c64 = arith.constant 64 : index
    %c0_68 = arith.constant 0 : index
    %81 = vector.load %arg8[%c64, %c0_68] : memref<72x512xf32, #tpu.memory_space<vmem>>, vector<8x512xf32>
    tpu.vector_store %arg8[%c64, %c0_68], %80 {strides = array<i32>} : memref<72x512xf32, #tpu.memory_space<vmem>>, vector<8x512xf32>,
    %c0_69 = arith.constant 0 : index
    %c0_70 = arith.constant 0 : index
    %82 = vector.load %arg8[%c0_69, %c0_70] : memref<72x512xf32, #tpu.memory_space<vmem>>, vector<72x512xf32>
    %c8_71 = arith.constant 8 : index
    %c0_72 = arith.constant 0 : index
    %83 = vector.load %arg3[%c8_71, %c0_72] : memref<72x512xf32, #tpu.memory_space<vmem>>, vector<8x72xf32>
    %cst_73 = arith.constant dense<0.000000e+00> : vector<8x512xf32>
    %84 = tpu.matmul %83, %82, %cst_73 {dimension_numbers = #tpu.dot_dimension_numbers<[1], [0], [0], [1], [0, 0, 1, 1], [], []>} : vector<8x72xf32>, vector<72x512xf32>, vector<8x512xf32> -> vector<8x512xf32>
    %c8_74 = arith.constant 8 : index
    %c0_75 = arith.constant 0 : index
    %85 = vector.load %arg4[%c8_74, %c0_75] : memref<72x1xf32, #tpu.memory_space<vmem>>, vector<8x1xf32>
    %86 = vector.broadcast %85 : vector<8x1xf32> to vector<8x512xf32>
    %87 = arith.addf %84, %86 : vector<8x512xf32>
    %cst_76 = arith.constant 0.000000e+00 : f32
    %88 = vector.broadcast %cst_76 : f32 to vector<8x512xf32>
    %89 = arith.maximumf %87, %88 : vector<8x512xf32>
    %c17_i32_77 = arith.constant 17 : i32
    %90 = tpu.dynamic_rotate %89 by %c17_i32_77 dim 1 : vector<8x512xf32>, i32 -> vector<8x512xf32>
    %c0_78 = arith.constant 0 : index
    %c0_79 = arith.constant 0 : index
    %91 = vector.load %arg5[%c0_78, %c0_79] : memref<9x512xf32, #tpu.memory_space<vmem>>, vector<1x512xf32>
    %92 = vector.broadcast %91 : vector<1x512xf32> to vector<8x512xf32>
    %93 = arith.mulf %90, %92 : vector<8x512xf32>
    %c0_80 = arith.constant 0 : index
    %c0_81 = arith.constant 0 : index
    %94 = vector.load %arg9[%c0_80, %c0_81] : memref<504x512xf32, #tpu.memory_space<vmem>>, vector<8x512xf32>
    tpu.vector_store %arg9[%c0_80, %c0_81], %93 {strides = array<i32>} : memref<504x512xf32, #tpu.memory_space<vmem>>, vector<8x512xf32>,
    %c16_i32_82 = arith.constant 16 : i32
    %95 = tpu.dynamic_rotate %89 by %c16_i32_82 dim 1 : vector<8x512xf32>, i32 -> vector<8x512xf32>
    %c1_83 = arith.constant 1 : index
    %c0_84 = arith.constant 0 : index
    %96 = vector.load %arg5[%c1_83, %c0_84] : memref<9x512xf32, #tpu.memory_space<vmem>>, vector<1x512xf32>
    %97 = vector.broadcast %96 : vector<1x512xf32> to vector<8x512xf32>
    %98 = arith.mulf %95, %97 : vector<8x512xf32>
    %c8_85 = arith.constant 8 : index
    %c0_86 = arith.constant 0 : index
    %99 = vector.load %arg9[%c8_85, %c0_86] : memref<504x512xf32, #tpu.memory_space<vmem>>, vector<8x512xf32>
    tpu.vector_store %arg9[%c8_85, %c0_86], %98 {strides = array<i32>} : memref<504x512xf32, #tpu.memory_space<vmem>>, vector<8x512xf32>,
    %c15_i32_87 = arith.constant 15 : i32
    %100 = tpu.dynamic_rotate %89 by %c15_i32_87 dim 1 : vector<8x512xf32>, i32 -> vector<8x512xf32>
    %c2_88 = arith.constant 2 : index
    %c0_89 = arith.constant 0 : index
    %101 = vector.load %arg5[%c2_88, %c0_89] : memref<9x512xf32, #tpu.memory_space<vmem>>, vector<1x512xf32>
    %102 = vector.broadcast %101 : vector<1x512xf32> to vector<8x512xf32>
    %103 = arith.mulf %100, %102 : vector<8x512xf32>
    %c16_90 = arith.constant 16 : index
    %c0_91 = arith.constant 0 : index
    %104 = vector.load %arg9[%c16_90, %c0_91] : memref<504x512xf32, #tpu.memory_space<vmem>>, vector<8x512xf32>
    tpu.vector_store %arg9[%c16_90, %c0_91], %103 {strides = array<i32>} : memref<504x512xf32, #tpu.memory_space<vmem>>, vector<8x512xf32>,
    %c1_i32_92 = arith.constant 1 : i32
    %105 = tpu.dynamic_rotate %89 by %c1_i32_92 dim 1 : vector<8x512xf32>, i32 -> vector<8x512xf32>
    %c3_93 = arith.constant 3 : index
    %c0_94 = arith.constant 0 : index
    %106 = vector.load %arg5[%c3_93, %c0_94] : memref<9x512xf32, #tpu.memory_space<vmem>>, vector<1x512xf32>
    %107 = vector.broadcast %106 : vector<1x512xf32> to vector<8x512xf32>
    %108 = arith.mulf %105, %107 : vector<8x512xf32>
    %c24_95 = arith.constant 24 : index
    %c0_96 = arith.constant 0 : index
    %109 = vector.load %arg9[%c24_95, %c0_96] : memref<504x512xf32, #tpu.memory_space<vmem>>, vector<8x512xf32>
    tpu.vector_store %arg9[%c24_95, %c0_96], %108 {strides = array<i32>} : memref<504x512xf32, #tpu.memory_space<vmem>>, vector<8x512xf32>,
    %c32_97 = arith.constant 32 : index
    %c0_98 = arith.constant 0 : index
    %110 = vector.load %arg9[%c32_97, %c0_98] : memref<504x512xf32, #tpu.memory_space<vmem>>, vector<8x512xf32>
    tpu.vector_store %arg9[%c32_97, %c0_98], %89 {strides = array<i32>} : memref<504x512xf32, #tpu.memory_space<vmem>>, vector<8x512xf32>,
    %c511_i32_99 = arith.constant 511 : i32
    %111 = tpu.dynamic_rotate %89 by %c511_i32_99 dim 1 : vector<8x512xf32>, i32 -> vector<8x512xf32>
    %c5_100 = arith.constant 5 : index
    %c0_101 = arith.constant 0 : index
    %112 = vector.load %arg5[%c5_100, %c0_101] : memref<9x512xf32, #tpu.memory_space<vmem>>, vector<1x512xf32>
    %113 = vector.broadcast %112 : vector<1x512xf32> to vector<8x512xf32>
    %114 = arith.mulf %111, %113 : vector<8x512xf32>
    %c40_102 = arith.constant 40 : index
    %c0_103 = arith.constant 0 : index
    %115 = vector.load %arg9[%c40_102, %c0_103] : memref<504x512xf32, #tpu.memory_space<vmem>>, vector<8x512xf32>
    tpu.vector_store %arg9[%c40_102, %c0_103], %114 {strides = array<i32>} : memref<504x512xf32, #tpu.memory_space<vmem>>, vector<8x512xf32>,
    %c497_i32_104 = arith.constant 497 : i32
    %116 = tpu.dynamic_rotate %89 by %c497_i32_104 dim 1 : vector<8x512xf32>, i32 -> vector<8x512xf32>
    %c6_105 = arith.constant 6 : index
    %c0_106 = arith.constant 0 : index
    %117 = vector.load %arg5[%c6_105, %c0_106] : memref<9x512xf32, #tpu.memory_space<vmem>>, vector<1x512xf32>
    %118 = vector.broadcast %117 : vector<1x512xf32> to vector<8x512xf32>
    %119 = arith.mulf %116, %118 : vector<8x512xf32>
    %c48_107 = arith.constant 48 : index
    %c0_108 = arith.constant 0 : index
    %120 = vector.load %arg9[%c48_107, %c0_108] : memref<504x512xf32, #tpu.memory_space<vmem>>, vector<8x512xf32>
    tpu.vector_store %arg9[%c48_107, %c0_108], %119 {strides = array<i32>} : memref<504x512xf32, #tpu.memory_space<vmem>>, vector<8x512xf32>,
    %c496_i32_109 = arith.constant 496 : i32
    %121 = tpu.dynamic_rotate %89 by %c496_i32_109 dim 1 : vector<8x512xf32>, i32 -> vector<8x512xf32>
    %c7_110 = arith.constant 7 : index
    %c0_111 = arith.constant 0 : index
    %122 = vector.load %arg5[%c7_110, %c0_111] : memref<9x512xf32, #tpu.memory_space<vmem>>, vector<1x512xf32>
    %123 = vector.broadcast %122 : vector<1x512xf32> to vector<8x512xf32>
    %124 = arith.mulf %121, %123 : vector<8x512xf32>
    %c56_112 = arith.constant 56 : index
    %c0_113 = arith.constant 0 : index
    %125 = vector.load %arg9[%c56_112, %c0_113] : memref<504x512xf32, #tpu.memory_space<vmem>>, vector<8x512xf32>
    tpu.vector_store %arg9[%c56_112, %c0_113], %124 {strides = array<i32>} : memref<504x512xf32, #tpu.memory_space<vmem>>, vector<8x512xf32>,
    %c495_i32_114 = arith.constant 495 : i32
    %126 = tpu.dynamic_rotate %89 by %c495_i32_114 dim 1 : vector<8x512xf32>, i32 -> vector<8x512xf32>
    %c8_115 = arith.constant 8 : index
    %c0_116 = arith.constant 0 : index
    %127 = vector.load %arg5[%c8_115, %c0_116] : memref<9x512xf32, #tpu.memory_space<vmem>>, vector<1x512xf32>
    %128 = vector.broadcast %127 : vector<1x512xf32> to vector<8x512xf32>
    %129 = arith.mulf %126, %128 : vector<8x512xf32>
    %c64_117 = arith.constant 64 : index
    %c0_118 = arith.constant 0 : index
    %130 = vector.load %arg9[%c64_117, %c0_118] : memref<504x512xf32, #tpu.memory_space<vmem>>, vector<8x512xf32>
    tpu.vector_store %arg9[%c64_117, %c0_118], %129 {strides = array<i32>} : memref<504x512xf32, #tpu.memory_space<vmem>>, vector<8x512xf32>,
    %c0_119 = arith.constant 0 : index
    %c0_120 = arith.constant 0 : index
    %131 = vector.load %arg9[%c0_119, %c0_120] : memref<504x512xf32, #tpu.memory_space<vmem>>, vector<72x512xf32>
    %c16_121 = arith.constant 16 : index
    %c0_122 = arith.constant 0 : index
    %132 = vector.load %arg3[%c16_121, %c0_122] : memref<72x512xf32, #tpu.memory_space<vmem>>, vector<8x72xf32>
    %cst_123 = arith.constant dense<0.000000e+00> : vector<8x512xf32>
    %133 = tpu.matmul %132, %131, %cst_123 {dimension_numbers = #tpu.dot_dimension_numbers<[1], [0], [0], [1], [0, 0, 1, 1], [], []>} : vector<8x72xf32>, vector<72x512xf32>, vector<8x512xf32> -> vector<8x512xf32>
    %c16_124 = arith.constant 16 : index
    %c0_125 = arith.constant 0 : index
    %134 = vector.load %arg4[%c16_124, %c0_125] : memref<72x1xf32, #tpu.memory_space<vmem>>, vector<8x1xf32>
    %135 = vector.broadcast %134 : vector<8x1xf32> to vector<8x512xf32>
    %136 = arith.addf %133, %135 : vector<8x512xf32>
    %cst_126 = arith.constant 0.000000e+00 : f32
    %137 = vector.broadcast %cst_126 : f32 to vector<8x512xf32>
    %138 = arith.maximumf %136, %137 : vector<8x512xf32>
    %c17_i32_127 = arith.constant 17 : i32
    %139 = tpu.dynamic_rotate %138 by %c17_i32_127 dim 1 : vector<8x512xf32>, i32 -> vector<8x512xf32>
    %c0_128 = arith.constant 0 : index
    %c0_129 = arith.constant 0 : index
    %140 = vector.load %arg5[%c0_128, %c0_129] : memref<9x512xf32, #tpu.memory_space<vmem>>, vector<1x512xf32>
    %141 = vector.broadcast %140 : vector<1x512xf32> to vector<8x512xf32>
    %142 = arith.mulf %139, %141 : vector<8x512xf32>
    %c72 = arith.constant 72 : index
    %c0_130 = arith.constant 0 : index
    %143 = vector.load %arg9[%c72, %c0_130] : memref<504x512xf32, #tpu.memory_space<vmem>>, vector<8x512xf32>
    tpu.vector_store %arg9[%c72, %c0_130], %142 {strides = array<i32>} : memref<504x512xf32, #tpu.memory_space<vmem>>, vector<8x512xf32>,
    %c16_i32_131 = arith.constant 16 : i32
    %144 = tpu.dynamic_rotate %138 by %c16_i32_131 dim 1 : vector<8x512xf32>, i32 -> vector<8x512xf32>
    %c1_132 = arith.constant 1 : index
    %c0_133 = arith.constant 0 : index
    %145 = vector.load %arg5[%c1_132, %c0_133] : memref<9x512xf32, #tpu.memory_space<vmem>>, vector<1x512xf32>
    %146 = vector.broadcast %145 : vector<1x512xf32> to vector<8x512xf32>
    %147 = arith.mulf %144, %146 : vector<8x512xf32>
    %c80 = arith.constant 80 : index
    %c0_134 = arith.constant 0 : index
    %148 = vector.load %arg9[%c80, %c0_134] : memref<504x512xf32, #tpu.memory_space<vmem>>, vector<8x512xf32>
    tpu.vector_store %arg9[%c80, %c0_134], %147 {strides = array<i32>} : memref<504x512xf32, #tpu.memory_space<vmem>>, vector<8x512xf32>,
    %c15_i32_135 = arith.constant 15 : i32
    %149 = tpu.dynamic_rotate %138 by %c15_i32_135 dim 1 : vector<8x512xf32>, i32 -> vector<8x512xf32>
    %c2_136 = arith.constant 2 : index
    %c0_137 = arith.constant 0 : index
    %150 = vector.load %arg5[%c2_136, %c0_137] : memref<9x512xf32, #tpu.memory_space<vmem>>, vector<1x512xf32>
    %151 = vector.broadcast %150 : vector<1x512xf32> to vector<8x512xf32>
    %152 = arith.mulf %149, %151 : vector<8x512xf32>
    %c88 = arith.constant 88 : index
    %c0_138 = arith.constant 0 : index
    %153 = vector.load %arg9[%c88, %c0_138] : memref<504x512xf32, #tpu.memory_space<vmem>>, vector<8x512xf32>
    tpu.vector_store %arg9[%c88, %c0_138], %152 {strides = array<i32>} : memref<504x512xf32, #tpu.memory_space<vmem>>, vector<8x512xf32>,
    %c1_i32_139 = arith.constant 1 : i32
    %154 = tpu.dynamic_rotate %138 by %c1_i32_139 dim 1 : vector<8x512xf32>, i32 -> vector<8x512xf32>
    %c3_140 = arith.constant 3 : index
    %c0_141 = arith.constant 0 : index
    %155 = vector.load %arg5[%c3_140, %c0_141] : memref<9x512xf32, #tpu.memory_space<vmem>>, vector<1x512xf32>
    %156 = vector.broadcast %155 : vector<1x512xf32> to vector<8x512xf32>
    %157 = arith.mulf %154, %156 : vector<8x512xf32>
    %c96 = arith.constant 96 : index
    %c0_142 = arith.constant 0 : index
    %158 = vector.load %arg9[%c96, %c0_142] : memref<504x512xf32, #tpu.memory_space<vmem>>, vector<8x512xf32>
    tpu.vector_store %arg9[%c96, %c0_142], %157 {strides = array<i32>} : memref<504x512xf32, #tpu.memory_space<vmem>>, vector<8x512xf32>,
    %c104 = arith.constant 104 : index
    %c0_143 = arith.constant 0 : index
    %159 = vector.load %arg9[%c104, %c0_143] : memref<504x512xf32, #tpu.memory_space<vmem>>, vector<8x512xf32>
    tpu.vector_store %arg9[%c104, %c0_143], %138 {strides = array<i32>} : memref<504x512xf32, #tpu.memory_space<vmem>>, vector<8x512xf32>,
    %c511_i32_144 = arith.constant 511 : i32
    %160 = tpu.dynamic_rotate %138 by %c511_i32_144 dim 1 : vector<8x512xf32>, i32 -> vector<8x512xf32>
    %c5_145 = arith.constant 5 : index
    %c0_146 = arith.constant 0 : index
    %161 = vector.load %arg5[%c5_145, %c0_146] : memref<9x512xf32, #tpu.memory_space<vmem>>, vector<1x512xf32>
    %162 = vector.broadcast %161 : vector<1x512xf32> to vector<8x512xf32>
    %163 = arith.mulf %160, %162 : vector<8x512xf32>
    %c112 = arith.constant 112 : index
    %c0_147 = arith.constant 0 : index
    %164 = vector.load %arg9[%c112, %c0_147] : memref<504x512xf32, #tpu.memory_space<vmem>>, vector<8x512xf32>
    tpu.vector_store %arg9[%c112, %c0_147], %163 {strides = array<i32>} : memref<504x512xf32, #tpu.memory_space<vmem>>, vector<8x512xf32>,
    %c497_i32_148 = arith.constant 497 : i32
    %165 = tpu.dynamic_rotate %138 by %c497_i32_148 dim 1 : vector<8x512xf32>, i32 -> vector<8x512xf32>
    %c6_149 = arith.constant 6 : index
    %c0_150 = arith.constant 0 : index
    %166 = vector.load %arg5[%c6_149, %c0_150] : memref<9x512xf32, #tpu.memory_space<vmem>>, vector<1x512xf32>
    %167 = vector.broadcast %166 : vector<1x512xf32> to vector<8x512xf32>
    %168 = arith.mulf %165, %167 : vector<8x512xf32>
    %c120 = arith.constant 120 : index
    %c0_151 = arith.constant 0 : index
    %169 = vector.load %arg9[%c120, %c0_151] : memref<504x512xf32, #tpu.memory_space<vmem>>, vector<8x512xf32>
    tpu.vector_store %arg9[%c120, %c0_151], %168 {strides = array<i32>} : memref<504x512xf32, #tpu.memory_space<vmem>>, vector<8x512xf32>,
    %c496_i32_152 = arith.constant 496 : i32
    %170 = tpu.dynamic_rotate %138 by %c496_i32_152 dim 1 : vector<8x512xf32>, i32 -> vector<8x512xf32>
    %c7_153 = arith.constant 7 : index
    %c0_154 = arith.constant 0 : index
    %171 = vector.load %arg5[%c7_153, %c0_154] : memref<9x512xf32, #tpu.memory_space<vmem>>, vector<1x512xf32>
    %172 = vector.broadcast %171 : vector<1x512xf32> to vector<8x512xf32>
    %173 = arith.mulf %170, %172 : vector<8x512xf32>
    %c128 = arith.constant 128 : index
    %c0_155 = arith.constant 0 : index
    %174 = vector.load %arg9[%c128, %c0_155] : memref<504x512xf32, #tpu.memory_space<vmem>>, vector<8x512xf32>
    tpu.vector_store %arg9[%c128, %c0_155], %173 {strides = array<i32>} : memref<504x512xf32, #tpu.memory_space<vmem>>, vector<8x512xf32>,
    %c495_i32_156 = arith.constant 495 : i32
    %175 = tpu.dynamic_rotate %138 by %c495_i32_156 dim 1 : vector<8x512xf32>, i32 -> vector<8x512xf32>
    %c8_157 = arith.constant 8 : index
    %c0_158 = arith.constant 0 : index
    %176 = vector.load %arg5[%c8_157, %c0_158] : memref<9x512xf32, #tpu.memory_space<vmem>>, vector<1x512xf32>
    %177 = vector.broadcast %176 : vector<1x512xf32> to vector<8x512xf32>
    %178 = arith.mulf %175, %177 : vector<8x512xf32>
    %c136 = arith.constant 136 : index
    %c0_159 = arith.constant 0 : index
    %179 = vector.load %arg9[%c136, %c0_159] : memref<504x512xf32, #tpu.memory_space<vmem>>, vector<8x512xf32>
    tpu.vector_store %arg9[%c136, %c0_159], %178 {strides = array<i32>} : memref<504x512xf32, #tpu.memory_space<vmem>>, vector<8x512xf32>,
    %c72_160 = arith.constant 72 : index
    %c0_161 = arith.constant 0 : index
    %180 = vector.load %arg9[%c72_160, %c0_161] : memref<504x512xf32, #tpu.memory_space<vmem>>, vector<72x512xf32>
    %c24_162 = arith.constant 24 : index
    %c0_163 = arith.constant 0 : index
    %181 = vector.load %arg3[%c24_162, %c0_163] : memref<72x512xf32, #tpu.memory_space<vmem>>, vector<8x72xf32>
    %cst_164 = arith.constant dense<0.000000e+00> : vector<8x512xf32>
    %182 = tpu.matmul %181, %180, %cst_164 {dimension_numbers = #tpu.dot_dimension_numbers<[1], [0], [0], [1], [0, 0, 1, 1], [], []>} : vector<8x72xf32>, vector<72x512xf32>, vector<8x512xf32> -> vector<8x512xf32>
    %c24_165 = arith.constant 24 : index
    %c0_166 = arith.constant 0 : index
    %183 = vector.load %arg4[%c24_165, %c0_166] : memref<72x1xf32, #tpu.memory_space<vmem>>, vector<8x1xf32>
    %184 = vector.broadcast %183 : vector<8x1xf32> to vector<8x512xf32>
    %185 = arith.addf %182, %184 : vector<8x512xf32>
    %cst_167 = arith.constant 0.000000e+00 : f32
    %186 = vector.broadcast %cst_167 : f32 to vector<8x512xf32>
    %187 = arith.maximumf %185, %186 : vector<8x512xf32>
    %c17_i32_168 = arith.constant 17 : i32
    %188 = tpu.dynamic_rotate %187 by %c17_i32_168 dim 1 : vector<8x512xf32>, i32 -> vector<8x512xf32>
    %c0_169 = arith.constant 0 : index
    %c0_170 = arith.constant 0 : index
    %189 = vector.load %arg5[%c0_169, %c0_170] : memref<9x512xf32, #tpu.memory_space<vmem>>, vector<1x512xf32>
    %190 = vector.broadcast %189 : vector<1x512xf32> to vector<8x512xf32>
    %191 = arith.mulf %188, %190 : vector<8x512xf32>
    %c144 = arith.constant 144 : index
    %c0_171 = arith.constant 0 : index
    %192 = vector.load %arg9[%c144, %c0_171] : memref<504x512xf32, #tpu.memory_space<vmem>>, vector<8x512xf32>
    tpu.vector_store %arg9[%c144, %c0_171], %191 {strides = array<i32>} : memref<504x512xf32, #tpu.memory_space<vmem>>, vector<8x512xf32>,
    %c16_i32_172 = arith.constant 16 : i32
    %193 = tpu.dynamic_rotate %187 by %c16_i32_172 dim 1 : vector<8x512xf32>, i32 -> vector<8x512xf32>
    %c1_173 = arith.constant 1 : index
    %c0_174 = arith.constant 0 : index
    %194 = vector.load %arg5[%c1_173, %c0_174] : memref<9x512xf32, #tpu.memory_space<vmem>>, vector<1x512xf32>
    %195 = vector.broadcast %194 : vector<1x512xf32> to vector<8x512xf32>
    %196 = arith.mulf %193, %195 : vector<8x512xf32>
    %c152 = arith.constant 152 : index
    %c0_175 = arith.constant 0 : index
    %197 = vector.load %arg9[%c152, %c0_175] : memref<504x512xf32, #tpu.memory_space<vmem>>, vector<8x512xf32>
    tpu.vector_store %arg9[%c152, %c0_175], %196 {strides = array<i32>} : memref<504x512xf32, #tpu.memory_space<vmem>>, vector<8x512xf32>,
    %c15_i32_176 = arith.constant 15 : i32
    %198 = tpu.dynamic_rotate %187 by %c15_i32_176 dim 1 : vector<8x512xf32>, i32 -> vector<8x512xf32>
    %c2_177 = arith.constant 2 : index
    %c0_178 = arith.constant 0 : index
    %199 = vector.load %arg5[%c2_177, %c0_178] : memref<9x512xf32, #tpu.memory_space<vmem>>, vector<1x512xf32>
    %200 = vector.broadcast %199 : vector<1x512xf32> to vector<8x512xf32>
    %201 = arith.mulf %198, %200 : vector<8x512xf32>
    %c160 = arith.constant 160 : index
    %c0_179 = arith.constant 0 : index
    %202 = vector.load %arg9[%c160, %c0_179] : memref<504x512xf32, #tpu.memory_space<vmem>>, vector<8x512xf32>
    tpu.vector_store %arg9[%c160, %c0_179], %201 {strides = array<i32>} : memref<504x512xf32, #tpu.memory_space<vmem>>, vector<8x512xf32>,
    %c1_i32_180 = arith.constant 1 : i32
    %203 = tpu.dynamic_rotate %187 by %c1_i32_180 dim 1 : vector<8x512xf32>, i32 -> vector<8x512xf32>
    %c3_181 = arith.constant 3 : index
    %c0_182 = arith.constant 0 : index
    %204 = vector.load %arg5[%c3_181, %c0_182] : memref<9x512xf32, #tpu.memory_space<vmem>>, vector<1x512xf32>
    %205 = vector.broadcast %204 : vector<1x512xf32> to vector<8x512xf32>
    %206 = arith.mulf %203, %205 : vector<8x512xf32>
    %c168 = arith.constant 168 : index
    %c0_183 = arith.constant 0 : index
    %207 = vector.load %arg9[%c168, %c0_183] : memref<504x512xf32, #tpu.memory_space<vmem>>, vector<8x512xf32>
    tpu.vector_store %arg9[%c168, %c0_183], %206 {strides = array<i32>} : memref<504x512xf32, #tpu.memory_space<vmem>>, vector<8x512xf32>,
    %c176 = arith.constant 176 : index
    %c0_184 = arith.constant 0 : index
    %208 = vector.load %arg9[%c176, %c0_184] : memref<504x512xf32, #tpu.memory_space<vmem>>, vector<8x512xf32>
    tpu.vector_store %arg9[%c176, %c0_184], %187 {strides = array<i32>} : memref<504x512xf32, #tpu.memory_space<vmem>>, vector<8x512xf32>,
    %c511_i32_185 = arith.constant 511 : i32
    %209 = tpu.dynamic_rotate %187 by %c511_i32_185 dim 1 : vector<8x512xf32>, i32 -> vector<8x512xf32>
    %c5_186 = arith.constant 5 : index
    %c0_187 = arith.constant 0 : index
    %210 = vector.load %arg5[%c5_186, %c0_187] : memref<9x512xf32, #tpu.memory_space<vmem>>, vector<1x512xf32>
    %211 = vector.broadcast %210 : vector<1x512xf32> to vector<8x512xf32>
    %212 = arith.mulf %209, %211 : vector<8x512xf32>
    %c184 = arith.constant 184 : index
    %c0_188 = arith.constant 0 : index
    %213 = vector.load %arg9[%c184, %c0_188] : memref<504x512xf32, #tpu.memory_space<vmem>>, vector<8x512xf32>
    tpu.vector_store %arg9[%c184, %c0_188], %212 {strides = array<i32>} : memref<504x512xf32, #tpu.memory_space<vmem>>, vector<8x512xf32>,
    %c497_i32_189 = arith.constant 497 : i32
    %214 = tpu.dynamic_rotate %187 by %c497_i32_189 dim 1 : vector<8x512xf32>, i32 -> vector<8x512xf32>
    %c6_190 = arith.constant 6 : index
    %c0_191 = arith.constant 0 : index
    %215 = vector.load %arg5[%c6_190, %c0_191] : memref<9x512xf32, #tpu.memory_space<vmem>>, vector<1x512xf32>
    %216 = vector.broadcast %215 : vector<1x512xf32> to vector<8x512xf32>
    %217 = arith.mulf %214, %216 : vector<8x512xf32>
    %c192 = arith.constant 192 : index
    %c0_192 = arith.constant 0 : index
    %218 = vector.load %arg9[%c192, %c0_192] : memref<504x512xf32, #tpu.memory_space<vmem>>, vector<8x512xf32>
    tpu.vector_store %arg9[%c192, %c0_192], %217 {strides = array<i32>} : memref<504x512xf32, #tpu.memory_space<vmem>>, vector<8x512xf32>,
    %c496_i32_193 = arith.constant 496 : i32
    %219 = tpu.dynamic_rotate %187 by %c496_i32_193 dim 1 : vector<8x512xf32>, i32 -> vector<8x512xf32>
    %c7_194 = arith.constant 7 : index
    %c0_195 = arith.constant 0 : index
    %220 = vector.load %arg5[%c7_194, %c0_195] : memref<9x512xf32, #tpu.memory_space<vmem>>, vector<1x512xf32>
    %221 = vector.broadcast %220 : vector<1x512xf32> to vector<8x512xf32>
    %222 = arith.mulf %219, %221 : vector<8x512xf32>
    %c200 = arith.constant 200 : index
    %c0_196 = arith.constant 0 : index
    %223 = vector.load %arg9[%c200, %c0_196] : memref<504x512xf32, #tpu.memory_space<vmem>>, vector<8x512xf32>
    tpu.vector_store %arg9[%c200, %c0_196], %222 {strides = array<i32>} : memref<504x512xf32, #tpu.memory_space<vmem>>, vector<8x512xf32>,
    %c495_i32_197 = arith.constant 495 : i32
    %224 = tpu.dynamic_rotate %187 by %c495_i32_197 dim 1 : vector<8x512xf32>, i32 -> vector<8x512xf32>
    %c8_198 = arith.constant 8 : index
    %c0_199 = arith.constant 0 : index
    %225 = vector.load %arg5[%c8_198, %c0_199] : memref<9x512xf32, #tpu.memory_space<vmem>>, vector<1x512xf32>
    %226 = vector.broadcast %225 : vector<1x512xf32> to vector<8x512xf32>
    %227 = arith.mulf %224, %226 : vector<8x512xf32>
    %c208 = arith.constant 208 : index
    %c0_200 = arith.constant 0 : index
    %228 = vector.load %arg9[%c208, %c0_200] : memref<504x512xf32, #tpu.memory_space<vmem>>, vector<8x512xf32>
    tpu.vector_store %arg9[%c208, %c0_200], %227 {strides = array<i32>} : memref<504x512xf32, #tpu.memory_space<vmem>>, vector<8x512xf32>,
    %c144_201 = arith.constant 144 : index
    %c0_202 = arith.constant 0 : index
    %229 = vector.load %arg9[%c144_201, %c0_202] : memref<504x512xf32, #tpu.memory_space<vmem>>, vector<72x512xf32>
    %c32_203 = arith.constant 32 : index
    %c0_204 = arith.constant 0 : index
    %230 = vector.load %arg3[%c32_203, %c0_204] : memref<72x512xf32, #tpu.memory_space<vmem>>, vector<8x72xf32>
    %cst_205 = arith.constant dense<0.000000e+00> : vector<8x512xf32>
    %231 = tpu.matmul %230, %229, %cst_205 {dimension_numbers = #tpu.dot_dimension_numbers<[1], [0], [0], [1], [0, 0, 1, 1], [], []>} : vector<8x72xf32>, vector<72x512xf32>, vector<8x512xf32> -> vector<8x512xf32>
    %c32_206 = arith.constant 32 : index
    %c0_207 = arith.constant 0 : index
    %232 = vector.load %arg4[%c32_206, %c0_207] : memref<72x1xf32, #tpu.memory_space<vmem>>, vector<8x1xf32>
    %233 = vector.broadcast %232 : vector<8x1xf32> to vector<8x512xf32>
    %234 = arith.addf %231, %233 : vector<8x512xf32>
    %cst_208 = arith.constant 0.000000e+00 : f32
    %235 = vector.broadcast %cst_208 : f32 to vector<8x512xf32>
    %236 = arith.maximumf %234, %235 : vector<8x512xf32>
    %c17_i32_209 = arith.constant 17 : i32
    %237 = tpu.dynamic_rotate %236 by %c17_i32_209 dim 1 : vector<8x512xf32>, i32 -> vector<8x512xf32>
    %c0_210 = arith.constant 0 : index
    %c0_211 = arith.constant 0 : index
    %238 = vector.load %arg5[%c0_210, %c0_211] : memref<9x512xf32, #tpu.memory_space<vmem>>, vector<1x512xf32>
    %239 = vector.broadcast %238 : vector<1x512xf32> to vector<8x512xf32>
    %240 = arith.mulf %237, %239 : vector<8x512xf32>
    %c216 = arith.constant 216 : index
    %c0_212 = arith.constant 0 : index
    %241 = vector.load %arg9[%c216, %c0_212] : memref<504x512xf32, #tpu.memory_space<vmem>>, vector<8x512xf32>
    tpu.vector_store %arg9[%c216, %c0_212], %240 {strides = array<i32>} : memref<504x512xf32, #tpu.memory_space<vmem>>, vector<8x512xf32>,
    %c16_i32_213 = arith.constant 16 : i32
    %242 = tpu.dynamic_rotate %236 by %c16_i32_213 dim 1 : vector<8x512xf32>, i32 -> vector<8x512xf32>
    %c1_214 = arith.constant 1 : index
    %c0_215 = arith.constant 0 : index
    %243 = vector.load %arg5[%c1_214, %c0_215] : memref<9x512xf32, #tpu.memory_space<vmem>>, vector<1x512xf32>
    %244 = vector.broadcast %243 : vector<1x512xf32> to vector<8x512xf32>
    %245 = arith.mulf %242, %244 : vector<8x512xf32>
    %c224 = arith.constant 224 : index
    %c0_216 = arith.constant 0 : index
    %246 = vector.load %arg9[%c224, %c0_216] : memref<504x512xf32, #tpu.memory_space<vmem>>, vector<8x512xf32>
    tpu.vector_store %arg9[%c224, %c0_216], %245 {strides = array<i32>} : memref<504x512xf32, #tpu.memory_space<vmem>>, vector<8x512xf32>,
    %c15_i32_217 = arith.constant 15 : i32
    %247 = tpu.dynamic_rotate %236 by %c15_i32_217 dim 1 : vector<8x512xf32>, i32 -> vector<8x512xf32>
    %c2_218 = arith.constant 2 : index
    %c0_219 = arith.constant 0 : index
    %248 = vector.load %arg5[%c2_218, %c0_219] : memref<9x512xf32, #tpu.memory_space<vmem>>, vector<1x512xf32>
    %249 = vector.broadcast %248 : vector<1x512xf32> to vector<8x512xf32>
    %250 = arith.mulf %247, %249 : vector<8x512xf32>
    %c232 = arith.constant 232 : index
    %c0_220 = arith.constant 0 : index
    %251 = vector.load %arg9[%c232, %c0_220] : memref<504x512xf32, #tpu.memory_space<vmem>>, vector<8x512xf32>
    tpu.vector_store %arg9[%c232, %c0_220], %250 {strides = array<i32>} : memref<504x512xf32, #tpu.memory_space<vmem>>, vector<8x512xf32>,
    %c1_i32_221 = arith.constant 1 : i32
    %252 = tpu.dynamic_rotate %236 by %c1_i32_221 dim 1 : vector<8x512xf32>, i32 -> vector<8x512xf32>
    %c3_222 = arith.constant 3 : index
    %c0_223 = arith.constant 0 : index
    %253 = vector.load %arg5[%c3_222, %c0_223] : memref<9x512xf32, #tpu.memory_space<vmem>>, vector<1x512xf32>
    %254 = vector.broadcast %253 : vector<1x512xf32> to vector<8x512xf32>
    %255 = arith.mulf %252, %254 : vector<8x512xf32>
    %c240 = arith.constant 240 : index
    %c0_224 = arith.constant 0 : index
    %256 = vector.load %arg9[%c240, %c0_224] : memref<504x512xf32, #tpu.memory_space<vmem>>, vector<8x512xf32>
    tpu.vector_store %arg9[%c240, %c0_224], %255 {strides = array<i32>} : memref<504x512xf32, #tpu.memory_space<vmem>>, vector<8x512xf32>,
    %c248 = arith.constant 248 : index
    %c0_225 = arith.constant 0 : index
    %257 = vector.load %arg9[%c248, %c0_225] : memref<504x512xf32, #tpu.memory_space<vmem>>, vector<8x512xf32>
    tpu.vector_store %arg9[%c248, %c0_225], %236 {strides = array<i32>} : memref<504x512xf32, #tpu.memory_space<vmem>>, vector<8x512xf32>,
    %c511_i32_226 = arith.constant 511 : i32
    %258 = tpu.dynamic_rotate %236 by %c511_i32_226 dim 1 : vector<8x512xf32>, i32 -> vector<8x512xf32>
    %c5_227 = arith.constant 5 : index
    %c0_228 = arith.constant 0 : index
    %259 = vector.load %arg5[%c5_227, %c0_228] : memref<9x512xf32, #tpu.memory_space<vmem>>, vector<1x512xf32>
    %260 = vector.broadcast %259 : vector<1x512xf32> to vector<8x512xf32>
    %261 = arith.mulf %258, %260 : vector<8x512xf32>
    %c256 = arith.constant 256 : index
    %c0_229 = arith.constant 0 : index
    %262 = vector.load %arg9[%c256, %c0_229] : memref<504x512xf32, #tpu.memory_space<vmem>>, vector<8x512xf32>
    tpu.vector_store %arg9[%c256, %c0_229], %261 {strides = array<i32>} : memref<504x512xf32, #tpu.memory_space<vmem>>, vector<8x512xf32>,
    %c497_i32_230 = arith.constant 497 : i32
    %263 = tpu.dynamic_rotate %236 by %c497_i32_230 dim 1 : vector<8x512xf32>, i32 -> vector<8x512xf32>
    %c6_231 = arith.constant 6 : index
    %c0_232 = arith.constant 0 : index
    %264 = vector.load %arg5[%c6_231, %c0_232] : memref<9x512xf32, #tpu.memory_space<vmem>>, vector<1x512xf32>
    %265 = vector.broadcast %264 : vector<1x512xf32> to vector<8x512xf32>
    %266 = arith.mulf %263, %265 : vector<8x512xf32>
    %c264 = arith.constant 264 : index
    %c0_233 = arith.constant 0 : index
    %267 = vector.load %arg9[%c264, %c0_233] : memref<504x512xf32, #tpu.memory_space<vmem>>, vector<8x512xf32>
    tpu.vector_store %arg9[%c264, %c0_233], %266 {strides = array<i32>} : memref<504x512xf32, #tpu.memory_space<vmem>>, vector<8x512xf32>,
    %c496_i32_234 = arith.constant 496 : i32
    %268 = tpu.dynamic_rotate %236 by %c496_i32_234 dim 1 : vector<8x512xf32>, i32 -> vector<8x512xf32>
    %c7_235 = arith.constant 7 : index
    %c0_236 = arith.constant 0 : index
    %269 = vector.load %arg5[%c7_235, %c0_236] : memref<9x512xf32, #tpu.memory_space<vmem>>, vector<1x512xf32>
    %270 = vector.broadcast %269 : vector<1x512xf32> to vector<8x512xf32>
    %271 = arith.mulf %268, %270 : vector<8x512xf32>
    %c272 = arith.constant 272 : index
    %c0_237 = arith.constant 0 : index
    %272 = vector.load %arg9[%c272, %c0_237] : memref<504x512xf32, #tpu.memory_space<vmem>>, vector<8x512xf32>
    tpu.vector_store %arg9[%c272, %c0_237], %271 {strides = array<i32>} : memref<504x512xf32, #tpu.memory_space<vmem>>, vector<8x512xf32>,
    %c495_i32_238 = arith.constant 495 : i32
    %273 = tpu.dynamic_rotate %236 by %c495_i32_238 dim 1 : vector<8x512xf32>, i32 -> vector<8x512xf32>
    %c8_239 = arith.constant 8 : index
    %c0_240 = arith.constant 0 : index
    %274 = vector.load %arg5[%c8_239, %c0_240] : memref<9x512xf32, #tpu.memory_space<vmem>>, vector<1x512xf32>
    %275 = vector.broadcast %274 : vector<1x512xf32> to vector<8x512xf32>
    %276 = arith.mulf %273, %275 : vector<8x512xf32>
    %c280 = arith.constant 280 : index
    %c0_241 = arith.constant 0 : index
    %277 = vector.load %arg9[%c280, %c0_241] : memref<504x512xf32, #tpu.memory_space<vmem>>, vector<8x512xf32>
    tpu.vector_store %arg9[%c280, %c0_241], %276 {strides = array<i32>} : memref<504x512xf32, #tpu.memory_space<vmem>>, vector<8x512xf32>,
    %c216_242 = arith.constant 216 : index
    %c0_243 = arith.constant 0 : index
    %278 = vector.load %arg9[%c216_242, %c0_243] : memref<504x512xf32, #tpu.memory_space<vmem>>, vector<72x512xf32>
    %c40_244 = arith.constant 40 : index
    %c0_245 = arith.constant 0 : index
    %279 = vector.load %arg3[%c40_244, %c0_245] : memref<72x512xf32, #tpu.memory_space<vmem>>, vector<8x72xf32>
    %cst_246 = arith.constant dense<0.000000e+00> : vector<8x512xf32>
    %280 = tpu.matmul %279, %278, %cst_246 {dimension_numbers = #tpu.dot_dimension_numbers<[1], [0], [0], [1], [0, 0, 1, 1], [], []>} : vector<8x72xf32>, vector<72x512xf32>, vector<8x512xf32> -> vector<8x512xf32>
    %c40_247 = arith.constant 40 : index
    %c0_248 = arith.constant 0 : index
    %281 = vector.load %arg4[%c40_247, %c0_248] : memref<72x1xf32, #tpu.memory_space<vmem>>, vector<8x1xf32>
    %282 = vector.broadcast %281 : vector<8x1xf32> to vector<8x512xf32>
    %283 = arith.addf %280, %282 : vector<8x512xf32>
    %cst_249 = arith.constant 0.000000e+00 : f32
    %284 = vector.broadcast %cst_249 : f32 to vector<8x512xf32>
    %285 = arith.maximumf %283, %284 : vector<8x512xf32>
    %c17_i32_250 = arith.constant 17 : i32
    %286 = tpu.dynamic_rotate %285 by %c17_i32_250 dim 1 : vector<8x512xf32>, i32 -> vector<8x512xf32>
    %c0_251 = arith.constant 0 : index
    %c0_252 = arith.constant 0 : index
    %287 = vector.load %arg5[%c0_251, %c0_252] : memref<9x512xf32, #tpu.memory_space<vmem>>, vector<1x512xf32>
    %288 = vector.broadcast %287 : vector<1x512xf32> to vector<8x512xf32>
    %289 = arith.mulf %286, %288 : vector<8x512xf32>
    %c288 = arith.constant 288 : index
    %c0_253 = arith.constant 0 : index
    %290 = vector.load %arg9[%c288, %c0_253] : memref<504x512xf32, #tpu.memory_space<vmem>>, vector<8x512xf32>
    tpu.vector_store %arg9[%c288, %c0_253], %289 {strides = array<i32>} : memref<504x512xf32, #tpu.memory_space<vmem>>, vector<8x512xf32>,
    %c16_i32_254 = arith.constant 16 : i32
    %291 = tpu.dynamic_rotate %285 by %c16_i32_254 dim 1 : vector<8x512xf32>, i32 -> vector<8x512xf32>
    %c1_255 = arith.constant 1 : index
    %c0_256 = arith.constant 0 : index
    %292 = vector.load %arg5[%c1_255, %c0_256] : memref<9x512xf32, #tpu.memory_space<vmem>>, vector<1x512xf32>
    %293 = vector.broadcast %292 : vector<1x512xf32> to vector<8x512xf32>
    %294 = arith.mulf %291, %293 : vector<8x512xf32>
    %c296 = arith.constant 296 : index
    %c0_257 = arith.constant 0 : index
    %295 = vector.load %arg9[%c296, %c0_257] : memref<504x512xf32, #tpu.memory_space<vmem>>, vector<8x512xf32>
    tpu.vector_store %arg9[%c296, %c0_257], %294 {strides = array<i32>} : memref<504x512xf32, #tpu.memory_space<vmem>>, vector<8x512xf32>,
    %c15_i32_258 = arith.constant 15 : i32
    %296 = tpu.dynamic_rotate %285 by %c15_i32_258 dim 1 : vector<8x512xf32>, i32 -> vector<8x512xf32>
    %c2_259 = arith.constant 2 : index
    %c0_260 = arith.constant 0 : index
    %297 = vector.load %arg5[%c2_259, %c0_260] : memref<9x512xf32, #tpu.memory_space<vmem>>, vector<1x512xf32>
    %298 = vector.broadcast %297 : vector<1x512xf32> to vector<8x512xf32>
    %299 = arith.mulf %296, %298 : vector<8x512xf32>
    %c304 = arith.constant 304 : index
    %c0_261 = arith.constant 0 : index
    %300 = vector.load %arg9[%c304, %c0_261] : memref<504x512xf32, #tpu.memory_space<vmem>>, vector<8x512xf32>
    tpu.vector_store %arg9[%c304, %c0_261], %299 {strides = array<i32>} : memref<504x512xf32, #tpu.memory_space<vmem>>, vector<8x512xf32>,
    %c1_i32_262 = arith.constant 1 : i32
    %301 = tpu.dynamic_rotate %285 by %c1_i32_262 dim 1 : vector<8x512xf32>, i32 -> vector<8x512xf32>
    %c3_263 = arith.constant 3 : index
    %c0_264 = arith.constant 0 : index
    %302 = vector.load %arg5[%c3_263, %c0_264] : memref<9x512xf32, #tpu.memory_space<vmem>>, vector<1x512xf32>
    %303 = vector.broadcast %302 : vector<1x512xf32> to vector<8x512xf32>
    %304 = arith.mulf %301, %303 : vector<8x512xf32>
    %c312 = arith.constant 312 : index
    %c0_265 = arith.constant 0 : index
    %305 = vector.load %arg9[%c312, %c0_265] : memref<504x512xf32, #tpu.memory_space<vmem>>, vector<8x512xf32>
    tpu.vector_store %arg9[%c312, %c0_265], %304 {strides = array<i32>} : memref<504x512xf32, #tpu.memory_space<vmem>>, vector<8x512xf32>,
    %c320 = arith.constant 320 : index
    %c0_266 = arith.constant 0 : index
    %306 = vector.load %arg9[%c320, %c0_266] : memref<504x512xf32, #tpu.memory_space<vmem>>, vector<8x512xf32>
    tpu.vector_store %arg9[%c320, %c0_266], %285 {strides = array<i32>} : memref<504x512xf32, #tpu.memory_space<vmem>>, vector<8x512xf32>,
    %c511_i32_267 = arith.constant 511 : i32
    %307 = tpu.dynamic_rotate %285 by %c511_i32_267 dim 1 : vector<8x512xf32>, i32 -> vector<8x512xf32>
    %c5_268 = arith.constant 5 : index
    %c0_269 = arith.constant 0 : index
    %308 = vector.load %arg5[%c5_268, %c0_269] : memref<9x512xf32, #tpu.memory_space<vmem>>, vector<1x512xf32>
    %309 = vector.broadcast %308 : vector<1x512xf32> to vector<8x512xf32>
    %310 = arith.mulf %307, %309 : vector<8x512xf32>
    %c328 = arith.constant 328 : index
    %c0_270 = arith.constant 0 : index
    %311 = vector.load %arg9[%c328, %c0_270] : memref<504x512xf32, #tpu.memory_space<vmem>>, vector<8x512xf32>
    tpu.vector_store %arg9[%c328, %c0_270], %310 {strides = array<i32>} : memref<504x512xf32, #tpu.memory_space<vmem>>, vector<8x512xf32>,
    %c497_i32_271 = arith.constant 497 : i32
    %312 = tpu.dynamic_rotate %285 by %c497_i32_271 dim 1 : vector<8x512xf32>, i32 -> vector<8x512xf32>
    %c6_272 = arith.constant 6 : index
    %c0_273 = arith.constant 0 : index
    %313 = vector.load %arg5[%c6_272, %c0_273] : memref<9x512xf32, #tpu.memory_space<vmem>>, vector<1x512xf32>
    %314 = vector.broadcast %313 : vector<1x512xf32> to vector<8x512xf32>
    %315 = arith.mulf %312, %314 : vector<8x512xf32>
    %c336 = arith.constant 336 : index
    %c0_274 = arith.constant 0 : index
    %316 = vector.load %arg9[%c336, %c0_274] : memref<504x512xf32, #tpu.memory_space<vmem>>, vector<8x512xf32>
    tpu.vector_store %arg9[%c336, %c0_274], %315 {strides = array<i32>} : memref<504x512xf32, #tpu.memory_space<vmem>>, vector<8x512xf32>,
    %c496_i32_275 = arith.constant 496 : i32
    %317 = tpu.dynamic_rotate %285 by %c496_i32_275 dim 1 : vector<8x512xf32>, i32 -> vector<8x512xf32>
    %c7_276 = arith.constant 7 : index
    %c0_277 = arith.constant 0 : index
    %318 = vector.load %arg5[%c7_276, %c0_277] : memref<9x512xf32, #tpu.memory_space<vmem>>, vector<1x512xf32>
    %319 = vector.broadcast %318 : vector<1x512xf32> to vector<8x512xf32>
    %320 = arith.mulf %317, %319 : vector<8x512xf32>
    %c344 = arith.constant 344 : index
    %c0_278 = arith.constant 0 : index
    %321 = vector.load %arg9[%c344, %c0_278] : memref<504x512xf32, #tpu.memory_space<vmem>>, vector<8x512xf32>
    tpu.vector_store %arg9[%c344, %c0_278], %320 {strides = array<i32>} : memref<504x512xf32, #tpu.memory_space<vmem>>, vector<8x512xf32>,
    %c495_i32_279 = arith.constant 495 : i32
    %322 = tpu.dynamic_rotate %285 by %c495_i32_279 dim 1 : vector<8x512xf32>, i32 -> vector<8x512xf32>
    %c8_280 = arith.constant 8 : index
    %c0_281 = arith.constant 0 : index
    %323 = vector.load %arg5[%c8_280, %c0_281] : memref<9x512xf32, #tpu.memory_space<vmem>>, vector<1x512xf32>
    %324 = vector.broadcast %323 : vector<1x512xf32> to vector<8x512xf32>
    %325 = arith.mulf %322, %324 : vector<8x512xf32>
    %c352 = arith.constant 352 : index
    %c0_282 = arith.constant 0 : index
    %326 = vector.load %arg9[%c352, %c0_282] : memref<504x512xf32, #tpu.memory_space<vmem>>, vector<8x512xf32>
    tpu.vector_store %arg9[%c352, %c0_282], %325 {strides = array<i32>} : memref<504x512xf32, #tpu.memory_space<vmem>>, vector<8x512xf32>,
    %c288_283 = arith.constant 288 : index
    %c0_284 = arith.constant 0 : index
    %327 = vector.load %arg9[%c288_283, %c0_284] : memref<504x512xf32, #tpu.memory_space<vmem>>, vector<72x512xf32>
    %c48_285 = arith.constant 48 : index
    %c0_286 = arith.constant 0 : index
    %328 = vector.load %arg3[%c48_285, %c0_286] : memref<72x512xf32, #tpu.memory_space<vmem>>, vector<8x72xf32>
    %cst_287 = arith.constant dense<0.000000e+00> : vector<8x512xf32>
    %329 = tpu.matmul %328, %327, %cst_287 {dimension_numbers = #tpu.dot_dimension_numbers<[1], [0], [0], [1], [0, 0, 1, 1], [], []>} : vector<8x72xf32>, vector<72x512xf32>, vector<8x512xf32> -> vector<8x512xf32>
    %c48_288 = arith.constant 48 : index
    %c0_289 = arith.constant 0 : index
    %330 = vector.load %arg4[%c48_288, %c0_289] : memref<72x1xf32, #tpu.memory_space<vmem>>, vector<8x1xf32>
    %331 = vector.broadcast %330 : vector<8x1xf32> to vector<8x512xf32>
    %332 = arith.addf %329, %331 : vector<8x512xf32>
    %cst_290 = arith.constant 0.000000e+00 : f32
    %333 = vector.broadcast %cst_290 : f32 to vector<8x512xf32>
    %334 = arith.maximumf %332, %333 : vector<8x512xf32>
    %c17_i32_291 = arith.constant 17 : i32
    %335 = tpu.dynamic_rotate %334 by %c17_i32_291 dim 1 : vector<8x512xf32>, i32 -> vector<8x512xf32>
    %c0_292 = arith.constant 0 : index
    %c0_293 = arith.constant 0 : index
    %336 = vector.load %arg5[%c0_292, %c0_293] : memref<9x512xf32, #tpu.memory_space<vmem>>, vector<1x512xf32>
    %337 = vector.broadcast %336 : vector<1x512xf32> to vector<8x512xf32>
    %338 = arith.mulf %335, %337 : vector<8x512xf32>
    %c360 = arith.constant 360 : index
    %c0_294 = arith.constant 0 : index
    %339 = vector.load %arg9[%c360, %c0_294] : memref<504x512xf32, #tpu.memory_space<vmem>>, vector<8x512xf32>
    tpu.vector_store %arg9[%c360, %c0_294], %338 {strides = array<i32>} : memref<504x512xf32, #tpu.memory_space<vmem>>, vector<8x512xf32>,
    %c16_i32_295 = arith.constant 16 : i32
    %340 = tpu.dynamic_rotate %334 by %c16_i32_295 dim 1 : vector<8x512xf32>, i32 -> vector<8x512xf32>
    %c1_296 = arith.constant 1 : index
    %c0_297 = arith.constant 0 : index
    %341 = vector.load %arg5[%c1_296, %c0_297] : memref<9x512xf32, #tpu.memory_space<vmem>>, vector<1x512xf32>
    %342 = vector.broadcast %341 : vector<1x512xf32> to vector<8x512xf32>
    %343 = arith.mulf %340, %342 : vector<8x512xf32>
    %c368 = arith.constant 368 : index
    %c0_298 = arith.constant 0 : index
    %344 = vector.load %arg9[%c368, %c0_298] : memref<504x512xf32, #tpu.memory_space<vmem>>, vector<8x512xf32>
    tpu.vector_store %arg9[%c368, %c0_298], %343 {strides = array<i32>} : memref<504x512xf32, #tpu.memory_space<vmem>>, vector<8x512xf32>,
    %c15_i32_299 = arith.constant 15 : i32
    %345 = tpu.dynamic_rotate %334 by %c15_i32_299 dim 1 : vector<8x512xf32>, i32 -> vector<8x512xf32>
    %c2_300 = arith.constant 2 : index
    %c0_301 = arith.constant 0 : index
    %346 = vector.load %arg5[%c2_300, %c0_301] : memref<9x512xf32, #tpu.memory_space<vmem>>, vector<1x512xf32>
    %347 = vector.broadcast %346 : vector<1x512xf32> to vector<8x512xf32>
    %348 = arith.mulf %345, %347 : vector<8x512xf32>
    %c376 = arith.constant 376 : index
    %c0_302 = arith.constant 0 : index
    %349 = vector.load %arg9[%c376, %c0_302] : memref<504x512xf32, #tpu.memory_space<vmem>>, vector<8x512xf32>
    tpu.vector_store %arg9[%c376, %c0_302], %348 {strides = array<i32>} : memref<504x512xf32, #tpu.memory_space<vmem>>, vector<8x512xf32>,
    %c1_i32_303 = arith.constant 1 : i32
    %350 = tpu.dynamic_rotate %334 by %c1_i32_303 dim 1 : vector<8x512xf32>, i32 -> vector<8x512xf32>
    %c3_304 = arith.constant 3 : index
    %c0_305 = arith.constant 0 : index
    %351 = vector.load %arg5[%c3_304, %c0_305] : memref<9x512xf32, #tpu.memory_space<vmem>>, vector<1x512xf32>
    %352 = vector.broadcast %351 : vector<1x512xf32> to vector<8x512xf32>
    %353 = arith.mulf %350, %352 : vector<8x512xf32>
    %c384 = arith.constant 384 : index
    %c0_306 = arith.constant 0 : index
    %354 = vector.load %arg9[%c384, %c0_306] : memref<504x512xf32, #tpu.memory_space<vmem>>, vector<8x512xf32>
    tpu.vector_store %arg9[%c384, %c0_306], %353 {strides = array<i32>} : memref<504x512xf32, #tpu.memory_space<vmem>>, vector<8x512xf32>,
    %c392 = arith.constant 392 : index
    %c0_307 = arith.constant 0 : index
    %355 = vector.load %arg9[%c392, %c0_307] : memref<504x512xf32, #tpu.memory_space<vmem>>, vector<8x512xf32>
    tpu.vector_store %arg9[%c392, %c0_307], %334 {strides = array<i32>} : memref<504x512xf32, #tpu.memory_space<vmem>>, vector<8x512xf32>,
    %c511_i32_308 = arith.constant 511 : i32
    %356 = tpu.dynamic_rotate %334 by %c511_i32_308 dim 1 : vector<8x512xf32>, i32 -> vector<8x512xf32>
    %c5_309 = arith.constant 5 : index
    %c0_310 = arith.constant 0 : index
    %357 = vector.load %arg5[%c5_309, %c0_310] : memref<9x512xf32, #tpu.memory_space<vmem>>, vector<1x512xf32>
    %358 = vector.broadcast %357 : vector<1x512xf32> to vector<8x512xf32>
    %359 = arith.mulf %356, %358 : vector<8x512xf32>
    %c400 = arith.constant 400 : index
    %c0_311 = arith.constant 0 : index
    %360 = vector.load %arg9[%c400, %c0_311] : memref<504x512xf32, #tpu.memory_space<vmem>>, vector<8x512xf32>
    tpu.vector_store %arg9[%c400, %c0_311], %359 {strides = array<i32>} : memref<504x512xf32, #tpu.memory_space<vmem>>, vector<8x512xf32>,
    %c497_i32_312 = arith.constant 497 : i32
    %361 = tpu.dynamic_rotate %334 by %c497_i32_312 dim 1 : vector<8x512xf32>, i32 -> vector<8x512xf32>
    %c6_313 = arith.constant 6 : index
    %c0_314 = arith.constant 0 : index
    %362 = vector.load %arg5[%c6_313, %c0_314] : memref<9x512xf32, #tpu.memory_space<vmem>>, vector<1x512xf32>
    %363 = vector.broadcast %362 : vector<1x512xf32> to vector<8x512xf32>
    %364 = arith.mulf %361, %363 : vector<8x512xf32>
    %c408 = arith.constant 408 : index
    %c0_315 = arith.constant 0 : index
    %365 = vector.load %arg9[%c408, %c0_315] : memref<504x512xf32, #tpu.memory_space<vmem>>, vector<8x512xf32>
    tpu.vector_store %arg9[%c408, %c0_315], %364 {strides = array<i32>} : memref<504x512xf32, #tpu.memory_space<vmem>>, vector<8x512xf32>,
    %c496_i32_316 = arith.constant 496 : i32
    %366 = tpu.dynamic_rotate %334 by %c496_i32_316 dim 1 : vector<8x512xf32>, i32 -> vector<8x512xf32>
    %c7_317 = arith.constant 7 : index
    %c0_318 = arith.constant 0 : index
    %367 = vector.load %arg5[%c7_317, %c0_318] : memref<9x512xf32, #tpu.memory_space<vmem>>, vector<1x512xf32>
    %368 = vector.broadcast %367 : vector<1x512xf32> to vector<8x512xf32>
    %369 = arith.mulf %366, %368 : vector<8x512xf32>
    %c416 = arith.constant 416 : index
    %c0_319 = arith.constant 0 : index
    %370 = vector.load %arg9[%c416, %c0_319] : memref<504x512xf32, #tpu.memory_space<vmem>>, vector<8x512xf32>
    tpu.vector_store %arg9[%c416, %c0_319], %369 {strides = array<i32>} : memref<504x512xf32, #tpu.memory_space<vmem>>, vector<8x512xf32>,
    %c495_i32_320 = arith.constant 495 : i32
    %371 = tpu.dynamic_rotate %334 by %c495_i32_320 dim 1 : vector<8x512xf32>, i32 -> vector<8x512xf32>
    %c8_321 = arith.constant 8 : index
    %c0_322 = arith.constant 0 : index
    %372 = vector.load %arg5[%c8_321, %c0_322] : memref<9x512xf32, #tpu.memory_space<vmem>>, vector<1x512xf32>
    %373 = vector.broadcast %372 : vector<1x512xf32> to vector<8x512xf32>
    %374 = arith.mulf %371, %373 : vector<8x512xf32>
    %c424 = arith.constant 424 : index
    %c0_323 = arith.constant 0 : index
    %375 = vector.load %arg9[%c424, %c0_323] : memref<504x512xf32, #tpu.memory_space<vmem>>, vector<8x512xf32>
    tpu.vector_store %arg9[%c424, %c0_323], %374 {strides = array<i32>} : memref<504x512xf32, #tpu.memory_space<vmem>>, vector<8x512xf32>,
    %c360_324 = arith.constant 360 : index
    %c0_325 = arith.constant 0 : index
    %376 = vector.load %arg9[%c360_324, %c0_325] : memref<504x512xf32, #tpu.memory_space<vmem>>, vector<72x512xf32>
    %c56_326 = arith.constant 56 : index
    %c0_327 = arith.constant 0 : index
    %377 = vector.load %arg3[%c56_326, %c0_327] : memref<72x512xf32, #tpu.memory_space<vmem>>, vector<8x72xf32>
    %cst_328 = arith.constant dense<0.000000e+00> : vector<8x512xf32>
    %378 = tpu.matmul %377, %376, %cst_328 {dimension_numbers = #tpu.dot_dimension_numbers<[1], [0], [0], [1], [0, 0, 1, 1], [], []>} : vector<8x72xf32>, vector<72x512xf32>, vector<8x512xf32> -> vector<8x512xf32>
    %c56_329 = arith.constant 56 : index
    %c0_330 = arith.constant 0 : index
    %379 = vector.load %arg4[%c56_329, %c0_330] : memref<72x1xf32, #tpu.memory_space<vmem>>, vector<8x1xf32>
    %380 = vector.broadcast %379 : vector<8x1xf32> to vector<8x512xf32>
    %381 = arith.addf %378, %380 : vector<8x512xf32>
    %cst_331 = arith.constant 0.000000e+00 : f32
    %382 = vector.broadcast %cst_331 : f32 to vector<8x512xf32>
    %383 = arith.maximumf %381, %382 : vector<8x512xf32>
    %c17_i32_332 = arith.constant 17 : i32
    %384 = tpu.dynamic_rotate %383 by %c17_i32_332 dim 1 : vector<8x512xf32>, i32 -> vector<8x512xf32>
    %c0_333 = arith.constant 0 : index
    %c0_334 = arith.constant 0 : index
    %385 = vector.load %arg5[%c0_333, %c0_334] : memref<9x512xf32, #tpu.memory_space<vmem>>, vector<1x512xf32>
    %386 = vector.broadcast %385 : vector<1x512xf32> to vector<8x512xf32>
    %387 = arith.mulf %384, %386 : vector<8x512xf32>
    %c432 = arith.constant 432 : index
    %c0_335 = arith.constant 0 : index
    %388 = vector.load %arg9[%c432, %c0_335] : memref<504x512xf32, #tpu.memory_space<vmem>>, vector<8x512xf32>
    tpu.vector_store %arg9[%c432, %c0_335], %387 {strides = array<i32>} : memref<504x512xf32, #tpu.memory_space<vmem>>, vector<8x512xf32>,
    %c16_i32_336 = arith.constant 16 : i32
    %389 = tpu.dynamic_rotate %383 by %c16_i32_336 dim 1 : vector<8x512xf32>, i32 -> vector<8x512xf32>
    %c1_337 = arith.constant 1 : index
    %c0_338 = arith.constant 0 : index
    %390 = vector.load %arg5[%c1_337, %c0_338] : memref<9x512xf32, #tpu.memory_space<vmem>>, vector<1x512xf32>
    %391 = vector.broadcast %390 : vector<1x512xf32> to vector<8x512xf32>
    %392 = arith.mulf %389, %391 : vector<8x512xf32>
    %c440 = arith.constant 440 : index
    %c0_339 = arith.constant 0 : index
    %393 = vector.load %arg9[%c440, %c0_339] : memref<504x512xf32, #tpu.memory_space<vmem>>, vector<8x512xf32>
    tpu.vector_store %arg9[%c440, %c0_339], %392 {strides = array<i32>} : memref<504x512xf32, #tpu.memory_space<vmem>>, vector<8x512xf32>,
    %c15_i32_340 = arith.constant 15 : i32
    %394 = tpu.dynamic_rotate %383 by %c15_i32_340 dim 1 : vector<8x512xf32>, i32 -> vector<8x512xf32>
    %c2_341 = arith.constant 2 : index
    %c0_342 = arith.constant 0 : index
    %395 = vector.load %arg5[%c2_341, %c0_342] : memref<9x512xf32, #tpu.memory_space<vmem>>, vector<1x512xf32>
    %396 = vector.broadcast %395 : vector<1x512xf32> to vector<8x512xf32>
    %397 = arith.mulf %394, %396 : vector<8x512xf32>
    %c448 = arith.constant 448 : index
    %c0_343 = arith.constant 0 : index
    %398 = vector.load %arg9[%c448, %c0_343] : memref<504x512xf32, #tpu.memory_space<vmem>>, vector<8x512xf32>
    tpu.vector_store %arg9[%c448, %c0_343], %397 {strides = array<i32>} : memref<504x512xf32, #tpu.memory_space<vmem>>, vector<8x512xf32>,
    %c1_i32_344 = arith.constant 1 : i32
    %399 = tpu.dynamic_rotate %383 by %c1_i32_344 dim 1 : vector<8x512xf32>, i32 -> vector<8x512xf32>
    %c3_345 = arith.constant 3 : index
    %c0_346 = arith.constant 0 : index
    %400 = vector.load %arg5[%c3_345, %c0_346] : memref<9x512xf32, #tpu.memory_space<vmem>>, vector<1x512xf32>
    %401 = vector.broadcast %400 : vector<1x512xf32> to vector<8x512xf32>
    %402 = arith.mulf %399, %401 : vector<8x512xf32>
    %c456 = arith.constant 456 : index
    %c0_347 = arith.constant 0 : index
    %403 = vector.load %arg9[%c456, %c0_347] : memref<504x512xf32, #tpu.memory_space<vmem>>, vector<8x512xf32>
    tpu.vector_store %arg9[%c456, %c0_347], %402 {strides = array<i32>} : memref<504x512xf32, #tpu.memory_space<vmem>>, vector<8x512xf32>,
    %c464 = arith.constant 464 : index
    %c0_348 = arith.constant 0 : index
    %404 = vector.load %arg9[%c464, %c0_348] : memref<504x512xf32, #tpu.memory_space<vmem>>, vector<8x512xf32>
    tpu.vector_store %arg9[%c464, %c0_348], %383 {strides = array<i32>} : memref<504x512xf32, #tpu.memory_space<vmem>>, vector<8x512xf32>,
    %c511_i32_349 = arith.constant 511 : i32
    %405 = tpu.dynamic_rotate %383 by %c511_i32_349 dim 1 : vector<8x512xf32>, i32 -> vector<8x512xf32>
    %c5_350 = arith.constant 5 : index
    %c0_351 = arith.constant 0 : index
    %406 = vector.load %arg5[%c5_350, %c0_351] : memref<9x512xf32, #tpu.memory_space<vmem>>, vector<1x512xf32>
    %407 = vector.broadcast %406 : vector<1x512xf32> to vector<8x512xf32>
    %408 = arith.mulf %405, %407 : vector<8x512xf32>
    %c472 = arith.constant 472 : index
    %c0_352 = arith.constant 0 : index
    %409 = vector.load %arg9[%c472, %c0_352] : memref<504x512xf32, #tpu.memory_space<vmem>>, vector<8x512xf32>
    tpu.vector_store %arg9[%c472, %c0_352], %408 {strides = array<i32>} : memref<504x512xf32, #tpu.memory_space<vmem>>, vector<8x512xf32>,
    %c497_i32_353 = arith.constant 497 : i32
    %410 = tpu.dynamic_rotate %383 by %c497_i32_353 dim 1 : vector<8x512xf32>, i32 -> vector<8x512xf32>
    %c6_354 = arith.constant 6 : index
    %c0_355 = arith.constant 0 : index
    %411 = vector.load %arg5[%c6_354, %c0_355] : memref<9x512xf32, #tpu.memory_space<vmem>>, vector<1x512xf32>
    %412 = vector.broadcast %411 : vector<1x512xf32> to vector<8x512xf32>
    %413 = arith.mulf %410, %412 : vector<8x512xf32>
    %c480 = arith.constant 480 : index
    %c0_356 = arith.constant 0 : index
    %414 = vector.load %arg9[%c480, %c0_356] : memref<504x512xf32, #tpu.memory_space<vmem>>, vector<8x512xf32>
    tpu.vector_store %arg9[%c480, %c0_356], %413 {strides = array<i32>} : memref<504x512xf32, #tpu.memory_space<vmem>>, vector<8x512xf32>,
    %c496_i32_357 = arith.constant 496 : i32
    %415 = tpu.dynamic_rotate %383 by %c496_i32_357 dim 1 : vector<8x512xf32>, i32 -> vector<8x512xf32>
    %c7_358 = arith.constant 7 : index
    %c0_359 = arith.constant 0 : index
    %416 = vector.load %arg5[%c7_358, %c0_359] : memref<9x512xf32, #tpu.memory_space<vmem>>, vector<1x512xf32>
    %417 = vector.broadcast %416 : vector<1x512xf32> to vector<8x512xf32>
    %418 = arith.mulf %415, %417 : vector<8x512xf32>
    %c488 = arith.constant 488 : index
    %c0_360 = arith.constant 0 : index
    %419 = vector.load %arg9[%c488, %c0_360] : memref<504x512xf32, #tpu.memory_space<vmem>>, vector<8x512xf32>
    tpu.vector_store %arg9[%c488, %c0_360], %418 {strides = array<i32>} : memref<504x512xf32, #tpu.memory_space<vmem>>, vector<8x512xf32>,
    %c495_i32_361 = arith.constant 495 : i32
    %420 = tpu.dynamic_rotate %383 by %c495_i32_361 dim 1 : vector<8x512xf32>, i32 -> vector<8x512xf32>
    %c8_362 = arith.constant 8 : index
    %c0_363 = arith.constant 0 : index
    %421 = vector.load %arg5[%c8_362, %c0_363] : memref<9x512xf32, #tpu.memory_space<vmem>>, vector<1x512xf32>
    %422 = vector.broadcast %421 : vector<1x512xf32> to vector<8x512xf32>
    %423 = arith.mulf %420, %422 : vector<8x512xf32>
    %c496 = arith.constant 496 : index
    %c0_364 = arith.constant 0 : index
    %424 = vector.load %arg9[%c496, %c0_364] : memref<504x512xf32, #tpu.memory_space<vmem>>, vector<8x512xf32>
    tpu.vector_store %arg9[%c496, %c0_364], %423 {strides = array<i32>} : memref<504x512xf32, #tpu.memory_space<vmem>>, vector<8x512xf32>,
    %c64_365 = arith.constant 64 : index
    %c0_366 = arith.constant 0 : index
    %425 = vector.load %arg3[%c64_365, %c0_366] : memref<72x512xf32, #tpu.memory_space<vmem>>, vector<4x504xf32>
    %c0_367 = arith.constant 0 : index
    %c0_368 = arith.constant 0 : index
    %426 = vector.load %arg9[%c0_367, %c0_368] : memref<504x512xf32, #tpu.memory_space<vmem>>, vector<504x512xf32>
    %cst_369 = arith.constant dense<0.000000e+00> : vector<4x512xf32>
    %427 = tpu.matmul %425, %426, %cst_369 {dimension_numbers = #tpu.dot_dimension_numbers<[1], [0], [0], [1], [0, 0, 1, 1], [], []>} : vector<4x504xf32>, vector<504x512xf32>, vector<4x512xf32> -> vector<4x512xf32>
    %c64_370 = arith.constant 64 : index
    %c0_371 = arith.constant 0 : index
    %428 = vector.load %arg4[%c64_370, %c0_371] : memref<72x1xf32, #tpu.memory_space<vmem>>, vector<1x1xf32>
    %429 = vector.broadcast %428 : vector<1x1xf32> to vector<4x512xf32>
    %430 = arith.addf %427, %429 : vector<4x512xf32>
    %c0_372 = arith.constant 0 : index
    %c0_373 = arith.constant 0 : index
    %c0_374 = arith.constant 0 : index
    %431 = vector.load %arg2[%c0_372, %c0_373, %c0_374] : memref<1x4x512xf32, #tpu.memory_space<vmem>>, vector<1x4x512xf32>
    %432 = vector.shape_cast %431 : vector<1x4x512xf32> to vector<4x512xf32>
    %433 = arith.addf %430, %432 : vector<4x512xf32>
    %c0_375 = arith.constant 0 : index
    %c0_376 = arith.constant 0 : index
    %c0_377 = arith.constant 0 : index
    %434 = vector.load %arg6[%c0_375, %c0_376, %c0_377] : memref<1x4x512xf32, #tpu.memory_space<vmem>>, vector<1x4x512xf32>
    %435 = vector.shape_cast %434 : vector<1x4x512xf32> to vector<4x512xf32>
    %436 = vector.shape_cast %433 : vector<4x512xf32> to vector<1x4x512xf32>
    tpu.vector_store %arg6[%c0_375, %c0_376, %c0_377], %436 {strides = array<i32>} : memref<1x4x512xf32, #tpu.memory_space<vmem>>, vector<1x4x512xf32>,
    return
  }
  func.func @transform_0(%arg0: i32) -> (i32, i32, i32) {
    %c0_i32 = arith.constant 0 : i32
    %c0_i32_0 = arith.constant 0 : i32
    %c0_i32_1 = arith.constant 0 : i32
    return %arg0, %c0_i32, %c0_i32_0 : i32, i32, i32
  }
  func.func @transform_1(%arg0: i32) -> (i32, i32, i32) {
    %c0_i32 = arith.constant 0 : i32
    %c0_i32_0 = arith.constant 0 : i32
    %c0_i32_1 = arith.constant 0 : i32
    return %arg0, %c0_i32, %c0_i32_0 : i32, i32, i32
  }
  func.func @transform_2(%arg0: i32) -> (i32, i32) {
    %c0_i32 = arith.constant 0 : i32
    %c0_i32_0 = arith.constant 0 : i32
    %c0_i32_1 = arith.constant 0 : i32
    return %c0_i32, %c0_i32_0 : i32, i32
  }
  func.func @transform_3(%arg0: i32) -> (i32, i32) {
    %c0_i32 = arith.constant 0 : i32
    %c0_i32_0 = arith.constant 0 : i32
    %c0_i32_1 = arith.constant 0 : i32
    return %c0_i32, %c0_i32_0 : i32, i32
  }
  func.func @transform_4(%arg0: i32) -> (i32, i32) {
    %c0_i32 = arith.constant 0 : i32
    %c0_i32_0 = arith.constant 0 : i32
    %c0_i32_1 = arith.constant 0 : i32
    return %c0_i32, %c0_i32_0 : i32, i32
  }
  func.func @transform_5(%arg0: i32) -> (i32, i32, i32) {
    %c0_i32 = arith.constant 0 : i32
    %c0_i32_0 = arith.constant 0 : i32
    %c0_i32_1 = arith.constant 0 : i32
    return %arg0, %c0_i32, %c0_i32_0 : i32, i32, i32
  }
}

</mosaic_0001>

<bundles_post_ra>
// kernel: neg.14
= control target key start
LH: loop header
LB: loop body
LE: loop exit
PB: predicated region body
PF: predicated region fallthrough
CT: control target
= control target key end

     0   :  { %s24_s0 = inlined_call_operand.vmem [shape: f32[4,72], index: 0, kind: input, shape index: {}]   ;;  %s25_s1 = inlined_call_operand.vmem [shape: f32[4,72], index: 1, kind: output, shape index: {}]  }
   0x1   :  { %v2_v0 = vld [vmem:[%s24_s0] sm:$0xf] }
   0x2   :  { %v5_v1 = vxor.u32 2147483648, %v2_v0 }
   0x4   :  { %7 = vst [vmem:[%s25_s1] sm:$0xf] %v5_v1 }

// kernel: cnn_forward.1
= control target key start
LH: loop header
LB: loop body
LE: loop exit
PB: predicated region body
PF: predicated region fallthrough
CT: control target
= control target key end

     0   :  { %s4441_s18 = smov 0   ;;  %s7282_s0 = inlined_call_operand.vmem [shape: f32[2,1,512], index: 0, kind: input, shape index: {}]   ;;  %s7283_s1 = inlined_call_operand.vmem [shape: f32[2,4,512], index: 1, kind: input, shape index: {}]   ;;  %s7284_s2 = inlined_call_operand.vmem [shape: f32[72,512], index: 2, kind: input, shape index: {}]   ;;  %s7285_s3 = inlined_call_operand.vmem [shape: f32[72,1], index: 3, kind: input, shape index: {}]   ;;  %s7286_s4 = inlined_call_operand.vmem [shape: f32[9,512], index: 4, kind: input, shape index: {}]   ;;  %s7287_s5 = inlined_call_operand.vmem [shape: f32[2,4,512], index: 5, kind: output, shape index: {}]  }
   0x1 LB: > { %s4256_s19 = sadd.s32 4294967295, %s4400_s18   ;;  %p4260_p0 = scmp.ge.s32.totalorder %s4400_s18, 1  ;;  %s4400_s18 = sphi %s4441_s18, %s15_s18  }
   0x2   : > { %p196_p1 = scmp.lt.s32.totalorder %s4400_s18, 3 }
   0x4   : > { %p197_p2 = pnand %p4260_p0, %p196_p1 }
   0x6   : > { %200 = sbr.rel (%p197_p2) target bundleno = 3096 (0xc18), region = 40 }
   0xb   : > { %p228_p3 = scmp.lt.s32.totalorder %s4256_s19, 1  ;;  %s4402_s24 = smov 111   ;;  %v260_v6 = vlaneseq  ;;  %v4272_v13 = vld [vmem:[%s7286_s4 + $0x20] ss:$8 sm:$0xf]  ;;  %vm290_vm3 = vcmask 1042434  }
   0xc   : > { %s4403_s25 = smov 17   ;;  %s4404_s26 = smov 16   ;;  %v574_v14 = vperm.slane %v4272_v13, 2  ;;  %v575_v15 = vperm.slane %v4272_v13, 3  ;;  %v573_v16 = vperm.slane %v4272_v13, 1  ;;  %v572_v20 = vperm.slane %v4272_v13, 0 }
   0xd   : > { %s7798_s19 = smov (!%p228_p3, %s4256_s19), 1  ;;  %s4405_s27 = smov 15   ;;  %vm4487_vm0 = vcmp.lt.s32.totalorder %v260_v6, 512  ;;  %v4495_v12 = vand.u32 127, %v260_v6  ;;  %vm288_vm4 = vcmask 1040384   ;;  %vm292_vm5 = vcmask 1041408  }
   0xe   : > { %s4261_s20 = sshll.u32 %s7798_s19, 2  ;;  %s4406_s28 = smov 1   ;;  %v267_v19 = vld [vmem:[%s7286_s4] ss:$8 sm:$0xf]  ;;  %vm613_vm12 = vcmask 72704  }
   0xf   : > { %s231_s23 = scalar_lea.vmem %s7282_s0, %s4261_s20  ;;  %s4407_s29 = smov 127   ;;  %vm564_vm1 = vcmp.lt.s32.totalorder %v4495_v12, 111  ;;  %vm262_vm2 = vcmp.lt.s32.totalorder %v4495_v12, 17  ;;  %v270_v29 = vperm.slane %v267_v19, 1  ;;  %v269_v35 = vperm.slane %v267_v19, 0 }
  0x10   : > { %v242_v0 = vld [vmem:[%s231_s23] sm:$0xf]  ;;  %s4408_s30 = smov 113   ;;  %s4409_s6 = smov 112   ;;  %v271_v38 = vperm.slane %v267_v19, 2  ;;  %v272_v39 = vperm.slane %v267_v19, 3 }
  0x11   : > { %v246_v1 = vperm.slane %v242_v0, 2  ;;  %v244_v2 = vperm.slane %v242_v0, 0  ;;  %v247_v3 = vperm.slane %v242_v0, 3  ;;  %v245_v4 = vperm.slane %v242_v0, 1 }
  0x12   : > { %428 = vst.msk [vmem:[#allocation2 + $0x4] ss:$8 sm:$0xf] %vm4487_vm0, %v242_v0  ;;  %v4266_v51 = vld [vmem:[%s7286_s4 + $0x1] ss:$8 sm:$0xf] }
  0x13   : > { %560 = vrot.lane.b32.xlu1 %v246_v1, %s4402_s24  ;;  %556 = vrot.lane.b32.xlu0 %v244_v2, %s4402_s24  ;;  %vm309_vm6 = vcmp.lt.s32.totalorder %v4495_v12, 16  ;;  %v320_v55 = vperm.slane %v4266_v51, 3  ;;  %v318_v58 = vperm.slane %v4266_v51, 1  ;;  %v319_v59 = vperm.slane %v4266_v51, 2 }
  0x14   : > { %252 = vrot.lane.b32.xlu2 %v244_v2, %s4403_s25  ;;  %vm351_vm7 = vcmp.lt.s32.totalorder %v4495_v12, 15  ;;  %vm393_vm8 = vcmp.lt.s32.totalorder %v4495_v12, 1  ;;  %vm438_vm9 = vcmp.lt.s32.totalorder %v4495_v12, 127  ;;  %vm480_vm10 = vcmp.lt.s32.totalorder %v4495_v12, 113 }
  0x15   : > { %vm522_vm11 = vcmp.lt.s32.totalorder %v4495_v12, 112  ;;  %vm996_vm13 = vcmask 588800   ;;  %vm3833_vm14 = vcmask 982016   ;;  %vm4182_vm15 = vcmask 1043456  }
  0x1b   : > { %562 = vrot.lane.b32.xlu1 %v247_v3, %s4402_s24  ;;  %558 = vrot.lane.b32.xlu0 %v245_v4, %s4402_s24 }
  0x1c   : > { %254 = vrot.lane.b32.xlu2 %v245_v4, %s4403_s25 }
  0x23   : > { %258 = vrot.lane.b32.xlu1 %v247_v3, %s4403_s25  ;;  %256 = vrot.lane.b32.xlu0 %v246_v1, %s4403_s25 }
  0x24   : > { %301 = vrot.lane.b32.xlu2 %v244_v2, %s4404_s26 }
  0x2b   : > { %305 = vrot.lane.b32.xlu1 %v246_v1, %s4404_s26  ;;  %303 = vrot.lane.b32.xlu0 %v245_v4, %s4404_s26 }
  0x2c   : > { %307 = vrot.lane.b32.xlu2 %v247_v3, %s4404_s26 }
  0x33   : > { %345 = vrot.lane.b32.xlu1 %v245_v4, %s4405_s27  ;;  %343 = vrot.lane.b32.xlu0 %v244_v2, %s4405_s27 }
  0x34   : > { %347 = vrot.lane.b32.xlu2 %v246_v1, %s4405_s27 }
  0x3b   : > { %385 = vrot.lane.b32.xlu1 %v244_v2, %s4406_s28  ;;  %349 = vrot.lane.b32.xlu0 %v247_v3, %s4405_s27 }
  0x3c   : > { %387 = vrot.lane.b32.xlu2 %v245_v4, %s4406_s28 }
  0x43   : > { %391 = vrot.lane.b32.xlu1 %v247_v3, %s4406_s28  ;;  %389 = vrot.lane.b32.xlu0 %v246_v1, %s4406_s28 }
  0x44   : > { %430 = vrot.lane.b32.xlu2 %v244_v2, %s4407_s29 }
  0x4b   : > { %434 = vrot.lane.b32.xlu1 %v246_v1, %s4407_s29  ;;  %432 = vrot.lane.b32.xlu0 %v245_v4, %s4407_s29 }
  0x4c   : > { %436 = vrot.lane.b32.xlu2 %v247_v3, %s4407_s29 }
  0x53   : > { %474 = vrot.lane.b32.xlu1 %v245_v4, %s4408_s30  ;;  %472 = vrot.lane.b32.xlu0 %v244_v2, %s4408_s30 }
  0x54   : > { %476 = vrot.lane.b32.xlu2 %v246_v1, %s4408_s30 }
  0x5b   : > { %514 = vrot.lane.b32.xlu1 %v244_v2, %s4409_s6  ;;  %478 = vrot.lane.b32.xlu0 %v247_v3, %s4408_s30 }
  0x5c   : > { %516 = vrot.lane.b32.xlu2 %v245_v4, %s4409_s6 }
  0x63   : > { %520 = vrot.lane.b32.xlu1 %v247_v3, %s4409_s6  ;;  %518 = vrot.lane.b32.xlu0 %v246_v1, %s4409_s6  ;;  %v317_v1 = vperm.slane %v4266_v51, 0  ;;  %v4269_v51 = vld [vmem:[%s7286_s4 + $0x5] ss:$8 sm:$0xf] }
  0x6e   : > { %v253_v5 = vpop.permute.xlu2 %252 }
  0x76   : > { %v255_v8 = vpop.permute.xlu2 %254 }
  0x77   : > { %v265_v34 = vsel %vm262_vm2, %v253_v5, %v255_v8 }
  0x78   : > { %v278_v41 = vmul.f32 %v270_v29, %v265_v34 }
  0x7a   : > { %v285_v52 = vrot.slane %v278_v41, 7 }
  0x7e   : > { %v4493_v9 = vpop.permute.xlu2 %301 }
  0x85   : > { %v561_v10 = vpop.permute.xlu1 %560  ;;  %v557_v11 = vpop.permute.xlu0 %556 }
  0x86   : > { %v308_v17 = vpop.permute.xlu2 %307 }
  0x87   : > { %v313_v2 = vsel %vm309_vm6, %v308_v17, %v4493_v9 }
  0x8d   : > { %v563_v18 = vpop.permute.xlu1 %562  ;;  %v559_v21 = vpop.permute.xlu0 %558 }
  0x8e   : > { %v565_v22 = vsel %vm564_vm1, %v561_v10, %v563_v18  ;;  %v568_v23 = vsel %vm564_vm1, %v563_v18, %v557_v11  ;;  %v566_v24 = vsel %vm564_vm1, %v559_v21, %v561_v10  ;;  %v567_v25 = vsel %vm564_vm1, %v557_v11, %v559_v21  ;;  %v348_v47 = vpop.permute.xlu2 %347 }
  0x8f   : > { %v582_v26 = vmul.f32 %v574_v14, %v565_v22  ;;  %v583_v27 = vmul.f32 %v575_v15, %v568_v23  ;;  %v581_v28 = vmul.f32 %v573_v16, %v566_v24  ;;  %v580_v32 = vmul.f32 %v572_v20, %v567_v25 }
  0x90   : > { %v325_v15 = vmul.f32 %v317_v1, %v313_v2 }
  0x91   : > { %v589_v30 = vrot.slane %v582_v26, 6  ;;  %v590_v31 = vrot.slane %v583_v27, 5  ;;  %v588_v33 = vrot.slane %v581_v28, 7 }
  0x93   : > { %v592_v36 = vsel %vm290_vm3, %v589_v30, %v590_v31  ;;  %v591_v37 = vsel %vm288_vm4, %v580_v32, %v588_v33 }
  0x94   : > { %v593_v40 = vsel %vm292_vm5, %v591_v37, %v592_v36 }
  0x95   : > { %596 = vst.msk [vmem:[#allocation2 + $0x20] ss:$8 sm:$0xf] %vm4487_vm0, %v593_v40  ;;  %v259_v42 = vpop.permute.xlu1 %258  ;;  %v257_v43 = vpop.permute.xlu0 %256 }
  0x96   : > { %v266_v44 = vsel %vm262_vm2, %v259_v42, %v253_v5  ;;  %v263_v45 = vsel %vm262_vm2, %v257_v43, %v259_v42  ;;  %v264_v46 = vsel %vm262_vm2, %v255_v8, %v257_v43  ;;  %v388_v14 = vpop.permute.xlu2 %387 }
  0x97   : > { %v277_v48 = vmul.f32 %v269_v35, %v266_v44  ;;  %v279_v49 = vmul.f32 %v271_v38, %v264_v46  ;;  %v280_v50 = vmul.f32 %v272_v39, %v263_v45  ;;  %v4268_v35 = vld [vmem:[%s7286_s4 + $0x3] ss:$8 sm:$0xf] }
  0x98   : > { %v402_v42 = vperm.slane %v4268_v35, 1  ;;  %v401_v45 = vperm.slane %v4268_v35, 0 }
  0x99   : > { %v286_v53 = vrot.slane %v279_v49, 6  ;;  %v287_v54 = vrot.slane %v280_v50, 5  ;;  %v289_v56 = vsel %vm288_vm4, %v277_v48, %v285_v52  ;;  %v404_v49 = vperm.slane %v4268_v35, 3 }
  0x9b   : > { %v291_v57 = vsel %vm290_vm3, %v286_v53, %v287_v54 }
  0x9c   : > { %v293_v60 = vsel %vm292_vm5, %v289_v56, %v291_v57  ;;  %v603_v61 = vld [vmem:[#allocation2 + $0x20] sm:$0x1]  ;;  %v604_v62 = vld [vmem:[#allocation2 + $0x28] sm:$0x1]  ;;  %v605_v63 = vld [vmem:[#allocation2 + $0x30] sm:$0x1] }
  0x9d   : > { %299 = vst.msk [vmem:[#allocation2] ss:$8 sm:$0xf] %vm4487_vm0, %v293_v60  ;;  %v306_v0 = vpop.permute.xlu1 %305  ;;  %4273 = vmatpush.msk.msra.mxu0 %vm288_vm4, %v603_v61  ;;  %4275 = vmatpush.msk.msra.mxu1 %vm288_vm4, %v604_v62  ;;  %v606_v3 = vld [vmem:[#allocation2 + $0x38] sm:$0x1]  ;;  %v304_v4 = vpop.permute.xlu0 %303  ;;  %v449_v62 = vperm.slane %v4269_v51, 3 }
  0x9e   : > { %v310_v5 = vsel %vm309_vm6, %v306_v0, %v308_v17  ;;  %4277 = vmatpush.msk.msra.mxu2 %vm288_vm4, %v605_v63  ;;  %4279 = vmatpush.msk.msra.mxu3 %vm288_vm4, %v606_v3  ;;  %v311_v6 = vsel %vm309_vm6, %v304_v4, %v306_v0  ;;  %v312_v8 = vsel %vm309_vm6, %v4493_v9, %v304_v4  ;;  %v4267_v9 = vld [vmem:[%s7286_s4 + $0x2] ss:$8 sm:$0xf]  ;;  %v431_v28 = vpop.permute.xlu2 %430  ;;  %v448_v3 = vperm.slane %v4269_v51, 2 }
  0x9f   : > { %v328_v10 = vmul.f32 %v320_v55, %v310_v5  ;;  %v326_v11 = vmul.f32 %v318_v58, %v312_v8  ;;  %v327_v13 = vmul.f32 %v319_v59, %v311_v6  ;;  %v361_v24 = vperm.slane %v4267_v9, 2 }
  0xa0   : > { %v360_v25 = vperm.slane %v4267_v9, 1  ;;  %v359_v29 = vperm.slane %v4267_v9, 0  ;;  %v362_v30 = vperm.slane %v4267_v9, 3  ;;  %v447_v8 = vperm.slane %v4269_v51, 1 }
  0xa1   : > { %v335_v16 = vrot.slane %v328_v10, 5  ;;  %v333_v18 = vrot.slane %v326_v11, 7  ;;  %v334_v19 = vrot.slane %v327_v13, 6  ;;  %v446_v13 = vperm.slane %v4269_v51, 0 }
  0xa3   : > { %v336_v17 = vsel %vm288_vm4, %v325_v15, %v333_v18  ;;  %v337_v20 = vsel %vm290_vm3, %v334_v19, %v335_v16 }
  0xa4   : > { %v338_v21 = vsel %vm292_vm5, %v336_v17, %v337_v20 }
  0xa5   : > { %341 = vst.msk [vmem:[#allocation2 + $0x1] ss:$8 sm:$0xf] %vm4487_vm0, %v338_v21  ;;  %v346_v22 = vpop.permute.xlu1 %345  ;;  %v344_v23 = vpop.permute.xlu0 %343 }
  0xa6   : > { %v353_v26 = vsel %vm351_vm7, %v346_v22, %v348_v47  ;;  %v354_v27 = vsel %vm351_vm7, %v344_v23, %v346_v22  ;;  %v437_v52 = vpop.permute.xlu2 %436 }
  0xa7   : > { %v369_v31 = vmul.f32 %v361_v24, %v353_v26  ;;  %v368_v32 = vmul.f32 %v360_v25, %v354_v27  ;;  %v442_v63 = vsel %vm438_vm9, %v437_v52, %v431_v28  ;;  %v4270_v26 = vld [vmem:[%s7286_s4 + $0x6] ss:$8 sm:$0xf] }
  0xa8   : > { %v457_v6 = vmul.f32 %v449_v62, %v442_v63 }
  0xa9   : > { %v376_v40 = vrot.slane %v369_v31, 6  ;;  %v375_v41 = vrot.slane %v368_v32, 7  ;;  %v607_v32 = vld [vmem:[%s7285_s3] sm:$0xff] }
  0xaa   : > { %v464_v17 = vrot.slane %v457_v6, 5 }
  0xad   : > { %v386_v33 = vpop.permute.xlu1 %385  ;;  %v350_v34 = vpop.permute.xlu0 %349 }
  0xae   : > { %v352_v36 = vsel %vm351_vm7, %v348_v47, %v350_v34  ;;  %v355_v37 = vsel %vm351_vm7, %v350_v34, %v344_v23  ;;  %v396_v44 = vsel %vm393_vm8, %v386_v33, %v388_v14  ;;  %v403_v47 = vperm.slane %v4268_v35, 2  ;;  %v477_v27 = vpop.permute.xlu2 %476 }
  0xaf   : > { %v367_v38 = vmul.f32 %v359_v29, %v355_v37  ;;  %v370_v39 = vmul.f32 %v362_v30, %v352_v36  ;;  %v410_v53 = vmul.f32 %v402_v42, %v396_v44  ;;  %v489_v30 = vperm.slane %v4270_v26, 1 }
  0xb0   : > { %v490_v35 = vperm.slane %v4270_v26, 2  ;;  %v491_v36 = vperm.slane %v4270_v26, 3  ;;  %v488_v37 = vperm.slane %v4270_v26, 0 }
  0xb1   : > { %v377_v43 = vrot.slane %v370_v39, 5  ;;  %v378_v46 = vsel %vm288_vm4, %v367_v38, %v375_v41  ;;  %v417_v0 = vrot.slane %v410_v53, 7 }
  0xb3   : > { %v379_v48 = vsel %vm290_vm3, %v376_v40, %v377_v43 }
  0xb4   : > { %v380_v50 = vsel %vm292_vm5, %v378_v46, %v379_v48  ;;  %v4271_v48 = vld [vmem:[%s7286_s4 + $0x7] ss:$8 sm:$0xf] }
  0xb5   : > { %383 = vst.msk [vmem:[#allocation2 + $0x2] ss:$8 sm:$0xf] %vm4487_vm0, %v380_v50  ;;  %v392_v54 = vpop.permute.xlu1 %391  ;;  %v390_v55 = vpop.permute.xlu0 %389  ;;  %v533_v50 = vperm.slane %v4271_v48, 3 }
  0xb6   : > { %v397_v56 = vsel %vm393_vm8, %v392_v54, %v386_v33  ;;  %v394_v57 = vsel %vm393_vm8, %v390_v55, %v392_v54  ;;  %v395_v58 = vsel %vm393_vm8, %v388_v14, %v390_v55  ;;  %v4410_v33 = vmov 0  }
  0xb7   : > { %v409_v59 = vmul.f32 %v401_v45, %v397_v56  ;;  %v411_v60 = vmul.f32 %v403_v47, %v395_v58  ;;  %v412_v61 = vmul.f32 %v404_v49, %v394_v57  ;;  %4392 = vset.pattern.permute.xlu2 %v4410_v33  ;;  %4393 = vset.pattern.permute.xlu0 %v4410_v33  ;;  %v531_v54 = vperm.slane %v4271_v48, 1 }
  0xb8   : > { %610 = vperm.xlu2 %4392, %v607_v32   ;;  %v532_v55 = vperm.slane %v4271_v48, 2  ;;  %v530_v57 = vperm.slane %v4271_v48, 0 }
  0xb9   : > { %v418_v1 = vrot.slane %v411_v60, 6  ;;  %v419_v2 = vrot.slane %v412_v61, 5  ;;  %v420_v4 = vsel %vm288_vm4, %v409_v59, %v417_v0 }
  0xbb   : > { %v421_v5 = vsel %vm290_vm3, %v418_v1, %v419_v2 }
  0xbc   : > { %v422_v10 = vsel %vm292_vm5, %v420_v4, %v421_v5 }
  0xbd   : > { %425 = vst.msk [vmem:[#allocation2 + $0x3] ss:$8 sm:$0xf] %vm4487_vm0, %v422_v10  ;;  %v435_v11 = vpop.permute.xlu1 %434  ;;  %v433_v14 = vpop.permute.xlu0 %432 }
  0xbe   : > { %v439_v15 = vsel %vm438_vm9, %v435_v11, %v437_v52  ;;  %v440_v16 = vsel %vm438_vm9, %v433_v14, %v435_v11  ;;  %v441_v18 = vsel %vm438_vm9, %v431_v28, %v433_v14  ;;  %v517_v52 = vpop.permute.xlu2 %516 }
  0xbf   : > { %v456_v19 = vmul.f32 %v448_v3, %v439_v15  ;;  %v455_v20 = vmul.f32 %v447_v8, %v440_v16  ;;  %v454_v22 = vmul.f32 %v446_v13, %v441_v18  ;;  %v598_v13 = vld [vmem:[%s7284_s2] sm:$0xff] }
  0xc1   : > { %v463_v21 = vrot.slane %v456_v19, 6  ;;  %v462_v23 = vrot.slane %v455_v20, 7 }
  0xc3   : > { %v466_v9 = vsel %vm290_vm3, %v463_v21, %v464_v17  ;;  %v465_v24 = vsel %vm288_vm4, %v454_v22, %v462_v23 }
  0xc4   : > { %v467_v25 = vsel %vm292_vm5, %v465_v24, %v466_v9 }
  0xc5   : > { %470 = vst.msk [vmem:[#allocation2 + $0x5] ss:$8 sm:$0xf] %vm4487_vm0, %v467_v25  ;;  %v475_v28 = vpop.permute.xlu1 %474  ;;  %v473_v29 = vpop.permute.xlu0 %472  ;;  %v990_v25 = vld [vmem:[%s7285_s3 + $0x8] sm:$0xff] }
  0xc6   : > { %v482_v31 = vsel %vm480_vm10, %v475_v28, %v477_v27  ;;  %v483_v40 = vsel %vm480_vm10, %v473_v29, %v475_v28 }
  0xc7   : > { %v497_v34 = vmul.f32 %v489_v30, %v482_v31  ;;  %v496_v46 = vmul.f32 %v488_v37, %v483_v40 }
  0xc9   : > { %v504_v43 = vrot.slane %v497_v34, 7 }
  0xcb   : > { %v507_v51 = vsel %vm288_vm4, %v496_v46, %v504_v43 }
  0xcd   : > { %v515_v38 = vpop.permute.xlu1 %514  ;;  %v479_v39 = vpop.permute.xlu0 %478 }
  0xce   : > { %v481_v41 = vsel %vm480_vm10, %v477_v27, %v479_v39  ;;  %v484_v42 = vsel %vm480_vm10, %v479_v39, %v473_v29  ;;  %v525_v60 = vsel %vm522_vm11, %v515_v38, %v517_v52  ;;  %v4287_v29 = vld [vmem:[%s7286_s4 + $0x20] ss:$8 sm:$0xf] }
  0xcf   : > { %v498_v44 = vmul.f32 %v490_v35, %v481_v41  ;;  %v499_v45 = vmul.f32 %v491_v36, %v484_v42  ;;  %v538_v3 = vmul.f32 %v530_v57, %v525_v60  ;;  %v940_v30 = vperm.slane %v4287_v29, 3  ;;  %v4286_v35 = vld [vmem:[%s7286_s4 + $0x7] ss:$8 sm:$0xf] }
  0xd0   : > { %v910_v37 = vperm.slane %v4286_v35, 3  ;;  %v4285_v42 = vld [vmem:[%s7286_s4 + $0x6] ss:$8 sm:$0xf]  ;;  %v937_v60 = vperm.slane %v4287_v29, 0 }
  0xd1   : > { %v505_v47 = vrot.slane %v498_v44, 6  ;;  %v506_v49 = vrot.slane %v499_v45, 5  ;;  %v880_v44 = vperm.slane %v4285_v42, 3 }
  0xd3   : > { %v508_v53 = vsel %vm290_vm3, %v505_v47, %v506_v49  ;;  %v4746_v49 = vld [vmem:[%s7286_s4 + $0x5] ss:$8 sm:$0xf] }
  0xd4   : > { %v509_v56 = vsel %vm292_vm5, %v507_v51, %v508_v53  ;;  %v850_v51 = vperm.slane %v4746_v49, 3 }
  0xd5   : > { %512 = vst.msk [vmem:[#allocation2 + $0x6] ss:$8 sm:$0xf] %vm4487_vm0, %v509_v56  ;;  %v521_v58 = vpop.permute.xlu1 %520  ;;  %v519_v59 = vpop.permute.xlu0 %518 }
  0xd6   : > { %v526_v61 = vsel %vm522_vm11, %v521_v58, %v515_v38  ;;  %v523_v62 = vsel %vm522_vm11, %v519_v59, %v521_v58  ;;  %v524_v63 = vsel %vm522_vm11, %v517_v52, %v519_v59  ;;  %v909_v59 = vperm.slane %v4286_v35, 2 }
  0xd7   : > { %v541_v0 = vmul.f32 %v533_v50, %v526_v61  ;;  %v539_v1 = vmul.f32 %v531_v54, %v524_v63  ;;  %v540_v2 = vmul.f32 %v532_v55, %v523_v62  ;;  %v939_v50 = vperm.slane %v4287_v29, 2 }
  0xd8   : > { %v938_v61 = vperm.slane %v4287_v29, 1 }
  0xd9   : > { %v548_v4 = vrot.slane %v541_v0, 5  ;;  %v546_v5 = vrot.slane %v539_v1, 7  ;;  %v547_v6 = vrot.slane %v540_v2, 6  ;;  %v907_v2 = vperm.slane %v4286_v35, 0 }
  0xdb   : > { %v549_v8 = vsel %vm288_vm4, %v538_v3, %v546_v5  ;;  %v550_v10 = vsel %vm290_vm3, %v547_v6, %v548_v4  ;;  %v908_v3 = vperm.slane %v4286_v35, 1 }
  0xdc   : > { %v551_v11 = vsel %vm292_vm5, %v549_v8, %v550_v10 }
  0xdd   : > { %554 = vst.msk [vmem:[#allocation2 + $0x7] ss:$8 sm:$0xf] %vm4487_vm0, %v551_v11 }
  0xe4   : > { %v599_v14 = vld [vmem:[#allocation2] sm:$0xff]  ;;  %v600_v15 = vld [vmem:[#allocation2 + $0x8] sm:$0xff]  ;;  %v601_v16 = vld [vmem:[#allocation2 + $0x10] sm:$0xff] }
  0xe5   : > { %644 = vmatpush.msra.mxu0 %v599_v14  ;;  %664 = vmatpush.msra.mxu1 %v600_v15  ;;  %v602_v18 = vld [vmem:[#allocation2 + $0x18] sm:$0xff] }
  0xe6   : > { %684 = vmatpush.msra.mxu2 %v601_v16  ;;  %704 = vmatpush.msra.mxu3 %v602_v18  ;;  %v878_v18 = vperm.slane %v4285_v42, 1 }
  0xe7   : > { %4274 = vmatmul.msk.f32.vlgmr.msra.gmra.mxu0 %vm613_vm12, %v598_v13  ;;  %4276 = vmatmul.msk.f32.vlgmr.msra.gmra.mxu1 %vm613_vm12, %v598_v13 }
  0xe8   : > { %4278 = vmatmul.msk.f32.vlgmr.msra.gmra.mxu2 %vm613_vm12, %v598_v13  ;;  %4280 = vmatmul.msk.f32.vlgmr.msra.gmra.mxu3 %vm613_vm12, %v598_v13  ;;  %v877_v13 = vperm.slane %v4285_v42, 0 }
 0x112   : > { %v611_v19 = vpop.permute.xlu2 %610 }
 0x164   : > { %v646_v7 = vpop.f32.mrf.mxu0  ;;  %v666_v17 = vpop.f32.mrf.mxu1 }
 0x165   : > { %v4645_v20 = vadd.f32 %v646_v7, %v611_v19  ;;  %v4647_v21 = vadd.f32 %v666_v17, %v611_v19 }
 0x167   : > { %801 = vrot.lane.b32.xlu2 %v4647_v21, %s4406_s28  ;;  %895 = vrot.lane.b32.xlu1 %v4647_v21, %s4409_s6 }
 0x168   : > { %923 = vrot.lane.b32.xlu0 %v4645_v20, %s4402_s24 }
 0x16b   : > { %v706_v22 = vpop.f32.mrf.mxu3  ;;  %v686_v9 = vpop.f32.mrf.mxu2 }
 0x16c   : > { %v4661_v23 = vadd.f32 %v706_v22, %v611_v19  ;;  %v4669_v24 = vadd.f32 %v686_v9, %v611_v19  ;;  %v879_v19 = vperm.slane %v4285_v42, 2  ;;  %v4283_v42 = vld [vmem:[%s7286_s4 + $0x3] ss:$8 sm:$0xf] }
 0x16f   : > { %865 = vrot.lane.b32.xlu2 %v4647_v21, %s4408_s30  ;;  %741 = vrot.lane.b32.xlu1 %v4647_v21, %s4404_s26 }
 0x170   : > { %893 = vrot.lane.b32.xlu0 %v4645_v20, %s4409_s6 }
 0x177   : > { %929 = vrot.lane.b32.xlu2 %v4661_v23, %s4402_s24  ;;  %711 = vrot.lane.b32.xlu1 %v4647_v21, %s4403_s25 }
 0x178   : > { %863 = vrot.lane.b32.xlu0 %v4645_v20, %s4408_s30 }
 0x17f   : > { %899 = vrot.lane.b32.xlu2 %v4661_v23, %s4409_s6  ;;  %927 = vrot.lane.b32.xlu1 %v4669_v24, %s4402_s24 }
 0x180   : > { %833 = vrot.lane.b32.xlu0 %v4645_v20, %s4407_s29 }
 0x187   : > { %869 = vrot.lane.b32.xlu2 %v4661_v23, %s4408_s30  ;;  %897 = vrot.lane.b32.xlu1 %v4669_v24, %s4409_s6 }
 0x188   : > { %925 = vrot.lane.b32.xlu0 %v4647_v21, %s4402_s24 }
 0x18f   : > { %839 = vrot.lane.b32.xlu2 %v4661_v23, %s4407_s29  ;;  %867 = vrot.lane.b32.xlu1 %v4669_v24, %s4408_s30 }
 0x190   : > { %771 = vrot.lane.b32.xlu0 %v4647_v21, %s4405_s27 }
 0x197   : > { %775 = vrot.lane.b32.xlu2 %v4661_v23, %s4405_s27  ;;  %837 = vrot.lane.b32.xlu1 %v4669_v24, %s4407_s29 }
 0x198   : > { %835 = vrot.lane.b32.xlu0 %v4647_v21, %s4407_s29 }
 0x19f   : > { %743 = vrot.lane.b32.xlu2 %v4669_v24, %s4404_s26  ;;  %805 = vrot.lane.b32.xlu1 %v4661_v23, %s4406_s28 }
 0x1a0   : > { %803 = vrot.lane.b32.xlu0 %v4669_v24, %s4406_s28 }
 0x1a7   : > { %713 = vrot.lane.b32.xlu2 %v4669_v24, %s4403_s25  ;;  %773 = vrot.lane.b32.xlu1 %v4669_v24, %s4405_s27 }
 0x1a8   : > { %745 = vrot.lane.b32.xlu0 %v4661_v23, %s4404_s26 }
 0x1af   : > { %769 = vrot.lane.b32.xlu2 %v4645_v20, %s4405_s27  ;;  %799 = vrot.lane.b32.xlu1 %v4645_v20, %s4406_s28 }
 0x1b0   : > { %715 = vrot.lane.b32.xlu0 %v4661_v23, %s4403_s25 }
 0x1b7   : > { %993 = vperm.xlu2 %4392, %v990_v25   ;;  %709 = vrot.lane.b32.xlu1 %v4645_v20, %s4403_s25 }
 0x1b8   : > { %739 = vrot.lane.b32.xlu0 %v4645_v20, %s4404_s26 }
 0x1c1   : > { %v4720_v26 = vpop.permute.xlu2 %801 }
 0x1c9   : > { %v4722_v27 = vpop.permute.xlu2 %865 }
 0x1d1   : > { %v930_v28 = vpop.permute.xlu2 %929 }
 0x1d9   : > { %v896_v31 = vpop.permute.xlu1 %895  ;;  %v900_v36 = vpop.permute.xlu2 %899 }
 0x1da   : > { %v924_v32 = vpop.permute.xlu0 %923 }
 0x1db   : > { %v934_v33 = vsel %vm564_vm1, %v930_v28, %v924_v32 }
 0x1dc   : > { %v948_v34 = vmul.f32 %v940_v30, %v934_v33  ;;  %v849_v30 = vperm.slane %v4746_v49, 2 }
 0x1de   : > { %1067 = vmatpush.msrb.mxu3 %v948_v34 }
 0x1e1   : > { %v4732_v38 = vpop.permute.xlu1 %741  ;;  %v870_v43 = vpop.permute.xlu2 %869 }
 0x1e2   : > { %v894_v39 = vpop.permute.xlu0 %893 }
 0x1e3   : > { %v904_v40 = vsel %vm522_vm11, %v900_v36, %v894_v39  ;;  %v903_v1 = vsel %vm522_vm11, %v894_v39, %v896_v31 }
 0x1e4   : > { %v918_v41 = vmul.f32 %v910_v37, %v904_v40  ;;  %v915_v15 = vmul.f32 %v907_v2, %v903_v1 }
 0x1e6   : > { %1068 = vmatpush.msrb.mxu3 %v918_v41 }
 0x1e9   : > { %v4739_v45 = vpop.permute.xlu1 %711  ;;  %v840_v53 = vpop.permute.xlu2 %839 }
 0x1ea   : > { %v864_v46 = vpop.permute.xlu0 %863 }
 0x1eb   : > { %v874_v48 = vsel %vm480_vm10, %v870_v43, %v864_v46  ;;  %v873_v14 = vsel %vm480_vm10, %v864_v46, %v4722_v27 }
 0x1ec   : > { %v888_v47 = vmul.f32 %v880_v44, %v874_v48  ;;  %v885_v7 = vmul.f32 %v877_v13, %v873_v14  ;;  %v816_v44 = vperm.slane %v4283_v42, 3 }
 0x1ee   : > { %1069 = vmatpush.msrb.mxu3 %v888_v47 }
 0x1f1   : > { %v928_v52 = vpop.permute.xlu1 %927  ;;  %v4767_v17 = vpop.permute.xlu2 %775 }
 0x1f2   : > { %v834_v54 = vpop.permute.xlu0 %833  ;;  %v931_v55 = vsel %vm564_vm1, %v928_v52, %v930_v28 }
 0x1f3   : > { %v947_v56 = vmul.f32 %v939_v50, %v931_v55  ;;  %v844_v57 = vsel %vm438_vm9, %v840_v53, %v834_v54 }
 0x1f4   : > { %v858_v58 = vmul.f32 %v850_v51, %v844_v57 }
 0x1f5   : > { %1047 = vmatpush.msrb.mxu2 %v947_v56 }
 0x1f6   : > { %1070 = vmatpush.msrb.mxu3 %v858_v58 }
 0x1f8   : > { %1071 = vmatpush.msrb.mxu3 %v4661_v23 }
 0x1f9   : > { %v898_v62 = vpop.permute.xlu1 %897 }
 0x1fa   : > { %v926_v63 = vpop.permute.xlu0 %925  ;;  %v901_v0 = vsel %vm522_vm11, %v898_v62, %v900_v36  ;;  %v902_v8 = vsel %vm522_vm11, %v896_v31, %v898_v62  ;;  %v847_v31 = vperm.slane %v4746_v49, 0  ;;  %v744_v36 = vpop.permute.xlu2 %743 }
 0x1fb   : > { %v933_v4 = vsel %vm564_vm1, %v924_v32, %v926_v63  ;;  %v932_v5 = vsel %vm564_vm1, %v926_v63, %v928_v52  ;;  %v917_v6 = vmul.f32 %v909_v59, %v901_v0  ;;  %v916_v16 = vmul.f32 %v908_v3, %v902_v8  ;;  %v989_v8 = vld [vmem:[%s7284_s2 + $0x20] sm:$0xff] }
 0x1fc   : > { %v945_v10 = vmul.f32 %v937_v60, %v933_v4  ;;  %v946_v11 = vmul.f32 %v938_v61, %v932_v5  ;;  %v848_v32 = vperm.slane %v4746_v49, 1  ;;  %v748_v61 = vsel %vm309_vm6, %v4732_v38, %v744_v36 }
 0x1fd   : > { %1048 = vmatpush.msrb.mxu2 %v917_v6 }
 0x1fe   : > { %1007 = vmatpush.msrb.mxu0 %v945_v10  ;;  %1027 = vmatpush.msrb.mxu1 %v946_v11  ;;  %v813_v10 = vperm.slane %v4283_v42, 0  ;;  %v814_v11 = vperm.slane %v4283_v42, 1 }
 0x200   : > { %1008 = vmatpush.msrb.mxu0 %v915_v15  ;;  %1028 = vmatpush.msrb.mxu1 %v916_v16 }
 0x201   : > { %v868_v22 = vpop.permute.xlu1 %867 }
 0x202   : > { %1009 = vmatpush.msrb.mxu0 %v885_v7  ;;  %v4769_v23 = vpop.permute.xlu0 %771  ;;  %v872_v9 = vsel %vm480_vm10, %v4722_v27, %v868_v22  ;;  %v871_v25 = vsel %vm480_vm10, %v868_v22, %v870_v43  ;;  %v815_v43 = vperm.slane %v4283_v42, 2  ;;  %v714_v52 = vpop.permute.xlu2 %713 }
 0x203   : > { %v886_v28 = vmul.f32 %v878_v18, %v872_v9  ;;  %v887_v29 = vmul.f32 %v879_v19, %v871_v25  ;;  %v718_v2 = vsel %vm262_vm2, %v4739_v45, %v714_v52 }
 0x205   : > { %1029 = vmatpush.msrb.mxu1 %v886_v28  ;;  %1049 = vmatpush.msrb.mxu2 %v887_v29 }
 0x209   : > { %v838_v33 = vpop.permute.xlu1 %837 }
 0x20a   : > { %v836_v34 = vpop.permute.xlu0 %835  ;;  %v841_v35 = vsel %vm438_vm9, %v838_v33, %v840_v53  ;;  %v770_v5 = vpop.permute.xlu2 %769 }
 0x20b   : > { %v843_v27 = vsel %vm438_vm9, %v834_v54, %v836_v34  ;;  %v842_v37 = vsel %vm438_vm9, %v836_v34, %v838_v33  ;;  %v857_v39 = vmul.f32 %v849_v30, %v841_v35  ;;  %v4807_v54 = vld [vmem:[%s7286_s4] ss:$8 sm:$0xf]  ;;  %v780_v7 = vsel %vm351_vm7, %v4767_v17, %v770_v5 }
 0x20c   : > { %v855_v40 = vmul.f32 %v847_v31, %v843_v27  ;;  %v856_v41 = vmul.f32 %v848_v32, %v842_v37  ;;  %v725_v1 = vperm.slane %v4807_v54, 2  ;;  %v726_v13 = vperm.slane %v4807_v54, 3 }
 0x20d   : > { %1050 = vmatpush.msrb.mxu2 %v857_v39  ;;  %v779_v29 = vsel %vm351_vm7, %v770_v5, %v4769_v23  ;;  %v723_v35 = vperm.slane %v4807_v54, 0 }
 0x20e   : > { %1010 = vmatpush.msrb.mxu0 %v855_v40  ;;  %1030 = vmatpush.msrb.mxu1 %v856_v41  ;;  %v733_v6 = vmul.f32 %v725_v1, %v718_v2 }
 0x20f   : > { %1051 = vmatpush.msrb.mxu2 %v4669_v24 }
 0x210   : > { %1011 = vmatpush.msrb.mxu0 %v4645_v20  ;;  %1031 = vmatpush.msrb.mxu1 %v4647_v21  ;;  %v4282_v20 = vld [vmem:[%s7286_s4 + $0x2] ss:$8 sm:$0xf]  ;;  %v4802_v21 = vld [vmem:[%s7286_s4 + $0x1] ss:$8 sm:$0xf] }
 0x211   : > { %v806_v46 = vpop.permute.xlu1 %805  ;;  %v785_v24 = vperm.slane %v4282_v20, 2  ;;  %v786_v53 = vperm.slane %v4282_v20, 3  ;;  %v755_v56 = vperm.slane %v4802_v21, 2  ;;  %v756_v57 = vperm.slane %v4802_v21, 3 }
 0x212   : > { %v804_v48 = vpop.permute.xlu0 %803  ;;  %v783_v15 = vperm.slane %v4282_v20, 0  ;;  %v784_v22 = vperm.slane %v4282_v20, 1  ;;  %v754_v32 = vperm.slane %v4802_v21, 1 }
 0x213   : > { %v808_v47 = vsel %vm393_vm8, %v4720_v26, %v804_v48  ;;  %v807_v49 = vsel %vm393_vm8, %v804_v48, %v806_v46  ;;  %v763_v3 = vmul.f32 %v755_v56, %v748_v61 }
 0x214   : > { %v823_v50 = vmul.f32 %v815_v43, %v808_v47  ;;  %v824_v51 = vmul.f32 %v816_v44, %v807_v49  ;;  %v791_v31 = vmul.f32 %v783_v15, %v780_v7 }
 0x216   : > { %1052 = vmatpush.msrb.mxu2 %v823_v50  ;;  %1072 = vmatpush.msrb.mxu3 %v824_v51 }
 0x219   : > { %v774_v55 = vpop.permute.xlu1 %773 }
 0x21a   : > { %v746_v58 = vpop.permute.xlu0 %745  ;;  %v778_v59 = vsel %vm351_vm7, %v4769_v23, %v774_v55  ;;  %v777_v60 = vsel %vm351_vm7, %v774_v55, %v4767_v17  ;;  %v753_v17 = vperm.slane %v4802_v21, 0  ;;  %v724_v23 = vperm.slane %v4807_v54, 1 }
 0x21b   : > { %v793_v62 = vmul.f32 %v785_v24, %v778_v59  ;;  %v794_v63 = vmul.f32 %v786_v53, %v777_v60  ;;  %v747_v0 = vsel %vm309_vm6, %v744_v36, %v746_v58  ;;  %v1365_v53 = vld [vmem:[%s7285_s3 + $0x10] sm:$0xff] }
 0x21c   : > { %v764_v4 = vmul.f32 %v756_v57, %v747_v0  ;;  %v4298_v57 = vld [vmem:[%s7286_s4 + $0x20] ss:$8 sm:$0xf] }
 0x21d   : > { %1053 = vmatpush.msrb.mxu2 %v793_v62  ;;  %1073 = vmatpush.msrb.mxu3 %v794_v63  ;;  %v4297_v63 = vld [vmem:[%s7286_s4 + $0x7] ss:$8 sm:$0xf] }
 0x21e   : > { %v1285_v1 = vperm.slane %v4297_v63, 3 }
 0x21f   : > { %1054 = vmatpush.msrb.mxu2 %v763_v3  ;;  %1074 = vmatpush.msrb.mxu3 %v764_v4 }
 0x221   : > { %v800_v14 = vpop.permute.xlu1 %799  ;;  %1055 = vmatpush.msrb.mxu2 %v733_v6  ;;  %v4296_v6 = vld [vmem:[%s7286_s4 + $0x6] ss:$8 sm:$0xf] }
 0x222   : > { %v716_v16 = vpop.permute.xlu0 %715  ;;  %4290 = vmatmul.msk.f32.vlgmr.msrb.gmra.mxu2 %vm996_vm13, %v989_v8  ;;  %v810_v18 = vsel %vm393_vm8, %v806_v46, %v800_v14  ;;  %v809_v19 = vsel %vm393_vm8, %v800_v14, %v4720_v26  ;;  %v792_v26 = vmul.f32 %v784_v22, %v779_v29 }
 0x223   : > { %v821_v9 = vmul.f32 %v813_v10, %v810_v18  ;;  %v822_v25 = vmul.f32 %v814_v11, %v809_v19  ;;  %v717_v28 = vsel %vm262_vm2, %v714_v52, %v716_v16  ;;  %v1255_v10 = vperm.slane %v4296_v6, 3 }
 0x224   : > { %v734_v30 = vmul.f32 %v726_v13, %v717_v28  ;;  %v1314_v19 = vperm.slane %v4298_v57, 2 }
 0x225   : > { %1012 = vmatpush.msrb.mxu0 %v821_v9  ;;  %1032 = vmatpush.msrb.mxu1 %v822_v25 }
 0x226   : > { %1075 = vmatpush.msrb.mxu3 %v734_v30 }
 0x227   : > { %4291 = vmatmul.msk.f32.vlgmr.msrb.gmra.mxu3 %vm996_vm13, %v989_v8  ;;  %1013 = vmatpush.msrb.mxu0 %v791_v31  ;;  %v1312_v31 = vperm.slane %v4298_v57, 0 }
 0x228   : > { %1033 = vmatpush.msrb.mxu1 %v792_v26  ;;  %v1313_v26 = vperm.slane %v4298_v57, 1 }
 0x229   : > { %v710_v33 = vpop.permute.xlu1 %709 }
 0x22a   : > { %v740_v34 = vpop.permute.xlu0 %739  ;;  %v720_v37 = vsel %vm262_vm2, %v716_v16, %v710_v33  ;;  %v719_v39 = vsel %vm262_vm2, %v710_v33, %v4739_v45  ;;  %v4970_v16 = vld [vmem:[%s7286_s4 + $0x5] ss:$8 sm:$0xf]  ;;  %v1282_v33 = vperm.slane %v4297_v63, 0 }
 0x22b   : > { %v750_v36 = vsel %vm309_vm6, %v746_v58, %v740_v34  ;;  %v749_v27 = vsel %vm309_vm6, %v740_v34, %v4732_v38  ;;  %v731_v42 = vmul.f32 %v723_v35, %v720_v37  ;;  %v732_v43 = vmul.f32 %v724_v23, %v719_v39  ;;  %v994_v38 = vpop.permute.xlu2 %993 }
 0x22c   : > { %v761_v40 = vmul.f32 %v753_v17, %v750_v36  ;;  %v762_v41 = vmul.f32 %v754_v32, %v749_v27  ;;  %v1315_v58 = vperm.slane %v4298_v57, 3  ;;  %v1225_v18 = vperm.slane %v4970_v16, 3 }
 0x22d   : > { %v1284_v17 = vperm.slane %v4297_v63, 2  ;;  %v1283_v34 = vperm.slane %v4297_v63, 1  ;;  %v1252_v37 = vperm.slane %v4296_v6, 0 }
 0x22e   : > { %1014 = vmatpush.msrb.mxu0 %v761_v40  ;;  %1034 = vmatpush.msrb.mxu1 %v762_v41 }
 0x230   : > { %1015 = vmatpush.msrb.mxu0 %v731_v42  ;;  %1035 = vmatpush.msrb.mxu1 %v732_v43 }
 0x231   : > { %4288 = vmatmul.msk.f32.vlgmr.msrb.gmra.mxu0 %vm996_vm13, %v989_v8  ;;  %4289 = vmatmul.msk.f32.vlgmr.msrb.gmra.mxu1 %vm996_vm13, %v989_v8 }
 0x2a5   : > { %v1057_v20 = vpop.f32.mrf.mxu2 }
 0x2a6   : > { %v1058_v21 = vadd.f32 %v1057_v20, %v994_v38 }
 0x2a8   : > { %v4885_v24 = vmax.f32 %v1058_v21, 0.0 }
 0x2aa   : > { %v1077_v50 = vpop.f32.mrf.mxu3  ;;  %7462 = vst [vmem:[#allocation8_spill] sm:$0xff] %v4885_v24 }
 0x2ab   : > { %v1078_v51 = vadd.f32 %v1077_v50, %v994_v38  ;;  %v1254_v50 = vperm.slane %v4296_v6, 2 }
 0x2ad   : > { %v4877_v52 = vmax.f32 %v1078_v51, 0.0 }
 0x2ae   : > { %v1017_v44 = vpop.f32.mrf.mxu0  ;;  %v1037_v46 = vpop.f32.mrf.mxu1 }
 0x2af   : > { %v1018_v48 = vadd.f32 %v1017_v44, %v994_v38  ;;  %v1038_v47 = vadd.f32 %v1037_v46, %v994_v38  ;;  %7461 = vst [vmem:[#allocation7_spill] sm:$0xff] %v4877_v52 }
 0x2b1   : > { %v4861_v49 = vmax.f32 %v1018_v48, 0.0  ;;  %v4863_v45 = vmax.f32 %v1038_v47, 0.0  ;;  %v1253_v47 = vperm.slane %v4296_v6, 1 }
 0x2b3   : > { %7459 = vst [vmem:[#allocation5_spill] sm:$0xff] %v4861_v49  ;;  %1298 = vrot.lane.b32.xlu0 %v4861_v49, %s4402_s24  ;;  %1176 = vrot.lane.b32.xlu2 %v4863_v45, %s4406_s28 }
 0x2b4   : > { %7460 = vst [vmem:[#allocation6_spill] sm:$0xff] %v4863_v45  ;;  %1270 = vrot.lane.b32.xlu1 %v4863_v45, %s4409_s6 }
 0x2bb   : > { %1268 = vrot.lane.b32.xlu0 %v4861_v49, %s4409_s6  ;;  %1240 = vrot.lane.b32.xlu2 %v4863_v45, %s4408_s30 }
 0x2bc   : > { %1116 = vrot.lane.b32.xlu1 %v4863_v45, %s4404_s26 }
 0x2c3   : > { %1238 = vrot.lane.b32.xlu0 %v4861_v49, %s4408_s30  ;;  %1304 = vrot.lane.b32.xlu2 %v4877_v52, %s4402_s24 }
 0x2c4   : > { %1086 = vrot.lane.b32.xlu1 %v4863_v45, %s4403_s25 }
 0x2cb   : > { %1208 = vrot.lane.b32.xlu0 %v4861_v49, %s4407_s29  ;;  %1274 = vrot.lane.b32.xlu2 %v4877_v52, %s4409_s6 }
 0x2cc   : > { %1302 = vrot.lane.b32.xlu1 %v4885_v24, %s4402_s24 }
 0x2d3   : > { %1244 = vrot.lane.b32.xlu2 %v4877_v52, %s4408_s30  ;;  %1300 = vrot.lane.b32.xlu0 %v4863_v45, %s4402_s24 }
 0x2d4   : > { %1272 = vrot.lane.b32.xlu1 %v4885_v24, %s4409_s6 }
 0x2db   : > { %1214 = vrot.lane.b32.xlu2 %v4877_v52, %s4407_s29  ;;  %1146 = vrot.lane.b32.xlu0 %v4863_v45, %s4405_s27 }
 0x2dc   : > { %1242 = vrot.lane.b32.xlu1 %v4885_v24, %s4408_s30 }
 0x2e3   : > { %1150 = vrot.lane.b32.xlu2 %v4877_v52, %s4405_s27  ;;  %1210 = vrot.lane.b32.xlu0 %v4863_v45, %s4407_s29 }
 0x2e4   : > { %1212 = vrot.lane.b32.xlu1 %v4885_v24, %s4407_s29 }
 0x2eb   : > { %1118 = vrot.lane.b32.xlu2 %v4885_v24, %s4404_s26  ;;  %1178 = vrot.lane.b32.xlu0 %v4885_v24, %s4406_s28 }
 0x2ec   : > { %1180 = vrot.lane.b32.xlu1 %v4877_v52, %s4406_s28 }
 0x2f3   : > { %1088 = vrot.lane.b32.xlu2 %v4885_v24, %s4403_s25  ;;  %1120 = vrot.lane.b32.xlu0 %v4877_v52, %s4404_s26 }
 0x2f4   : > { %1148 = vrot.lane.b32.xlu1 %v4885_v24, %s4405_s27 }
 0x2fb   : > { %1144 = vrot.lane.b32.xlu2 %v4861_v49, %s4405_s27  ;;  %1090 = vrot.lane.b32.xlu0 %v4877_v52, %s4403_s25 }
 0x2fc   : > { %1174 = vrot.lane.b32.xlu1 %v4861_v49, %s4406_s28 }
 0x303   : > { %1368 = vperm.xlu2 %4392, %v1365_v53   ;;  %1114 = vrot.lane.b32.xlu0 %v4861_v49, %s4404_s26 }
 0x304   : > { %1084 = vrot.lane.b32.xlu1 %v4861_v49, %s4403_s25 }
 0x30d   : > { %v4936_v54 = vpop.permute.xlu2 %1176 }
 0x315   : > { %v4938_v55 = vpop.permute.xlu2 %1240 }
 0x31d   : > { %v1305_v56 = vpop.permute.xlu2 %1304 }
 0x325   : > { %v1299_v59 = vpop.permute.xlu0 %1298  ;;  %v1275_v0 = vpop.permute.xlu2 %1274 }
 0x326   : > { %v1309_v60 = vsel %vm564_vm1, %v1305_v56, %v1299_v59  ;;  %v1271_v61 = vpop.permute.xlu1 %1270 }
 0x327   : > { %v4945_v62 = vmul.f32 %v1315_v58, %v1309_v60  ;;  %v1223_v60 = vperm.slane %v4970_v16, 1 }
 0x329   : > { %7463 = vst [vmem:[#allocation9_spill] sm:$0xff] %v4945_v62  ;;  %1441 = vmatpush.msra.mxu3 %v4945_v62 }
 0x32d   : > { %v1269_v2 = vpop.permute.xlu0 %1268  ;;  %v1245_v8 = vpop.permute.xlu2 %1244 }
 0x32e   : > { %v1279_v3 = vsel %vm522_vm11, %v1275_v0, %v1269_v2  ;;  %v4953_v4 = vpop.permute.xlu1 %1116  ;;  %v1278_v35 = vsel %vm522_vm11, %v1269_v2, %v1271_v61 }
 0x32f   : > { %v4955_v5 = vmul.f32 %v1285_v1, %v1279_v3  ;;  %v5006_v44 = vmul.f32 %v1282_v33, %v1278_v35 }
 0x331   : > { %7464 = vst [vmem:[#allocation10_spill] sm:$0xff] %v4955_v5  ;;  %1442 = vmatpush.msra.mxu3 %v4955_v5 }
 0x332   : > { %7470 = vst [vmem:[#allocation16_spill] sm:$0xff] %v5006_v44 }
 0x335   : > { %v1239_v11 = vpop.permute.xlu0 %1238  ;;  %v1215_v7 = vpop.permute.xlu2 %1214 }
 0x336   : > { %v1249_v13 = vsel %vm480_vm10, %v1245_v8, %v1239_v11  ;;  %v4963_v14 = vpop.permute.xlu1 %1086  ;;  %v1248_v43 = vsel %vm480_vm10, %v1239_v11, %v4938_v55  ;;  %v4294_v11 = vld [vmem:[%s7286_s4 + $0x3] ss:$8 sm:$0xf] }
 0x337   : > { %v4965_v15 = vmul.f32 %v1255_v10, %v1249_v13  ;;  %v5013_v48 = vmul.f32 %v1252_v37, %v1248_v43  ;;  %v1190_v13 = vperm.slane %v4294_v11, 2 }
 0x339   : > { %7465 = vst [vmem:[#allocation11_spill] sm:$0xff] %v4965_v15  ;;  %1443 = vmatpush.msra.mxu3 %v4965_v15 }
 0x33a   : > { %7472 = vst [vmem:[#allocation18_spill] sm:$0xff] %v5013_v48 }
 0x33d   : > { %v1209_v22 = vpop.permute.xlu0 %1208  ;;  %v5015_v51 = vpop.permute.xlu2 %1150 }
 0x33e   : > { %v1219_v9 = vsel %vm438_vm9, %v1215_v7, %v1209_v22  ;;  %v1303_v25 = vpop.permute.xlu1 %1302 }
 0x33f   : > { %v1306_v28 = vsel %vm564_vm1, %v1303_v25, %v1305_v56  ;;  %v4978_v29 = vmul.f32 %v1225_v18, %v1219_v9 }
 0x340   : > { %v4980_v30 = vmul.f32 %v1314_v19, %v1306_v28 }
 0x341   : > { %7466 = vst [vmem:[#allocation12_spill] sm:$0xff] %v4978_v29  ;;  %1444 = vmatpush.msra.mxu3 %v4978_v29 }
 0x342   : > { %7467 = vst [vmem:[#allocation13_spill] sm:$0xff] %v4980_v30  ;;  %1421 = vmatpush.msra.mxu2 %v4980_v30 }
 0x343   : > { %1445 = vmatpush.msra.mxu3 %v4877_v52 }
 0x345   : > { %v1301_v32 = vpop.permute.xlu0 %1300 }
 0x346   : > { %v1273_v23 = vpop.permute.xlu1 %1272  ;;  %v1307_v36 = vsel %vm564_vm1, %v1301_v32, %v1303_v25  ;;  %v1308_v27 = vsel %vm564_vm1, %v1299_v59, %v1301_v32  ;;  %v1222_v59 = vperm.slane %v4970_v16, 0 }
 0x347   : > { %v1276_v39 = vsel %vm522_vm11, %v1273_v23, %v1275_v0  ;;  %v1277_v40 = vsel %vm522_vm11, %v1271_v61, %v1273_v23  ;;  %v4995_v41 = vmul.f32 %v1312_v31, %v1308_v27  ;;  %v4997_v42 = vmul.f32 %v1313_v26, %v1307_v36  ;;  %v4293_v31 = vld [vmem:[%s7286_s4 + $0x2] ss:$8 sm:$0xf]  ;;  %v4292_v26 = vld [vmem:[%s7286_s4 + $0x1] ss:$8 sm:$0xf] }
 0x348   : > { %v5002_v38 = vmul.f32 %v1284_v17, %v1276_v39  ;;  %v5008_v46 = vmul.f32 %v1283_v34, %v1277_v40  ;;  %v1224_v61 = vperm.slane %v4970_v16, 2  ;;  %v1191_v16 = vperm.slane %v4294_v11, 3  ;;  %v1096_v34 = vld [vmem:[%s7286_s4] ss:$8 sm:$0xf] }
 0x349   : > { %7468 = vst [vmem:[#allocation14_spill] sm:$0xff] %v4997_v42  ;;  %1381 = vmatpush.msra.mxu0 %v4995_v41  ;;  %1401 = vmatpush.msra.mxu1 %v4997_v42  ;;  %v1160_v17 = vperm.slane %v4293_v31, 2  ;;  %v1161_v32 = vperm.slane %v4293_v31, 3  ;;  %v1130_v23 = vperm.slane %v4292_v26, 2  ;;  %v1131_v36 = vperm.slane %v4292_v26, 3 }
 0x34a   : > { %7469 = vst [vmem:[#allocation15_spill] sm:$0xff] %v5002_v38  ;;  %1422 = vmatpush.msra.mxu2 %v5002_v38 }
 0x34b   : > { %7471 = vst [vmem:[#allocation17_spill] sm:$0xff] %v5008_v46  ;;  %1382 = vmatpush.msra.mxu0 %v5006_v44  ;;  %1402 = vmatpush.msra.mxu1 %v5008_v46 }
 0x34d   : > { %1383 = vmatpush.msra.mxu0 %v5013_v48  ;;  %v5018_v20 = vpop.permute.xlu0 %1146 }
 0x34e   : > { %v1243_v21 = vpop.permute.xlu1 %1242 }
 0x34f   : > { %v1246_v53 = vsel %vm480_vm10, %v1243_v21, %v1245_v8  ;;  %v1247_v56 = vsel %vm480_vm10, %v4938_v55, %v1243_v21  ;;  %v1119_v55 = vpop.permute.xlu2 %1118 }
 0x350   : > { %v5025_v57 = vmul.f32 %v1253_v47, %v1247_v56  ;;  %v5027_v58 = vmul.f32 %v1254_v50, %v1246_v53  ;;  %v1123_v27 = vsel %vm309_vm6, %v4953_v4, %v1119_v55  ;;  %v1100_v50 = vperm.slane %v1096_v34, 2 }
 0x351   : > { %v5095_v53 = vmul.f32 %v1130_v23, %v1123_v27  ;;  %v1099_v23 = vperm.slane %v1096_v34, 1 }
 0x352   : > { %7473 = vst [vmem:[#allocation19_spill] sm:$0xff] %v5025_v57  ;;  %1403 = vmatpush.msra.mxu1 %v5025_v57  ;;  %1423 = vmatpush.msra.mxu2 %v5027_v58 }
 0x353   : > { %7474 = vst [vmem:[#allocation20_spill] sm:$0xff] %v5027_v58 }
 0x354   : > { %7482 = vst [vmem:[#allocation28_spill] sm:$0xff] %v5095_v53 }
 0x355   : > { %v1211_v63 = vpop.permute.xlu0 %1210 }
 0x356   : > { %v1213_v0 = vpop.permute.xlu1 %1212  ;;  %v1218_v1 = vsel %vm438_vm9, %v1209_v22, %v1211_v63 }
 0x357   : > { %v1216_v2 = vsel %vm438_vm9, %v1213_v0, %v1215_v7  ;;  %v1217_v3 = vsel %vm438_vm9, %v1211_v63, %v1213_v0  ;;  %v5040_v6 = vmul.f32 %v1222_v59, %v1218_v1  ;;  %v1089_v28 = vpop.permute.xlu2 %1088  ;;  %v1364_v63 = vld [vmem:[%s7284_s2 + $0x40] sm:$0xff]  ;;  %v1188_v0 = vperm.slane %v4294_v11, 0 }
 0x358   : > { %v5042_v8 = vmul.f32 %v1223_v60, %v1217_v3  ;;  %v5044_v10 = vmul.f32 %v1224_v61, %v1216_v2  ;;  %v1093_v21 = vsel %vm262_vm2, %v4963_v14, %v1089_v28  ;;  %v1101_v60 = vperm.slane %v1096_v34, 3 }
 0x359   : > { %7475 = vst [vmem:[#allocation21_spill] sm:$0xff] %v5040_v6  ;;  %1384 = vmatpush.msra.mxu0 %v5040_v6  ;;  %v5101_v61 = vmul.f32 %v1100_v50, %v1093_v21  ;;  %v1189_v1 = vperm.slane %v4294_v11, 1 }
 0x35a   : > { %7476 = vst [vmem:[#allocation22_spill] sm:$0xff] %v5042_v8  ;;  %1404 = vmatpush.msra.mxu1 %v5042_v8  ;;  %1424 = vmatpush.msra.mxu2 %v5044_v10 }
 0x35b   : > { %7477 = vst [vmem:[#allocation23_spill] sm:$0xff] %v5044_v10  ;;  %1385 = vmatpush.msra.mxu0 %v4861_v49 }
 0x35c   : > { %1405 = vmatpush.msra.mxu1 %v4863_v45  ;;  %1425 = vmatpush.msra.mxu2 %v4885_v24  ;;  %7484 = vst [vmem:[#allocation30_spill] sm:$0xff] %v5101_v61 }
 0x35d   : > { %v1179_v18 = vpop.permute.xlu0 %1178 }
 0x35e   : > { %v1181_v19 = vpop.permute.xlu1 %1180  ;;  %v1183_v7 = vsel %vm393_vm8, %v4936_v54, %v1179_v18 }
 0x35f   : > { %v1182_v22 = vsel %vm393_vm8, %v1179_v18, %v1181_v19  ;;  %v5060_v9 = vmul.f32 %v1190_v13, %v1183_v7  ;;  %v1145_v59 = vpop.permute.xlu2 %1144  ;;  %v1159_v18 = vperm.slane %v4293_v31, 1 }
 0x360   : > { %v5062_v25 = vmul.f32 %v1191_v16, %v1182_v22  ;;  %v1154_v2 = vsel %vm351_vm7, %v1145_v59, %v5018_v20  ;;  %v1158_v16 = vperm.slane %v4293_v31, 0  ;;  %v1155_v7 = vsel %vm351_vm7, %v5015_v51, %v1145_v59 }
 0x361   : > { %7478 = vst [vmem:[#allocation24_spill] sm:$0xff] %v5060_v9  ;;  %1426 = vmatpush.msra.mxu2 %v5060_v9  ;;  %v1129_v31 = vperm.slane %v4292_v26, 1  ;;  %v7709_v12 = vld [vmem:[#allocation22_spill] sm:$0xff] }
 0x362   : > { %7479 = vst [vmem:[#allocation25_spill] sm:$0xff] %v5062_v25  ;;  %1446 = vmatpush.msra.mxu3 %v5062_v25 }
 0x365   : > { %v1121_v33 = vpop.permute.xlu0 %1120 }
 0x366   : > { %v1149_v35 = vpop.permute.xlu1 %1148  ;;  %v1122_v40 = vsel %vm309_vm6, %v1119_v55, %v1121_v33 }
 0x367   : > { %v1152_v37 = vsel %vm351_vm7, %v1149_v35, %v5015_v51  ;;  %v1153_v39 = vsel %vm351_vm7, %v5018_v20, %v1149_v35  ;;  %v5097_v56 = vmul.f32 %v1131_v36, %v1122_v40  ;;  %v5130_v51 = vmul.f32 %v1158_v16, %v1155_v7 }
 0x368   : > { %v5086_v43 = vmul.f32 %v1160_v17, %v1153_v39  ;;  %v5088_v47 = vmul.f32 %v1161_v32, %v1152_v37  ;;  %v1098_v35 = vperm.slane %v1096_v34, 0 }
 0x369   : > { %7483 = vst [vmem:[#allocation29_spill] sm:$0xff] %v5097_v56 }
 0x36a   : > { %7480 = vst [vmem:[#allocation26_spill] sm:$0xff] %v5086_v43  ;;  %1427 = vmatpush.msra.mxu2 %v5086_v43  ;;  %1447 = vmatpush.msra.mxu3 %v5088_v47 }
 0x36b   : > { %7481 = vst [vmem:[#allocation27_spill] sm:$0xff] %v5088_v47 }
 0x36c   : > { %1428 = vmatpush.msra.mxu2 %v5095_v53  ;;  %1448 = vmatpush.msra.mxu3 %v5097_v56  ;;  %7488 = vst [vmem:[#allocation34_spill] sm:$0xff] %v5130_v51 }
 0x36d   : > { %v1091_v55 = vpop.permute.xlu0 %1090 }
 0x36e   : > { %v1175_v3 = vpop.permute.xlu1 %1174  ;;  %1429 = vmatpush.msra.mxu2 %v5101_v61  ;;  %v1092_v13 = vsel %vm262_vm2, %v1089_v28, %v1091_v55 }
 0x36f   : > { %v1184_v11 = vsel %vm393_vm8, %v1175_v3, %v4936_v54  ;;  %v1185_v22 = vsel %vm393_vm8, %v1181_v19, %v1175_v3  ;;  %4301 = vmatmul.msk.f32.vlgmr.msra.gmra.mxu2 %vm996_vm13, %v1364_v63  ;;  %v5121_v20 = vmul.f32 %v1101_v60, %v1092_v13  ;;  %v5132_v54 = vmul.f32 %v1159_v18, %v1154_v2  ;;  %v1739_v18 = vld [vmem:[%s7285_s3 + $0x18] sm:$0xff] }
 0x370   : > { %v5123_v17 = vmul.f32 %v1188_v0, %v1185_v22  ;;  %v5125_v28 = vmul.f32 %v1189_v1, %v1184_v11  ;;  %v1128_v19 = vperm.slane %v4292_v26, 0 }
 0x371   : > { %7485 = vst [vmem:[#allocation31_spill] sm:$0xff] %v5121_v20  ;;  %1449 = vmatpush.msra.mxu3 %v5121_v20 }
 0x372   : > { %7486 = vst [vmem:[#allocation32_spill] sm:$0xff] %v5123_v17  ;;  %1386 = vmatpush.msra.mxu0 %v5123_v17  ;;  %1406 = vmatpush.msra.mxu1 %v5125_v28 }
 0x373   : > { %7487 = vst [vmem:[#allocation33_spill] sm:$0xff] %v5125_v28  ;;  %4302 = vmatmul.msk.f32.vlgmr.msra.gmra.mxu3 %vm996_vm13, %v1364_v63 }
 0x374   : > { %7489 = vst [vmem:[#allocation35_spill] sm:$0xff] %v5132_v54  ;;  %1387 = vmatpush.msra.mxu0 %v5130_v51  ;;  %1407 = vmatpush.msra.mxu1 %v5132_v54 }
 0x375   : > { %v1115_v32 = vpop.permute.xlu0 %1114 }
 0x376   : > { %v1085_v36 = vpop.permute.xlu1 %1084  ;;  %v1124_v27 = vsel %vm309_vm6, %v1115_v32, %v4953_v4  ;;  %v1125_v37 = vsel %vm309_vm6, %v1121_v33, %v1115_v32 }
 0x377   : > { %v1094_v39 = vsel %vm262_vm2, %v1085_v36, %v4963_v14  ;;  %v1095_v26 = vsel %vm262_vm2, %v1091_v55, %v1085_v36  ;;  %v5147_v40 = vmul.f32 %v1128_v19, %v1125_v37  ;;  %v5149_v50 = vmul.f32 %v1129_v31, %v1124_v27  ;;  %v1369_v14 = vpop.permute.xlu2 %1368  ;;  %v4309_v19 = vld [vmem:[%s7286_s4 + $0x20] ss:$8 sm:$0xf]  ;;  %v4308_v27 = vld [vmem:[%s7286_s4 + $0x7] ss:$8 sm:$0xf] }
 0x378   : > { %v5153_v34 = vmul.f32 %v1098_v35, %v1095_v26  ;;  %v5155_v4 = vmul.f32 %v1099_v23, %v1094_v39  ;;  %v1689_v31 = vperm.slane %v4309_v19, 3  ;;  %v1659_v39 = vperm.slane %v4308_v27, 3 }
 0x379   : > { %7490 = vst [vmem:[#allocation36_spill] sm:$0xff] %v5147_v40  ;;  %1388 = vmatpush.msra.mxu0 %v5147_v40  ;;  %1408 = vmatpush.msra.mxu1 %v5149_v50  ;;  %v1686_v47 = vperm.slane %v4309_v19, 0  ;;  %v1687_v25 = vperm.slane %v4309_v19, 1  ;;  %v1658_v52 = vperm.slane %v4308_v27, 2  ;;  %v1656_v15 = vperm.slane %v4308_v27, 0 }
 0x37a   : > { %7491 = vst [vmem:[#allocation37_spill] sm:$0xff] %v5149_v50  ;;  %v1657_v5 = vperm.slane %v4308_v27, 1 }
 0x37b   : > { %7492 = vst [vmem:[#allocation38_spill] sm:$0xff] %v5153_v34  ;;  %1389 = vmatpush.msra.mxu0 %v5153_v34  ;;  %1409 = vmatpush.msra.mxu1 %v5155_v4 }
 0x37c   : > { %7493 = vst [vmem:[#allocation39_spill] sm:$0xff] %v5155_v4  ;;  %4299 = vmatmul.msk.f32.vlgmr.msra.gmra.mxu0 %vm996_vm13, %v1364_v63  ;;  %4300 = vmatmul.msk.f32.vlgmr.msra.gmra.mxu1 %vm996_vm13, %v1364_v63 }
 0x3f2   : > { %v1431_v3 = vpop.f32.mrf.mxu2 }
 0x3f3   : > { %v1432_v13 = vadd.f32 %v1431_v3, %v1369_v14 }
 0x3f5   : > { %v5185_v16 = vmax.f32 %v1432_v13, 0.0 }
 0x3f6   : > { %v1451_v55 = vpop.f32.mrf.mxu3 }
 0x3f7   : > { %v1452_v63 = vadd.f32 %v1451_v55, %v1369_v14  ;;  %7496 = vst [vmem:[#allocation42_spill] sm:$0xff] %v5185_v16 }
 0x3f9   : > { %v1391_v33 = vpop.f32.mrf.mxu0  ;;  %v1411_v21 = vpop.f32.mrf.mxu1  ;;  %v5177_v2 = vmax.f32 %v1452_v63, 0.0 }
 0x3fa   : > { %v1392_v59 = vadd.f32 %v1391_v33, %v1369_v14  ;;  %v1412_v60 = vadd.f32 %v1411_v21, %v1369_v14 }
 0x3fb   : > { %7495 = vst [vmem:[#allocation41_spill] sm:$0xff] %v5177_v2 }
 0x3fc   : > { %v5161_v0 = vmax.f32 %v1392_v59, 0.0  ;;  %v5163_v1 = vmax.f32 %v1412_v60, 0.0  ;;  %v4307_v59 = vld [vmem:[%s7286_s4 + $0x6] ss:$8 sm:$0xf] }
 0x3fd   : > { %v1629_v55 = vperm.slane %v4307_v59, 3 }
 0x3fe   : > { %7494 = vst [vmem:[#allocation40_spill] sm:$0xff] %v5163_v1  ;;  %1672 = vrot.lane.b32.xlu0 %v5161_v0, %s4402_s24  ;;  %1550 = vrot.lane.b32.xlu2 %v5163_v1, %s4406_s28 }
 0x3ff   : > { %1644 = vrot.lane.b32.xlu1 %v5163_v1, %s4409_s6 }
 0x406   : > { %1642 = vrot.lane.b32.xlu0 %v5161_v0, %s4409_s6  ;;  %1614 = vrot.lane.b32.xlu2 %v5163_v1, %s4408_s30 }
 0x407   : > { %1490 = vrot.lane.b32.xlu1 %v5163_v1, %s4404_s26 }
 0x40e   : > { %1612 = vrot.lane.b32.xlu0 %v5161_v0, %s4408_s30  ;;  %1678 = vrot.lane.b32.xlu2 %v5177_v2, %s4402_s24 }
 0x40f   : > { %1460 = vrot.lane.b32.xlu1 %v5163_v1, %s4403_s25 }
 0x416   : > { %1582 = vrot.lane.b32.xlu0 %v5161_v0, %s4407_s29  ;;  %1648 = vrot.lane.b32.xlu2 %v5177_v2, %s4409_s6 }
 0x417   : > { %1676 = vrot.lane.b32.xlu1 %v5185_v16, %s4402_s24 }
 0x41e   : > { %1618 = vrot.lane.b32.xlu2 %v5177_v2, %s4408_s30  ;;  %1674 = vrot.lane.b32.xlu0 %v5163_v1, %s4402_s24 }
 0x41f   : > { %1646 = vrot.lane.b32.xlu1 %v5185_v16, %s4409_s6 }
 0x426   : > { %1588 = vrot.lane.b32.xlu2 %v5177_v2, %s4407_s29  ;;  %1520 = vrot.lane.b32.xlu0 %v5163_v1, %s4405_s27 }
 0x427   : > { %1616 = vrot.lane.b32.xlu1 %v5185_v16, %s4408_s30 }
 0x42e   : > { %1524 = vrot.lane.b32.xlu2 %v5177_v2, %s4405_s27  ;;  %1584 = vrot.lane.b32.xlu0 %v5163_v1, %s4407_s29 }
 0x42f   : > { %1586 = vrot.lane.b32.xlu1 %v5185_v16, %s4407_s29 }
 0x436   : > { %1492 = vrot.lane.b32.xlu2 %v5185_v16, %s4404_s26  ;;  %1552 = vrot.lane.b32.xlu0 %v5185_v16, %s4406_s28 }
 0x437   : > { %1554 = vrot.lane.b32.xlu1 %v5177_v2, %s4406_s28 }
 0x43e   : > { %1462 = vrot.lane.b32.xlu2 %v5185_v16, %s4403_s25  ;;  %1494 = vrot.lane.b32.xlu0 %v5177_v2, %s4404_s26 }
 0x43f   : > { %1522 = vrot.lane.b32.xlu1 %v5185_v16, %s4405_s27 }
 0x446   : > { %1518 = vrot.lane.b32.xlu2 %v5161_v0, %s4405_s27  ;;  %1464 = vrot.lane.b32.xlu0 %v5177_v2, %s4403_s25 }
 0x447   : > { %1548 = vrot.lane.b32.xlu1 %v5161_v0, %s4406_s28 }
 0x44e   : > { %1742 = vperm.xlu2 %4392, %v1739_v18   ;;  %1488 = vrot.lane.b32.xlu0 %v5161_v0, %s4404_s26 }
 0x44f   : > { %1458 = vrot.lane.b32.xlu1 %v5161_v0, %s4403_s25 }
 0x458   : > { %v5236_v7 = vpop.permute.xlu2 %1550 }
 0x460   : > { %v5238_v11 = vpop.permute.xlu2 %1614 }
 0x468   : > { %v1679_v22 = vpop.permute.xlu2 %1678 }
 0x470   : > { %v1673_v32 = vpop.permute.xlu0 %1672  ;;  %v1649_v37 = vpop.permute.xlu2 %1648 }
 0x471   : > { %v1683_v35 = vsel %vm564_vm1, %v1679_v22, %v1673_v32  ;;  %v1645_v23 = vpop.permute.xlu1 %1644 }
 0x472   : > { %v5245_v36 = vmul.f32 %v1689_v31, %v1683_v35  ;;  %v5270_v31 = vld [vmem:[%s7286_s4 + $0x5] ss:$8 sm:$0xf] }
 0x473   : > { %v1599_v35 = vperm.slane %v5270_v31, 3 }
 0x474   : > { %7497 = vst [vmem:[#allocation43_spill] sm:$0xff] %v5245_v36  ;;  %1815 = vmatpush.msrb.mxu3 %v5245_v36 }
 0x478   : > { %v1643_v26 = vpop.permute.xlu0 %1642  ;;  %v1619_v60 = vpop.permute.xlu2 %1618 }
 0x479   : > { %v1653_v14 = vsel %vm522_vm11, %v1649_v37, %v1643_v26  ;;  %v5253_v33 = vpop.permute.xlu1 %1490  ;;  %v1652_v62 = vsel %vm522_vm11, %v1643_v26, %v1645_v23 }
 0x47a   : > { %v5255_v21 = vmul.f32 %v1659_v39, %v1653_v14  ;;  %v1688_v39 = vperm.slane %v4309_v19, 2 }
 0x47c   : > { %7498 = vst [vmem:[#allocation44_spill] sm:$0xff] %v5255_v21  ;;  %1816 = vmatpush.msrb.mxu3 %v5255_v21 }
 0x480   : > { %v1613_v63 = vpop.permute.xlu0 %1612  ;;  %v1589_v14 = vpop.permute.xlu2 %1588 }
 0x481   : > { %v1623_v3 = vsel %vm480_vm10, %v1619_v60, %v1613_v63  ;;  %v5263_v13 = vpop.permute.xlu1 %1460  ;;  %v1622_v26 = vsel %vm480_vm10, %v1613_v63, %v5238_v11 }
 0x482   : > { %v5265_v18 = vmul.f32 %v1629_v55, %v1623_v3 }
 0x484   : > { %7499 = vst [vmem:[#allocation45_spill] sm:$0xff] %v5265_v18  ;;  %1817 = vmatpush.msrb.mxu3 %v5265_v18 }
 0x488   : > { %v1583_v21 = vpop.permute.xlu0 %1582 }
 0x489   : > { %v1593_v36 = vsel %vm438_vm9, %v1589_v14, %v1583_v21  ;;  %v1677_v20 = vpop.permute.xlu1 %1676 }
 0x48a   : > { %v1680_v55 = vsel %vm564_vm1, %v1677_v20, %v1679_v22  ;;  %v5278_v3 = vmul.f32 %v1599_v35, %v1593_v36 }
 0x48b   : > { %v5280_v56 = vmul.f32 %v1688_v39, %v1680_v55  ;;  %v1626_v39 = vperm.slane %v4307_v59, 0 }
 0x48c   : > { %7500 = vst [vmem:[#allocation46_spill] sm:$0xff] %v5278_v3  ;;  %1818 = vmatpush.msrb.mxu3 %v5278_v3 }
 0x48d   : > { %7501 = vst [vmem:[#allocation47_spill] sm:$0xff] %v5280_v56  ;;  %1795 = vmatpush.msrb.mxu2 %v5280_v56 }
 0x48e   : > { %1819 = vmatpush.msrb.mxu3 %v5177_v2 }
 0x490   : > { %v1675_v29 = vpop.permute.xlu0 %1674 }
 0x491   : > { %v1647_v22 = vpop.permute.xlu1 %1646  ;;  %v1681_v36 = vsel %vm564_vm1, %v1675_v29, %v1677_v20  ;;  %v1682_v35 = vsel %vm564_vm1, %v1673_v32, %v1675_v29  ;;  %v5306_v29 = vmul.f32 %v1656_v15, %v1652_v62  ;;  %v1628_v32 = vperm.slane %v4307_v59, 2 }
 0x492   : > { %v1650_v55 = vsel %vm522_vm11, %v1647_v22, %v1649_v37  ;;  %v1651_v19 = vsel %vm522_vm11, %v1645_v23, %v1647_v22  ;;  %v5295_v56 = vmul.f32 %v1686_v47, %v1682_v35  ;;  %v5297_v27 = vmul.f32 %v1687_v25, %v1681_v36 }
 0x493   : > { %v5302_v61 = vmul.f32 %v1658_v52, %v1650_v55  ;;  %7505 = vst [vmem:[#allocation51_spill] sm:$0xff] %v5306_v29  ;;  %v5308_v20 = vmul.f32 %v1657_v5, %v1651_v19  ;;  %v5313_v25 = vmul.f32 %v1626_v39, %v1622_v26  ;;  %v1627_v47 = vperm.slane %v4307_v59, 1  ;;  %v5315_v52 = vpop.permute.xlu2 %1524 }
 0x494   : > { %7502 = vst [vmem:[#allocation48_spill] sm:$0xff] %v5295_v56  ;;  %1755 = vmatpush.msrb.mxu0 %v5295_v56  ;;  %1775 = vmatpush.msrb.mxu1 %v5297_v27  ;;  %v1596_v59 = vperm.slane %v5270_v31, 0  ;;  %v1597_v22 = vperm.slane %v5270_v31, 1  ;;  %v1598_v36 = vperm.slane %v5270_v31, 2 }
 0x495   : > { %7503 = vst [vmem:[#allocation49_spill] sm:$0xff] %v5297_v27  ;;  %1796 = vmatpush.msrb.mxu2 %v5302_v61  ;;  %v4305_v31 = vld [vmem:[%s7286_s4 + $0x3] ss:$8 sm:$0xf] }
 0x496   : > { %7504 = vst [vmem:[#allocation50_spill] sm:$0xff] %v5302_v61  ;;  %1756 = vmatpush.msrb.mxu0 %v5306_v29  ;;  %1776 = vmatpush.msrb.mxu1 %v5308_v20  ;;  %v6498_v29 = vld [vmem:[%s7286_s4 + $0x5] ss:$8 sm:$0xf] }
 0x497   : > { %7506 = vst [vmem:[#allocation52_spill] sm:$0xff] %v5308_v20 }
 0x498   : > { %1757 = vmatpush.msrb.mxu0 %v5313_v25  ;;  %v5318_v23 = vpop.permute.xlu0 %1520 }
 0x499   : > { %v1617_v62 = vpop.permute.xlu1 %1616 }
 0x49a   : > { %v1620_v5 = vsel %vm480_vm10, %v1617_v62, %v1619_v60  ;;  %v1621_v15 = vsel %vm480_vm10, %v5238_v11, %v1617_v62 }
 0x49b   : > { %v5325_v37 = vmul.f32 %v1627_v47, %v1621_v15  ;;  %v5327_v63 = vmul.f32 %v1628_v32, %v1620_v5  ;;  %v1493_v11 = vpop.permute.xlu2 %1492 }
 0x49c   : > { %v1497_v61 = vsel %vm309_vm6, %v5253_v33, %v1493_v11 }
 0x49d   : > { %7507 = vst [vmem:[#allocation53_spill] sm:$0xff] %v5325_v37  ;;  %1777 = vmatpush.msrb.mxu1 %v5325_v37  ;;  %1797 = vmatpush.msrb.mxu2 %v5327_v63 }
 0x49e   : > { %7508 = vst [vmem:[#allocation54_spill] sm:$0xff] %v5327_v63 }
 0x4a0   : > { %v1585_v35 = vpop.permute.xlu0 %1584 }
 0x4a1   : > { %v1587_v60 = vpop.permute.xlu1 %1586  ;;  %v1592_v39 = vsel %vm438_vm9, %v1583_v21, %v1585_v35  ;;  %v1564_v21 = vperm.slane %v4305_v31, 2 }
 0x4a2   : > { %v1590_v55 = vsel %vm438_vm9, %v1587_v60, %v1589_v14  ;;  %v1591_v19 = vsel %vm438_vm9, %v1585_v35, %v1587_v60  ;;  %v5340_v26 = vmul.f32 %v1596_v59, %v1592_v39  ;;  %v1565_v14 = vperm.slane %v4305_v31, 3  ;;  %v4304_v60 = vld [vmem:[%s7286_s4 + $0x2] ss:$8 sm:$0xf] }
 0x4a3   : > { %v5342_v47 = vmul.f32 %v1597_v22, %v1591_v19  ;;  %v5344_v32 = vmul.f32 %v1598_v36, %v1590_v55  ;;  %v1463_v35 = vpop.permute.xlu2 %1462  ;;  %v4303_v39 = vld [vmem:[%s7286_s4 + $0x1] ss:$8 sm:$0xf]  ;;  %v1534_v55 = vperm.slane %v4304_v60, 2  ;;  %v1535_v19 = vperm.slane %v4304_v60, 3 }
 0x4a4   : > { %1758 = vmatpush.msrb.mxu0 %v5340_v26  ;;  %v1467_v18 = vsel %vm262_vm2, %v5263_v13, %v1463_v35 }
 0x4a5   : > { %7509 = vst [vmem:[#allocation55_spill] sm:$0xff] %v5342_v47  ;;  %1778 = vmatpush.msrb.mxu1 %v5342_v47  ;;  %1798 = vmatpush.msrb.mxu2 %v5344_v32 }
 0x4a6   : > { %7510 = vst [vmem:[#allocation56_spill] sm:$0xff] %v5344_v32  ;;  %1759 = vmatpush.msrb.mxu0 %v5161_v0 }
 0x4a7   : > { %1779 = vmatpush.msrb.mxu1 %v5163_v1  ;;  %1799 = vmatpush.msrb.mxu2 %v5185_v16 }
 0x4a8   : > { %v1553_v62 = vpop.permute.xlu0 %1552 }
 0x4a9   : > { %v1555_v5 = vpop.permute.xlu1 %1554  ;;  %v1557_v15 = vsel %vm393_vm8, %v5236_v7, %v1553_v62 }
 0x4aa   : > { %v1556_v59 = vsel %vm393_vm8, %v1553_v62, %v1555_v5  ;;  %v5360_v22 = vmul.f32 %v1564_v21, %v1557_v15  ;;  %v1470_v21 = vld [vmem:[%s7286_s4] ss:$8 sm:$0xf]  ;;  %v1504_v15 = vperm.slane %v4303_v39, 2 }
 0x4ab   : > { %v5362_v36 = vmul.f32 %v1565_v14, %v1556_v59  ;;  %v1505_v59 = vperm.slane %v4303_v39, 3  ;;  %v1474_v9 = vperm.slane %v1470_v21, 2  ;;  %v1475_v4 = vperm.slane %v1470_v21, 3 }
 0x4ac   : > { %7511 = vst [vmem:[#allocation57_spill] sm:$0xff] %v5360_v22  ;;  %1800 = vmatpush.msrb.mxu2 %v5360_v22  ;;  %v5395_v24 = vmul.f32 %v1504_v15, %v1497_v61 }
 0x4ad   : > { %7512 = vst [vmem:[#allocation58_spill] sm:$0xff] %v5362_v36  ;;  %1820 = vmatpush.msrb.mxu3 %v5362_v36 }
 0x4ae   : > { %7515 = vst [vmem:[#allocation61_spill] sm:$0xff] %v5395_v24 }
 0x4b0   : > { %v1495_v62 = vpop.permute.xlu0 %1494 }
 0x4b1   : > { %v1523_v14 = vpop.permute.xlu1 %1522  ;;  %v1496_v2 = vsel %vm309_vm6, %v1493_v11, %v1495_v62  ;;  %v1738_v11 = vld [vmem:[%s7284_s2 + $0x60] sm:$0xff] }
 0x4b2   : > { %v1526_v36 = vsel %vm351_vm7, %v1523_v14, %v5315_v52  ;;  %v1527_v53 = vsel %vm351_vm7, %v5318_v23, %v1523_v14  ;;  %v5397_v10 = vmul.f32 %v1505_v59, %v1496_v2  ;;  %v1519_v14 = vpop.permute.xlu2 %1518  ;;  %v1532_v59 = vperm.slane %v4304_v60, 0 }
 0x4b3   : > { %v5386_v43 = vmul.f32 %v1534_v55, %v1527_v53  ;;  %v5388_v3 = vmul.f32 %v1535_v19, %v1526_v36  ;;  %v5401_v53 = vmul.f32 %v1474_v9, %v1467_v18  ;;  %v1562_v36 = vperm.slane %v4305_v31, 0 }
 0x4b4   : > { %7516 = vst [vmem:[#allocation62_spill] sm:$0xff] %v5397_v10  ;;  %v1563_v55 = vperm.slane %v4305_v31, 1  ;;  %v1528_v61 = vsel %vm351_vm7, %v1519_v14, %v5318_v23  ;;  %v1533_v9 = vperm.slane %v4304_v60, 1  ;;  %v1529_v18 = vsel %vm351_vm7, %v5315_v52, %v1519_v14 }
 0x4b5   : > { %7513 = vst [vmem:[#allocation59_spill] sm:$0xff] %v5386_v43  ;;  %1801 = vmatpush.msrb.mxu2 %v5386_v43  ;;  %1821 = vmatpush.msrb.mxu3 %v5388_v3  ;;  %v5430_v52 = vmul.f32 %v1532_v59, %v1529_v18  ;;  %v1503_v60 = vperm.slane %v4303_v39, 1  ;;  %v1473_v14 = vperm.slane %v1470_v21, 1 }
 0x4b6   : > { %7514 = vst [vmem:[#allocation60_spill] sm:$0xff] %v5388_v3 }
 0x4b7   : > { %1802 = vmatpush.msrb.mxu2 %v5395_v24  ;;  %1822 = vmatpush.msrb.mxu3 %v5397_v10  ;;  %7517 = vst [vmem:[#allocation63_spill] sm:$0xff] %v5401_v53 }
 0x4b8   : > { %v1465_v19 = vpop.permute.xlu0 %1464 }
 0x4b9   : > { %v1549_v2 = vpop.permute.xlu1 %1548  ;;  %1803 = vmatpush.msrb.mxu2 %v5401_v53  ;;  %v1466_v15 = vsel %vm262_vm2, %v1463_v35, %v1465_v19 }
 0x4ba   : > { %v1558_v31 = vsel %vm393_vm8, %v1549_v2, %v5236_v7  ;;  %v1559_v10 = vsel %vm393_vm8, %v1555_v5, %v1549_v2  ;;  %4312 = vmatmul.msk.f32.vlgmr.msrb.gmra.mxu2 %vm996_vm13, %v1738_v11  ;;  %v5421_v23 = vmul.f32 %v1475_v4, %v1466_v15  ;;  %v5432_v7 = vmul.f32 %v1533_v9, %v1528_v61 }
 0x4bb   : > { %v5423_v3 = vmul.f32 %v1562_v36, %v1559_v10  ;;  %v5425_v35 = vmul.f32 %v1563_v55, %v1558_v31  ;;  %v1502_v5 = vperm.slane %v4303_v39, 0  ;;  %v1472_v4 = vperm.slane %v1470_v21, 0 }
 0x4bc   : > { %7518 = vst [vmem:[#allocation64_spill] sm:$0xff] %v5421_v23  ;;  %1823 = vmatpush.msrb.mxu3 %v5421_v23 }
 0x4bd   : > { %7519 = vst [vmem:[#allocation65_spill] sm:$0xff] %v5425_v35  ;;  %1760 = vmatpush.msrb.mxu0 %v5423_v3  ;;  %1780 = vmatpush.msrb.mxu1 %v5425_v35 }
 0x4be   : > { %7520 = vst [vmem:[#allocation66_spill] sm:$0xff] %v5432_v7  ;;  %4313 = vmatmul.msk.f32.vlgmr.msrb.gmra.mxu3 %vm996_vm13, %v1738_v11 }
 0x4bf   : > { %1761 = vmatpush.msrb.mxu0 %v5430_v52  ;;  %1781 = vmatpush.msrb.mxu1 %v5432_v7 }
 0x4c0   : > { %v1489_v10 = vpop.permute.xlu0 %1488 }
 0x4c1   : > { %v1459_v36 = vpop.permute.xlu1 %1458  ;;  %v1498_v55 = vsel %vm309_vm6, %v1489_v10, %v5253_v33  ;;  %v1499_v61 = vsel %vm309_vm6, %v1495_v62, %v1489_v10 }
 0x4c2   : > { %v1468_v2 = vsel %vm262_vm2, %v1459_v36, %v5263_v13  ;;  %v1469_v39 = vsel %vm262_vm2, %v1465_v19, %v1459_v36  ;;  %v5447_v15 = vmul.f32 %v1502_v5, %v1499_v61  ;;  %v5449_v59 = vmul.f32 %v1503_v60, %v1498_v55  ;;  %v1743_v13 = vpop.permute.xlu2 %1742  ;;  %v2113_v55 = vld [vmem:[%s7285_s3 + $0x20] sm:$0xff] }
 0x4c3   : > { %v5453_v21 = vmul.f32 %v1472_v4, %v1469_v39  ;;  %v5455_v33 = vmul.f32 %v1473_v14, %v1468_v2 }
 0x4c4   : > { %7521 = vst [vmem:[#allocation67_spill] sm:$0xff] %v5449_v59  ;;  %1762 = vmatpush.msrb.mxu0 %v5447_v15  ;;  %1782 = vmatpush.msrb.mxu1 %v5449_v59 }
 0x4c5   : > { %7522 = vst [vmem:[#allocation68_spill] sm:$0xff] %v5455_v33 }
 0x4c6   : > { %1763 = vmatpush.msrb.mxu0 %v5453_v21  ;;  %1783 = vmatpush.msrb.mxu1 %v5455_v33 }
 0x4c7   : > { %4310 = vmatmul.msk.f32.vlgmr.msrb.gmra.mxu0 %vm996_vm13, %v1738_v11  ;;  %4311 = vmatmul.msk.f32.vlgmr.msrb.gmra.mxu1 %vm996_vm13, %v1738_v11 }
 0x53d   : > { %v1805_v4 = vpop.f32.mrf.mxu2 }
 0x53e   : > { %v1806_v14 = vadd.f32 %v1805_v4, %v1743_v13 }
 0x540   : > { %v5485_v36 = vmax.f32 %v1806_v14, 0.0 }
 0x541   : > { %v1825_v60 = vpop.f32.mrf.mxu3 }
 0x542   : > { %v1826_v11 = vadd.f32 %v1825_v60, %v1743_v13  ;;  %7525 = vst [vmem:[#allocation71_spill] sm:$0xff] %v5485_v36 }
 0x544   : > { %v1765_v62 = vpop.f32.mrf.mxu0  ;;  %v1785_v19 = vpop.f32.mrf.mxu1  ;;  %v5477_v10 = vmax.f32 %v1826_v11, 0.0  ;;  %v4319_v11 = vld [vmem:[%s7286_s4 + $0x7] ss:$8 sm:$0xf] }
 0x545   : > { %v1766_v9 = vadd.f32 %v1765_v62, %v1743_v13  ;;  %v1786_v18 = vadd.f32 %v1785_v19, %v1743_v13  ;;  %v4320_v13 = vld [vmem:[%s7286_s4 + $0x20] ss:$8 sm:$0xf]  ;;  %v2033_v14 = vperm.slane %v4319_v11, 3  ;;  %v2032_v22 = vperm.slane %v4319_v11, 2 }
 0x546   : > { %7524 = vst [vmem:[#allocation70_spill] sm:$0xff] %v5477_v10  ;;  %v2063_v62 = vperm.slane %v4320_v13, 3  ;;  %v2061_v57 = vperm.slane %v4320_v13, 1  ;;  %v2030_v16 = vperm.slane %v4319_v11, 0 }
 0x547   : > { %v5461_v31 = vmax.f32 %v1766_v9, 0.0  ;;  %v5463_v5 = vmax.f32 %v1786_v18, 0.0 }
 0x549   : > { %7523 = vst [vmem:[#allocation69_spill] sm:$0xff] %v5463_v5  ;;  %2046 = vrot.lane.b32.xlu0 %v5461_v31, %s4402_s24  ;;  %1924 = vrot.lane.b32.xlu2 %v5463_v5, %s4406_s28 }
 0x54a   : > { %2018 = vrot.lane.b32.xlu1 %v5463_v5, %s4409_s6 }
 0x551   : > { %2016 = vrot.lane.b32.xlu0 %v5461_v31, %s4409_s6  ;;  %1988 = vrot.lane.b32.xlu2 %v5463_v5, %s4408_s30 }
 0x552   : > { %1864 = vrot.lane.b32.xlu1 %v5463_v5, %s4404_s26 }
 0x559   : > { %1986 = vrot.lane.b32.xlu0 %v5461_v31, %s4408_s30  ;;  %2052 = vrot.lane.b32.xlu2 %v5477_v10, %s4402_s24 }
 0x55a   : > { %1834 = vrot.lane.b32.xlu1 %v5463_v5, %s4403_s25 }
 0x561   : > { %1956 = vrot.lane.b32.xlu0 %v5461_v31, %s4407_s29  ;;  %2022 = vrot.lane.b32.xlu2 %v5477_v10, %s4409_s6 }
 0x562   : > { %2050 = vrot.lane.b32.xlu1 %v5485_v36, %s4402_s24 }
 0x569   : > { %1992 = vrot.lane.b32.xlu2 %v5477_v10, %s4408_s30  ;;  %2048 = vrot.lane.b32.xlu0 %v5463_v5, %s4402_s24 }
 0x56a   : > { %2020 = vrot.lane.b32.xlu1 %v5485_v36, %s4409_s6 }
 0x571   : > { %1962 = vrot.lane.b32.xlu2 %v5477_v10, %s4407_s29  ;;  %1894 = vrot.lane.b32.xlu0 %v5463_v5, %s4405_s27 }
 0x572   : > { %1990 = vrot.lane.b32.xlu1 %v5485_v36, %s4408_s30 }
 0x579   : > { %1898 = vrot.lane.b32.xlu2 %v5477_v10, %s4405_s27  ;;  %1958 = vrot.lane.b32.xlu0 %v5463_v5, %s4407_s29 }
 0x57a   : > { %1960 = vrot.lane.b32.xlu1 %v5485_v36, %s4407_s29 }
 0x581   : > { %1866 = vrot.lane.b32.xlu2 %v5485_v36, %s4404_s26  ;;  %1926 = vrot.lane.b32.xlu0 %v5485_v36, %s4406_s28 }
 0x582   : > { %1928 = vrot.lane.b32.xlu1 %v5477_v10, %s4406_s28 }
 0x589   : > { %1836 = vrot.lane.b32.xlu2 %v5485_v36, %s4403_s25  ;;  %1868 = vrot.lane.b32.xlu0 %v5477_v10, %s4404_s26 }
 0x58a   : > { %1896 = vrot.lane.b32.xlu1 %v5485_v36, %s4405_s27 }
 0x591   : > { %1892 = vrot.lane.b32.xlu2 %v5461_v31, %s4405_s27  ;;  %1838 = vrot.lane.b32.xlu0 %v5477_v10, %s4403_s25 }
 0x592   : > { %1922 = vrot.lane.b32.xlu1 %v5461_v31, %s4406_s28 }
 0x599   : > { %2116 = vperm.xlu2 %4392, %v2113_v55   ;;  %1862 = vrot.lane.b32.xlu0 %v5461_v31, %s4404_s26 }
 0x59a   : > { %1832 = vrot.lane.b32.xlu1 %v5461_v31, %s4403_s25 }
 0x5a3   : > { %v5536_v61 = vpop.permute.xlu2 %1924 }
 0x5ab   : > { %v5538_v2 = vpop.permute.xlu2 %1988 }
 0x5b3   : > { %v2053_v39 = vpop.permute.xlu2 %2052 }
 0x5bb   : > { %v2047_v19 = vpop.permute.xlu0 %2046  ;;  %v2023_v4 = vpop.permute.xlu2 %2022 }
 0x5bc   : > { %v2057_v9 = vsel %vm564_vm1, %v2053_v39, %v2047_v19  ;;  %v2019_v18 = vpop.permute.xlu1 %2018 }
 0x5bd   : > { %v5545_v60 = vmul.f32 %v2063_v62, %v2057_v9  ;;  %v4318_v62 = vld [vmem:[%s7286_s4 + $0x6] ss:$8 sm:$0xf] }
 0x5be   : > { %v2003_v38 = vperm.slane %v4318_v62, 3 }
 0x5bf   : > { %7526 = vst [vmem:[#allocation72_spill] sm:$0xff] %v5545_v60  ;;  %2189 = vmatpush.msra.mxu3 %v5545_v60 }
 0x5c3   : > { %v2017_v55 = vpop.permute.xlu0 %2016  ;;  %v1993_v9 = vpop.permute.xlu2 %1992 }
 0x5c4   : > { %v2027_v23 = vsel %vm522_vm11, %v2023_v4, %v2017_v55  ;;  %v5553_v58 = vpop.permute.xlu1 %1864  ;;  %v2026_v42 = vsel %vm522_vm11, %v2017_v55, %v2019_v18 }
 0x5c5   : > { %v5555_v50 = vmul.f32 %v2033_v14, %v2027_v23  ;;  %v5570_v23 = vld [vmem:[%s7286_s4 + $0x5] ss:$8 sm:$0xf] }
 0x5c6   : > { %v1973_v14 = vperm.slane %v5570_v23, 3 }
 0x5c7   : > { %7527 = vst [vmem:[#allocation73_spill] sm:$0xff] %v5555_v50  ;;  %2190 = vmatpush.msra.mxu3 %v5555_v50  ;;  %v2062_v50 = vperm.slane %v4320_v13, 2 }
 0x5cb   : > { %v1987_v54 = vpop.permute.xlu0 %1986  ;;  %v1963_v53 = vpop.permute.xlu2 %1962 }
 0x5cc   : > { %v1997_v60 = vsel %vm480_vm10, %v1993_v9, %v1987_v54  ;;  %v5563_v30 = vpop.permute.xlu1 %1834  ;;  %v1996_v55 = vsel %vm480_vm10, %v1987_v54, %v5538_v2  ;;  %v2002_v54 = vperm.slane %v4318_v62, 2 }
 0x5cd   : > { %v5565_v28 = vmul.f32 %v2003_v38, %v1997_v60 }
 0x5cf   : > { %7528 = vst [vmem:[#allocation74_spill] sm:$0xff] %v5565_v28  ;;  %2191 = vmatpush.msra.mxu3 %v5565_v28  ;;  %v2060_v28 = vperm.slane %v4320_v13, 0 }
 0x5d3   : > { %v1957_v45 = vpop.permute.xlu0 %1956 }
 0x5d4   : > { %v1967_v24 = vsel %vm438_vm9, %v1963_v53, %v1957_v45  ;;  %v2051_v8 = vpop.permute.xlu1 %2050 }
 0x5d5   : > { %v2054_v38 = vsel %vm564_vm1, %v2051_v8, %v2053_v39  ;;  %v5578_v60 = vmul.f32 %v1973_v14, %v1967_v24  ;;  %v2031_v39 = vperm.slane %v4319_v11, 1 }
 0x5d6   : > { %v5580_v43 = vmul.f32 %v2062_v50, %v2054_v38 }
 0x5d7   : > { %7529 = vst [vmem:[#allocation75_spill] sm:$0xff] %v5578_v60  ;;  %2192 = vmatpush.msra.mxu3 %v5578_v60 }
 0x5d8   : > { %7530 = vst [vmem:[#allocation76_spill] sm:$0xff] %v5580_v43  ;;  %2169 = vmatpush.msra.mxu2 %v5580_v43 }
 0x5d9   : > { %2193 = vmatpush.msra.mxu3 %v5477_v10  ;;  %v2000_v10 = vperm.slane %v4318_v62, 0 }
 0x5db   : > { %v2049_v46 = vpop.permute.xlu0 %2048 }
 0x5dc   : > { %v2021_v32 = vpop.permute.xlu1 %2020  ;;  %v2055_v24 = vsel %vm564_vm1, %v2049_v46, %v2051_v8  ;;  %v2056_v50 = vsel %vm564_vm1, %v2047_v19, %v2049_v46  ;;  %v5605_v46 = vmul.f32 %v2030_v16, %v2026_v42 }
 0x5dd   : > { %v2024_v14 = vsel %vm522_vm11, %v2021_v32, %v2023_v4  ;;  %v2025_v13 = vsel %vm522_vm11, %v2019_v18, %v2021_v32  ;;  %v5595_v38 = vmul.f32 %v2060_v28, %v2056_v50  ;;  %v5600_v60 = vmul.f32 %v2061_v57, %v2055_v24 }
 0x5de   : > { %v5602_v8 = vmul.f32 %v2032_v22, %v2024_v14  ;;  %v5609_v32 = vmul.f32 %v2031_v39, %v2025_v13  ;;  %v5612_v28 = vmul.f32 %v2000_v10, %v1996_v55  ;;  %v2001_v57 = vperm.slane %v4318_v62, 1  ;;  %v5615_v22 = vpop.permute.xlu2 %1898 }
 0x5df   : > { %7531 = vst [vmem:[#allocation77_spill] sm:$0xff] %v5600_v60  ;;  %2129 = vmatpush.msra.mxu0 %v5595_v38  ;;  %2149 = vmatpush.msra.mxu1 %v5600_v60  ;;  %v1972_v4 = vperm.slane %v5570_v23, 2  ;;  %v1970_v62 = vperm.slane %v5570_v23, 0  ;;  %v1971_v24 = vperm.slane %v5570_v23, 1 }
 0x5e0   : > { %7532 = vst [vmem:[#allocation78_spill] sm:$0xff] %v5602_v8  ;;  %2170 = vmatpush.msra.mxu2 %v5602_v8  ;;  %v4316_v23 = vld [vmem:[%s7286_s4 + $0x3] ss:$8 sm:$0xf] }
 0x5e1   : > { %7533 = vst [vmem:[#allocation79_spill] sm:$0xff] %v5609_v32  ;;  %2130 = vmatpush.msra.mxu0 %v5605_v46  ;;  %2150 = vmatpush.msra.mxu1 %v5609_v32 }
 0x5e3   : > { %2131 = vmatpush.msra.mxu0 %v5612_v28  ;;  %v5618_v42 = vpop.permute.xlu0 %1894 }
 0x5e4   : > { %v1991_v16 = vpop.permute.xlu1 %1990 }
 0x5e5   : > { %v1994_v19 = vsel %vm480_vm10, %v1991_v16, %v1993_v9  ;;  %v1995_v18 = vsel %vm480_vm10, %v5538_v2, %v1991_v16 }
 0x5e6   : > { %v5625_v10 = vmul.f32 %v2001_v57, %v1995_v18  ;;  %v5627_v11 = vmul.f32 %v2002_v54, %v1994_v19  ;;  %v1867_v2 = vpop.permute.xlu2 %1866 }
 0x5e8   : > { %7534 = vst [vmem:[#allocation80_spill] sm:$0xff] %v5625_v10  ;;  %2151 = vmatpush.msra.mxu1 %v5625_v10  ;;  %2171 = vmatpush.msra.mxu2 %v5627_v11 }
 0x5e9   : > { %7535 = vst [vmem:[#allocation81_spill] sm:$0xff] %v5627_v11 }
 0x5eb   : > { %v1959_v50 = vpop.permute.xlu0 %1958 }
 0x5ec   : > { %v1961_v9 = vpop.permute.xlu1 %1960  ;;  %v1966_v39 = vsel %vm438_vm9, %v1957_v45, %v1959_v50  ;;  %v1938_v45 = vperm.slane %v4316_v23, 2 }
 0x5ed   : > { %v1964_v14 = vsel %vm438_vm9, %v1961_v9, %v1963_v53  ;;  %v1965_v13 = vsel %vm438_vm9, %v1959_v50, %v1961_v9  ;;  %v5642_v57 = vmul.f32 %v1970_v62, %v1966_v39  ;;  %v1939_v53 = vperm.slane %v4316_v23, 3  ;;  %v5669_v9 = vld [vmem:[%s7286_s4 + $0x1] ss:$8 sm:$0xf] }
 0x5ee   : > { %v5640_v55 = vmul.f32 %v1972_v4, %v1964_v14  ;;  %v5644_v54 = vmul.f32 %v1971_v24, %v1965_v13  ;;  %v1837_v50 = vpop.permute.xlu2 %1836  ;;  %v4315_v39 = vld [vmem:[%s7286_s4 + $0x2] ss:$8 sm:$0xf] }
 0x5ef   : > { %2132 = vmatpush.msra.mxu0 %v5642_v57  ;;  %v1908_v14 = vperm.slane %v4315_v39, 2  ;;  %v1909_v13 = vperm.slane %v4315_v39, 3  ;;  %v1841_v33 = vsel %vm262_vm2, %v5563_v30, %v1837_v50 }
 0x5f0   : > { %7536 = vst [vmem:[#allocation82_spill] sm:$0xff] %v5640_v55  ;;  %2152 = vmatpush.msra.mxu1 %v5644_v54  ;;  %2172 = vmatpush.msra.mxu2 %v5640_v55 }
 0x5f1   : > { %7537 = vst [vmem:[#allocation83_spill] sm:$0xff] %v5644_v54  ;;  %2133 = vmatpush.msra.mxu0 %v5461_v31 }
 0x5f2   : > { %2153 = vmatpush.msra.mxu1 %v5463_v5  ;;  %2173 = vmatpush.msra.mxu2 %v5485_v36 }
 0x5f3   : > { %v1927_v16 = vpop.permute.xlu0 %1926 }
 0x5f4   : > { %v1929_v19 = vpop.permute.xlu1 %1928  ;;  %v1931_v18 = vsel %vm393_vm8, %v5536_v61, %v1927_v16 }
 0x5f5   : > { %v1930_v4 = vsel %vm393_vm8, %v1927_v16, %v1929_v19  ;;  %v5660_v62 = vmul.f32 %v1938_v45, %v1931_v18  ;;  %v1844_v45 = vld [vmem:[%s7286_s4] ss:$8 sm:$0xf]  ;;  %v1878_v16 = vperm.slane %v5669_v9, 2 }
 0x5f6   : > { %v5662_v24 = vmul.f32 %v1939_v53, %v1930_v4  ;;  %v1879_v4 = vperm.slane %v5669_v9, 3  ;;  %v1848_v11 = vperm.slane %v1844_v45, 2  ;;  %v1849_v7 = vperm.slane %v1844_v45, 3 }
 0x5f7   : > { %7538 = vst [vmem:[#allocation84_spill] sm:$0xff] %v5660_v62  ;;  %2174 = vmatpush.msra.mxu2 %v5660_v62 }
 0x5f8   : > { %7539 = vst [vmem:[#allocation85_spill] sm:$0xff] %v5662_v24  ;;  %2194 = vmatpush.msra.mxu3 %v5662_v24  ;;  %v1871_v24 = vsel %vm309_vm6, %v5553_v58, %v1867_v2 }
 0x5f9   : > { %v5697_v63 = vmul.f32 %v1878_v16, %v1871_v24  ;;  %v2112_v24 = vld [vmem:[%s7284_s2 + $0x80] sm:$0xff] }
 0x5fb   : > { %v1869_v53 = vpop.permute.xlu0 %1868  ;;  %7542 = vst [vmem:[#allocation88_spill] sm:$0xff] %v5697_v63 }
 0x5fc   : > { %v1897_v18 = vpop.permute.xlu1 %1896  ;;  %v1870_v55 = vsel %vm309_vm6, %v1867_v2, %v1869_v53  ;;  %v5703_v2 = vmul.f32 %v1848_v11, %v1841_v33 }
 0x5fd   : > { %v1900_v62 = vsel %vm351_vm7, %v1897_v18, %v5615_v22  ;;  %v1901_v36 = vsel %vm351_vm7, %v5618_v42, %v1897_v18  ;;  %v5699_v59 = vmul.f32 %v1879_v4, %v1870_v55  ;;  %v1893_v18 = vpop.permute.xlu2 %1892 }
 0x5fe   : > { %v5690_v8 = vmul.f32 %v1908_v14, %v1901_v36  ;;  %v5692_v43 = vmul.f32 %v1909_v13, %v1900_v62  ;;  %7544 = vst [vmem:[#allocation90_spill] sm:$0xff] %v5703_v2  ;;  %v1936_v36 = vperm.slane %v4316_v23, 0  ;;  %v1937_v62 = vperm.slane %v4316_v23, 1 }
 0x5ff   : > { %7543 = vst [vmem:[#allocation89_spill] sm:$0xff] %v5699_v59  ;;  %v1906_v14 = vperm.slane %v4315_v39, 0  ;;  %v1907_v13 = vperm.slane %v4315_v39, 1  ;;  %v1902_v16 = vsel %vm351_vm7, %v1893_v18, %v5618_v42  ;;  %v1903_v11 = vsel %vm351_vm7, %v5615_v22, %v1893_v18 }
 0x600   : > { %7540 = vst [vmem:[#allocation86_spill] sm:$0xff] %v5690_v8  ;;  %2175 = vmatpush.msra.mxu2 %v5690_v8  ;;  %2195 = vmatpush.msra.mxu3 %v5692_v43  ;;  %v1847_v18 = vperm.slane %v1844_v45, 1 }
 0x601   : > { %7541 = vst [vmem:[#allocation87_spill] sm:$0xff] %v5692_v43  ;;  %v5734_v22 = vmul.f32 %v1907_v13, %v1902_v16 }
 0x602   : > { %2176 = vmatpush.msra.mxu2 %v5697_v63  ;;  %2196 = vmatpush.msra.mxu3 %v5699_v59 }
 0x603   : > { %v1839_v55 = vpop.permute.xlu0 %1838  ;;  %7547 = vst [vmem:[#allocation93_spill] sm:$0xff] %v5734_v22 }
 0x604   : > { %v1923_v4 = vpop.permute.xlu1 %1922  ;;  %2177 = vmatpush.msra.mxu2 %v5703_v2  ;;  %v1840_v33 = vsel %vm262_vm2, %v1837_v50, %v1839_v55  ;;  %v5732_v50 = vmul.f32 %v1906_v14, %v1903_v11 }
 0x605   : > { %v1932_v23 = vsel %vm393_vm8, %v1923_v4, %v5536_v61  ;;  %v1933_v39 = vsel %vm393_vm8, %v1929_v19, %v1923_v4  ;;  %v5724_v59 = vmul.f32 %v1849_v7, %v1840_v33  ;;  %4323 = vmatmul.msk.f32.vlgmr.msra.gmra.mxu2 %vm996_vm13, %v2112_v24  ;;  %v1876_v7 = vperm.slane %v5669_v9, 0 }
 0x606   : > { %v5727_v42 = vmul.f32 %v1936_v36, %v1933_v39  ;;  %v5729_v43 = vmul.f32 %v1937_v62, %v1932_v23  ;;  %v1877_v61 = vperm.slane %v5669_v9, 1  ;;  %v1846_v19 = vperm.slane %v1844_v45, 0 }
 0x607   : > { %7545 = vst [vmem:[#allocation91_spill] sm:$0xff] %v5724_v59  ;;  %2197 = vmatpush.msra.mxu3 %v5724_v59 }
 0x608   : > { %7546 = vst [vmem:[#allocation92_spill] sm:$0xff] %v5729_v43  ;;  %2134 = vmatpush.msra.mxu0 %v5727_v42  ;;  %2154 = vmatpush.msra.mxu1 %v5729_v43 }
 0x609   : > { %4324 = vmatmul.msk.f32.vlgmr.msra.gmra.mxu3 %vm996_vm13, %v2112_v24 }
 0x60a   : > { %2135 = vmatpush.msra.mxu0 %v5732_v50  ;;  %2155 = vmatpush.msra.mxu1 %v5734_v22 }
 0x60b   : > { %v1863_v36 = vpop.permute.xlu0 %1862 }
 0x60c   : > { %v1833_v62 = vpop.permute.xlu1 %1832  ;;  %v1872_v14 = vsel %vm309_vm6, %v1863_v36, %v5553_v58  ;;  %v1873_v13 = vsel %vm309_vm6, %v1869_v53, %v1863_v36 }
 0x60d   : > { %v1842_v16 = vsel %vm262_vm2, %v1833_v62, %v5563_v30  ;;  %v1843_v9 = vsel %vm262_vm2, %v1839_v55, %v1833_v62  ;;  %v5753_v4 = vmul.f32 %v1876_v7, %v1873_v13  ;;  %v5755_v33 = vmul.f32 %v1877_v61, %v1872_v14  ;;  %v2117_v30 = vpop.permute.xlu2 %2116  ;;  %v2487_v14 = vld [vmem:[%s7285_s3 + $0x28] sm:$0xff] }
 0x60e   : > { %v5757_v45 = vmul.f32 %v1846_v19, %v1843_v9  ;;  %v5759_v11 = vmul.f32 %v1847_v18, %v1842_v16 }
 0x60f   : > { %7548 = vst [vmem:[#allocation94_spill] sm:$0xff] %v5755_v33  ;;  %2136 = vmatpush.msra.mxu0 %v5753_v4  ;;  %2156 = vmatpush.msra.mxu1 %v5755_v33 }
 0x610   : > { %7549 = vst [vmem:[#allocation95_spill] sm:$0xff] %v5759_v11 }
 0x611   : > { %2137 = vmatpush.msra.mxu0 %v5757_v45  ;;  %2157 = vmatpush.msra.mxu1 %v5759_v11 }
 0x612   : > { %4321 = vmatmul.msk.f32.vlgmr.msra.gmra.mxu0 %vm996_vm13, %v2112_v24  ;;  %4322 = vmatmul.msk.f32.vlgmr.msra.gmra.mxu1 %vm996_vm13, %v2112_v24 }
 0x688   : > { %v2179_v18 = vpop.f32.mrf.mxu2 }
 0x689   : > { %v2180_v36 = vadd.f32 %v2179_v18, %v2117_v30 }
 0x68b   : > { %v5791_v62 = vmax.f32 %v2180_v36, 0.0 }
 0x68c   : > { %v2199_v61 = vpop.f32.mrf.mxu3 }
 0x68d   : > { %v2200_v24 = vadd.f32 %v2199_v61, %v2117_v30  ;;  %7552 = vst [vmem:[#allocation98_spill] sm:$0xff] %v5791_v62 }
 0x68f   : > { %v2139_v58 = vpop.f32.mrf.mxu0  ;;  %v2159_v53 = vpop.f32.mrf.mxu1  ;;  %v5783_v19 = vmax.f32 %v2200_v24, 0.0  ;;  %v4330_v24 = vld [vmem:[%s7286_s4 + $0x7] ss:$8 sm:$0xf] }
 0x690   : > { %v2140_v55 = vadd.f32 %v2139_v58, %v2117_v30  ;;  %v2160_v23 = vadd.f32 %v2159_v53, %v2117_v30  ;;  %v4331_v30 = vld [vmem:[%s7286_s4 + $0x20] ss:$8 sm:$0xf]  ;;  %v2407_v36 = vperm.slane %v4330_v24, 3  ;;  %v2406_v22 = vperm.slane %v4330_v24, 2 }
 0x691   : > { %7551 = vst [vmem:[#allocation97_spill] sm:$0xff] %v5783_v19  ;;  %v2437_v58 = vperm.slane %v4331_v30, 3  ;;  %v2435_v43 = vperm.slane %v4331_v30, 1  ;;  %v2404_v5 = vperm.slane %v4330_v24, 0 }
 0x692   : > { %v5767_v39 = vmax.f32 %v2140_v55, 0.0  ;;  %v5769_v7 = vmax.f32 %v2160_v23, 0.0 }
 0x694   : > { %7550 = vst [vmem:[#allocation96_spill] sm:$0xff] %v5769_v7  ;;  %2420 = vrot.lane.b32.xlu0 %v5767_v39, %s4402_s24  ;;  %2298 = vrot.lane.b32.xlu2 %v5769_v7, %s4406_s28 }
 0x695   : > { %2392 = vrot.lane.b32.xlu1 %v5769_v7, %s4409_s6 }
 0x69c   : > { %2390 = vrot.lane.b32.xlu0 %v5767_v39, %s4409_s6  ;;  %2362 = vrot.lane.b32.xlu2 %v5769_v7, %s4408_s30 }
 0x69d   : > { %2238 = vrot.lane.b32.xlu1 %v5769_v7, %s4404_s26 }
 0x6a4   : > { %2360 = vrot.lane.b32.xlu0 %v5767_v39, %s4408_s30  ;;  %2426 = vrot.lane.b32.xlu2 %v5783_v19, %s4402_s24 }
 0x6a5   : > { %2208 = vrot.lane.b32.xlu1 %v5769_v7, %s4403_s25 }
 0x6ac   : > { %2330 = vrot.lane.b32.xlu0 %v5767_v39, %s4407_s29  ;;  %2396 = vrot.lane.b32.xlu2 %v5783_v19, %s4409_s6 }
 0x6ad   : > { %2424 = vrot.lane.b32.xlu1 %v5791_v62, %s4402_s24 }
 0x6b4   : > { %2366 = vrot.lane.b32.xlu2 %v5783_v19, %s4408_s30  ;;  %2422 = vrot.lane.b32.xlu0 %v5769_v7, %s4402_s24 }
 0x6b5   : > { %2394 = vrot.lane.b32.xlu1 %v5791_v62, %s4409_s6 }
 0x6bc   : > { %2336 = vrot.lane.b32.xlu2 %v5783_v19, %s4407_s29  ;;  %2268 = vrot.lane.b32.xlu0 %v5769_v7, %s4405_s27 }
 0x6bd   : > { %2364 = vrot.lane.b32.xlu1 %v5791_v62, %s4408_s30 }
 0x6c4   : > { %2272 = vrot.lane.b32.xlu2 %v5783_v19, %s4405_s27  ;;  %2332 = vrot.lane.b32.xlu0 %v5769_v7, %s4407_s29 }
 0x6c5   : > { %2334 = vrot.lane.b32.xlu1 %v5791_v62, %s4407_s29 }
 0x6cc   : > { %2240 = vrot.lane.b32.xlu2 %v5791_v62, %s4404_s26  ;;  %2300 = vrot.lane.b32.xlu0 %v5791_v62, %s4406_s28 }
 0x6cd   : > { %2302 = vrot.lane.b32.xlu1 %v5783_v19, %s4406_s28 }
 0x6d4   : > { %2210 = vrot.lane.b32.xlu2 %v5791_v62, %s4403_s25  ;;  %2242 = vrot.lane.b32.xlu0 %v5783_v19, %s4404_s26 }
 0x6d5   : > { %2270 = vrot.lane.b32.xlu1 %v5791_v62, %s4405_s27 }
 0x6dc   : > { %2266 = vrot.lane.b32.xlu2 %v5767_v39, %s4405_s27  ;;  %2212 = vrot.lane.b32.xlu0 %v5783_v19, %s4403_s25 }
 0x6dd   : > { %2296 = vrot.lane.b32.xlu1 %v5767_v39, %s4406_s28 }
 0x6e4   : > { %2490 = vperm.xlu2 %4392, %v2487_v14   ;;  %2236 = vrot.lane.b32.xlu0 %v5767_v39, %s4404_s26 }
 0x6e5   : > { %2206 = vrot.lane.b32.xlu1 %v5767_v39, %s4403_s25 }
 0x6ee   : > { %v5842_v13 = vpop.permute.xlu2 %2298 }
 0x6f6   : > { %v5844_v16 = vpop.permute.xlu2 %2362 }
 0x6fe   : > { %v2427_v9 = vpop.permute.xlu2 %2426 }
 0x706   : > { %v2421_v53 = vpop.permute.xlu0 %2420  ;;  %v2397_v18 = vpop.permute.xlu2 %2396 }
 0x707   : > { %v2431_v55 = vsel %vm564_vm1, %v2427_v9, %v2421_v53  ;;  %v2393_v23 = vpop.permute.xlu1 %2392 }
 0x708   : > { %v5851_v61 = vmul.f32 %v2437_v58, %v2431_v55  ;;  %v4329_v58 = vld [vmem:[%s7286_s4 + $0x6] ss:$8 sm:$0xf] }
 0x709   : > { %v2377_v8 = vperm.slane %v4329_v58, 3 }
 0x70a   : > { %7553 = vst [vmem:[#allocation99_spill] sm:$0xff] %v5851_v61  ;;  %2563 = vmatpush.msrb.mxu3 %v5851_v61 }
 0x70e   : > { %v2391_v14 = vpop.permute.xlu0 %2390  ;;  %v2367_v55 = vpop.permute.xlu2 %2366 }
 0x70f   : > { %v2401_v59 = vsel %vm522_vm11, %v2397_v18, %v2391_v14  ;;  %v5859_v2 = vpop.permute.xlu1 %2238 }
 0x710   : > { %v5861_v63 = vmul.f32 %v2407_v36, %v2401_v59  ;;  %v5876_v59 = vld [vmem:[%s7286_s4 + $0x5] ss:$8 sm:$0xf] }
 0x711   : > { %v2347_v36 = vperm.slane %v5876_v59, 3 }
 0x712   : > { %7554 = vst [vmem:[#allocation100_spill] sm:$0xff] %v5861_v63  ;;  %2564 = vmatpush.msrb.mxu3 %v5861_v63  ;;  %v2436_v63 = vperm.slane %v4331_v30, 2 }
 0x716   : > { %v2361_v35 = vpop.permute.xlu0 %2360  ;;  %v2337_v37 = vpop.permute.xlu2 %2336 }
 0x717   : > { %v2371_v61 = vsel %vm480_vm10, %v2367_v55, %v2361_v35  ;;  %v5869_v1 = vpop.permute.xlu1 %2208 }
 0x718   : > { %v5871_v47 = vmul.f32 %v2377_v8, %v2371_v61 }
 0x71a   : > { %7555 = vst [vmem:[#allocation101_spill] sm:$0xff] %v5871_v47  ;;  %2565 = vmatpush.msrb.mxu3 %v5871_v47  ;;  %v2434_v47 = vperm.slane %v4331_v30, 0 }
 0x71e   : > { %v2331_v20 = vpop.permute.xlu0 %2330 }
 0x71f   : > { %v2341_v27 = vsel %vm438_vm9, %v2337_v37, %v2331_v20  ;;  %v2425_v11 = vpop.permute.xlu1 %2424 }
 0x720   : > { %v5882_v33 = vmul.f32 %v2347_v36, %v2341_v27  ;;  %v2428_v8 = vsel %vm564_vm1, %v2425_v11, %v2427_v9  ;;  %v2400_v27 = vsel %vm522_vm11, %v2391_v14, %v2393_v23  ;;  %v2405_v36 = vperm.slane %v4330_v24, 1 }
 0x721   : > { %v5886_v61 = vmul.f32 %v2436_v63, %v2428_v8  ;;  %v2374_v8 = vperm.slane %v4329_v58, 0  ;;  %v2370_v24 = vsel %vm480_vm10, %v2361_v35, %v5844_v16  ;;  %v2375_v35 = vperm.slane %v4329_v58, 1 }
 0x722   : > { %7556 = vst [vmem:[#allocation102_spill] sm:$0xff] %v5882_v33  ;;  %2566 = vmatpush.msrb.mxu3 %v5882_v33 }
 0x723   : > { %7557 = vst [vmem:[#allocation103_spill] sm:$0xff] %v5886_v61  ;;  %2543 = vmatpush.msrb.mxu2 %v5886_v61 }
 0x724   : > { %2567 = vmatpush.msrb.mxu3 %v5783_v19 }
 0x726   : > { %v2423_v54 = vpop.permute.xlu0 %2422 }
 0x727   : > { %v2395_v10 = vpop.permute.xlu1 %2394  ;;  %v2429_v63 = vsel %vm564_vm1, %v2423_v54, %v2425_v11  ;;  %v2430_v9 = vsel %vm564_vm1, %v2421_v53, %v2423_v54  ;;  %v5910_v11 = vmul.f32 %v2404_v5, %v2400_v27  ;;  %v2344_v27 = vperm.slane %v5876_v59, 0 }
 0x728   : > { %v2398_v33 = vsel %vm522_vm11, %v2395_v10, %v2397_v18  ;;  %v2399_v30 = vsel %vm522_vm11, %v2393_v23, %v2395_v10  ;;  %v5901_v19 = vmul.f32 %v2434_v47, %v2430_v9  ;;  %v5908_v61 = vmul.f32 %v2435_v43, %v2429_v63  ;;  %v5921_v43 = vpop.permute.xlu2 %2272 }
 0x729   : > { %v5906_v14 = vmul.f32 %v2406_v22, %v2398_v33  ;;  %7561 = vst [vmem:[#allocation107_spill] sm:$0xff] %v5910_v11  ;;  %v5913_v54 = vmul.f32 %v2405_v36, %v2399_v30  ;;  %v5917_v47 = vmul.f32 %v2374_v8, %v2370_v24  ;;  %v2376_v10 = vperm.slane %v4329_v58, 2 }
 0x72a   : > { %7558 = vst [vmem:[#allocation104_spill] sm:$0xff] %v5901_v19  ;;  %2503 = vmatpush.msrb.mxu0 %v5901_v19  ;;  %2523 = vmatpush.msrb.mxu1 %v5908_v61  ;;  %v2346_v58 = vperm.slane %v5876_v59, 2  ;;  %v2345_v36 = vperm.slane %v5876_v59, 1  ;;  %v4327_v59 = vld [vmem:[%s7286_s4 + $0x3] ss:$8 sm:$0xf] }
 0x72b   : > { %7559 = vst [vmem:[#allocation105_spill] sm:$0xff] %v5906_v14  ;;  %2544 = vmatpush.msrb.mxu2 %v5906_v14 }
 0x72c   : > { %7560 = vst [vmem:[#allocation106_spill] sm:$0xff] %v5908_v61  ;;  %2504 = vmatpush.msrb.mxu0 %v5910_v11  ;;  %2524 = vmatpush.msrb.mxu1 %v5913_v54 }
 0x72d   : > { %7562 = vst [vmem:[#allocation108_spill] sm:$0xff] %v5913_v54 }
 0x72e   : > { %7563 = vst [vmem:[#allocation109_spill] sm:$0xff] %v5917_v47  ;;  %2505 = vmatpush.msrb.mxu0 %v5917_v47  ;;  %v5924_v5 = vpop.permute.xlu0 %2268 }
 0x72f   : > { %v2365_v22 = vpop.permute.xlu1 %2364 }
 0x730   : > { %v2368_v33 = vsel %vm480_vm10, %v2365_v22, %v2367_v55  ;;  %v2369_v53 = vsel %vm480_vm10, %v5844_v16, %v2365_v22  ;;  %v2241_v16 = vpop.permute.xlu2 %2240 }
 0x731   : > { %v5931_v23 = vmul.f32 %v2375_v35, %v2369_v53  ;;  %v5933_v18 = vmul.f32 %v2376_v10, %v2368_v33 }
 0x733   : > { %7564 = vst [vmem:[#allocation110_spill] sm:$0xff] %v5931_v23  ;;  %2525 = vmatpush.msrb.mxu1 %v5931_v23  ;;  %2545 = vmatpush.msrb.mxu2 %v5933_v18 }
 0x734   : > { %7565 = vst [vmem:[#allocation111_spill] sm:$0xff] %v5933_v18 }
 0x736   : > { %v2333_v63 = vpop.permute.xlu0 %2332 }
 0x737   : > { %v2335_v55 = vpop.permute.xlu1 %2334  ;;  %v2340_v9 = vsel %vm438_vm9, %v2331_v20, %v2333_v63  ;;  %v2312_v20 = vperm.slane %v4327_v59, 2 }
 0x738   : > { %v2338_v8 = vsel %vm438_vm9, %v2335_v55, %v2337_v37  ;;  %v2339_v30 = vsel %vm438_vm9, %v2333_v63, %v2335_v55  ;;  %v5948_v35 = vmul.f32 %v2344_v27, %v2340_v9  ;;  %v2313_v37 = vperm.slane %v4327_v59, 3  ;;  %v2211_v63 = vpop.permute.xlu2 %2210  ;;  %v5975_v55 = vld [vmem:[%s7286_s4 + $0x1] ss:$8 sm:$0xf] }
 0x739   : > { %v5946_v24 = vmul.f32 %v2346_v58, %v2338_v8  ;;  %v5950_v10 = vmul.f32 %v2345_v36, %v2339_v30  ;;  %v4326_v9 = vld [vmem:[%s7286_s4 + $0x2] ss:$8 sm:$0xf]  ;;  %v2215_v23 = vsel %vm262_vm2, %v5869_v1, %v2211_v63 }
 0x73a   : > { %7567 = vst [vmem:[#allocation113_spill] sm:$0xff] %v5948_v35  ;;  %2506 = vmatpush.msrb.mxu0 %v5948_v35  ;;  %v2282_v8 = vperm.slane %v4326_v9, 2  ;;  %v2283_v30 = vperm.slane %v4326_v9, 3 }
 0x73b   : > { %7566 = vst [vmem:[#allocation112_spill] sm:$0xff] %v5946_v24  ;;  %2526 = vmatpush.msrb.mxu1 %v5950_v10  ;;  %2546 = vmatpush.msrb.mxu2 %v5946_v24 }
 0x73c   : > { %7568 = vst [vmem:[#allocation114_spill] sm:$0xff] %v5950_v10  ;;  %2507 = vmatpush.msrb.mxu0 %v5767_v39 }
 0x73d   : > { %2527 = vmatpush.msrb.mxu1 %v5769_v7  ;;  %2547 = vmatpush.msrb.mxu2 %v5791_v62 }
 0x73e   : > { %v2301_v22 = vpop.permute.xlu0 %2300 }
 0x73f   : > { %v2303_v33 = vpop.permute.xlu1 %2302  ;;  %v2305_v53 = vsel %vm393_vm8, %v5842_v13, %v2301_v22 }
 0x740   : > { %v2304_v58 = vsel %vm393_vm8, %v2301_v22, %v2303_v33  ;;  %v5966_v27 = vmul.f32 %v2312_v20, %v2305_v53  ;;  %v2218_v20 = vld [vmem:[%s7286_s4] ss:$8 sm:$0xf]  ;;  %v2252_v22 = vperm.slane %v5975_v55, 2 }
 0x741   : > { %v5968_v36 = vmul.f32 %v2313_v37, %v2304_v58  ;;  %v2253_v58 = vperm.slane %v5975_v55, 3  ;;  %v2222_v18 = vperm.slane %v2218_v20, 2  ;;  %v2223_v32 = vperm.slane %v2218_v20, 3 }
 0x742   : > { %7569 = vst [vmem:[#allocation115_spill] sm:$0xff] %v5966_v27  ;;  %2548 = vmatpush.msrb.mxu2 %v5966_v27 }
 0x743   : > { %7570 = vst [vmem:[#allocation116_spill] sm:$0xff] %v5968_v36  ;;  %2568 = vmatpush.msrb.mxu3 %v5968_v36  ;;  %v2245_v36 = vsel %vm309_vm6, %v5859_v2, %v2241_v16 }
 0x744   : > { %v6003_v54 = vmul.f32 %v2252_v22, %v2245_v36  ;;  %v2486_v36 = vld [vmem:[%s7284_s2 + $0xa0] sm:$0xff] }
 0x746   : > { %v2243_v37 = vpop.permute.xlu0 %2242  ;;  %7573 = vst [vmem:[#allocation119_spill] sm:$0xff] %v6003_v54 }
 0x747   : > { %v2271_v53 = vpop.permute.xlu1 %2270  ;;  %v2244_v24 = vsel %vm309_vm6, %v2241_v16, %v2243_v37  ;;  %v6009_v16 = vmul.f32 %v2222_v18, %v2215_v23 }
 0x748   : > { %v2274_v27 = vsel %vm351_vm7, %v2271_v53, %v5921_v43  ;;  %v2275_v62 = vsel %vm351_vm7, %v5924_v5, %v2271_v53  ;;  %v6005_v61 = vmul.f32 %v2253_v58, %v2244_v24  ;;  %v2267_v53 = vpop.permute.xlu2 %2266 }
 0x749   : > { %v5996_v14 = vmul.f32 %v2282_v8, %v2275_v62  ;;  %v5998_v10 = vmul.f32 %v2283_v30, %v2274_v27  ;;  %7575 = vst [vmem:[#allocation121_spill] sm:$0xff] %v6009_v16  ;;  %v2310_v62 = vperm.slane %v4327_v59, 0  ;;  %v2311_v27 = vperm.slane %v4327_v59, 1 }
 0x74a   : > { %7574 = vst [vmem:[#allocation120_spill] sm:$0xff] %v6005_v61  ;;  %v2280_v8 = vperm.slane %v4326_v9, 0  ;;  %v2281_v30 = vperm.slane %v4326_v9, 1  ;;  %v2276_v22 = vsel %vm351_vm7, %v2267_v53, %v5924_v5  ;;  %v2277_v18 = vsel %vm351_vm7, %v5921_v43, %v2267_v53 }
 0x74b   : > { %7571 = vst [vmem:[#allocation117_spill] sm:$0xff] %v5996_v14  ;;  %2549 = vmatpush.msrb.mxu2 %v5996_v14  ;;  %2569 = vmatpush.msrb.mxu3 %v5998_v10  ;;  %v2221_v53 = vperm.slane %v2218_v20, 1 }
 0x74c   : > { %7572 = vst [vmem:[#allocation118_spill] sm:$0xff] %v5998_v10  ;;  %v6040_v43 = vmul.f32 %v2281_v30, %v2276_v22 }
 0x74d   : > { %2550 = vmatpush.msrb.mxu2 %v6003_v54  ;;  %2570 = vmatpush.msrb.mxu3 %v6005_v61 }
 0x74e   : > { %v2213_v24 = vpop.permute.xlu0 %2212  ;;  %7578 = vst [vmem:[#allocation124_spill] sm:$0xff] %v6040_v43 }
 0x74f   : > { %v2297_v58 = vpop.permute.xlu1 %2296  ;;  %2551 = vmatpush.msrb.mxu2 %v6009_v16  ;;  %v2214_v23 = vsel %vm262_vm2, %v2211_v63, %v2213_v24  ;;  %v6038_v63 = vmul.f32 %v2280_v8, %v2277_v18 }
 0x750   : > { %v2306_v59 = vsel %vm393_vm8, %v2297_v58, %v5842_v13  ;;  %v2307_v9 = vsel %vm393_vm8, %v2303_v33, %v2297_v58  ;;  %v6030_v61 = vmul.f32 %v2223_v32, %v2214_v23  ;;  %4334 = vmatmul.msk.f32.vlgmr.msrb.gmra.mxu2 %vm996_vm13, %v2486_v36  ;;  %v2250_v32 = vperm.slane %v5975_v55, 0 }
 0x751   : > { %v6033_v5 = vmul.f32 %v2310_v62, %v2307_v9  ;;  %v6035_v10 = vmul.f32 %v2311_v27, %v2306_v59  ;;  %v2251_v13 = vperm.slane %v5975_v55, 1  ;;  %v2220_v33 = vperm.slane %v2218_v20, 0 }
 0x752   : > { %7576 = vst [vmem:[#allocation122_spill] sm:$0xff] %v6030_v61  ;;  %2571 = vmatpush.msrb.mxu3 %v6030_v61 }
 0x753   : > { %7577 = vst [vmem:[#allocation123_spill] sm:$0xff] %v6035_v10  ;;  %2508 = vmatpush.msrb.mxu0 %v6033_v5  ;;  %2528 = vmatpush.msrb.mxu1 %v6035_v10 }
 0x754   : > { %4335 = vmatmul.msk.f32.vlgmr.msrb.gmra.mxu3 %vm996_vm13, %v2486_v36 }
 0x755   : > { %2509 = vmatpush.msrb.mxu0 %v6038_v63  ;;  %2529 = vmatpush.msrb.mxu1 %v6040_v43 }
 0x756   : > { %v2237_v62 = vpop.permute.xlu0 %2236 }
 0x757   : > { %v2207_v27 = vpop.permute.xlu1 %2206  ;;  %v2246_v8 = vsel %vm309_vm6, %v2237_v62, %v5859_v2  ;;  %v2247_v30 = vsel %vm309_vm6, %v2243_v37, %v2237_v62 }
 0x758   : > { %v2216_v22 = vsel %vm262_vm2, %v2207_v27, %v5869_v1  ;;  %v2217_v55 = vsel %vm262_vm2, %v2213_v24, %v2207_v27  ;;  %v6059_v58 = vmul.f32 %v2250_v32, %v2247_v30  ;;  %v6061_v23 = vmul.f32 %v2251_v13, %v2246_v8  ;;  %v2491_v1 = vpop.permute.xlu2 %2490  ;;  %v2861_v8 = vld [vmem:[%s7285_s3 + $0x30] sm:$0xff] }
 0x759   : > { %v6063_v20 = vmul.f32 %v2220_v33, %v2217_v55  ;;  %v6065_v18 = vmul.f32 %v2221_v53, %v2216_v22 }
 0x75a   : > { %7579 = vst [vmem:[#allocation125_spill] sm:$0xff] %v6061_v23  ;;  %2510 = vmatpush.msrb.mxu0 %v6059_v58  ;;  %2530 = vmatpush.msrb.mxu1 %v6061_v23 }
 0x75b   : > { %7580 = vst [vmem:[#allocation126_spill] sm:$0xff] %v6065_v18 }
 0x75c   : > { %2511 = vmatpush.msrb.mxu0 %v6063_v20  ;;  %2531 = vmatpush.msrb.mxu1 %v6065_v18 }
 0x75d   : > { %4332 = vmatmul.msk.f32.vlgmr.msrb.gmra.mxu0 %vm996_vm13, %v2486_v36  ;;  %4333 = vmatmul.msk.f32.vlgmr.msrb.gmra.mxu1 %vm996_vm13, %v2486_v36 }
 0x7d3   : > { %v2553_v53 = vpop.f32.mrf.mxu2 }
 0x7d4   : > { %v2554_v62 = vadd.f32 %v2553_v53, %v2491_v1 }
 0x7d6   : > { %v6097_v27 = vmax.f32 %v2554_v62, 0.0 }
 0x7d7   : > { %v2573_v13 = vpop.f32.mrf.mxu3 }
 0x7d8   : > { %v2574_v36 = vadd.f32 %v2573_v13, %v2491_v1  ;;  %7583 = vst [vmem:[#allocation129_spill] sm:$0xff] %v6097_v27 }
 0x7da   : > { %v2513_v2 = vpop.f32.mrf.mxu0  ;;  %v2533_v37 = vpop.f32.mrf.mxu1  ;;  %v6089_v33 = vmax.f32 %v2574_v36, 0.0  ;;  %v4341_v36 = vld [vmem:[%s7286_s4 + $0x7] ss:$8 sm:$0xf] }
 0x7db   : > { %v2514_v24 = vadd.f32 %v2513_v2, %v2491_v1  ;;  %v2534_v59 = vadd.f32 %v2533_v37, %v2491_v1  ;;  %v4342_v1 = vld [vmem:[%s7286_s4 + $0x20] ss:$8 sm:$0xf]  ;;  %v2781_v62 = vperm.slane %v4341_v36, 3  ;;  %v2780_v47 = vperm.slane %v4341_v36, 2 }
 0x7dc   : > { %7582 = vst [vmem:[#allocation128_spill] sm:$0xff] %v6089_v33  ;;  %v2811_v2 = vperm.slane %v4342_v1, 3  ;;  %v2809_v40 = vperm.slane %v4342_v1, 1  ;;  %v2778_v11 = vperm.slane %v4341_v36, 0 }
 0x7dd   : > { %v6073_v9 = vmax.f32 %v2514_v24, 0.0  ;;  %v6075_v32 = vmax.f32 %v2534_v59, 0.0 }
 0x7df   : > { %7581 = vst [vmem:[#allocation127_spill] sm:$0xff] %v6075_v32  ;;  %2794 = vrot.lane.b32.xlu0 %v6073_v9, %s4402_s24  ;;  %2672 = vrot.lane.b32.xlu2 %v6075_v32, %s4406_s28 }
 0x7e0   : > { %2766 = vrot.lane.b32.xlu1 %v6075_v32, %s4409_s6 }
 0x7e7   : > { %2764 = vrot.lane.b32.xlu0 %v6073_v9, %s4409_s6  ;;  %2736 = vrot.lane.b32.xlu2 %v6075_v32, %s4408_s30 }
 0x7e8   : > { %2612 = vrot.lane.b32.xlu1 %v6075_v32, %s4404_s26 }
 0x7ef   : > { %2734 = vrot.lane.b32.xlu0 %v6073_v9, %s4408_s30  ;;  %2800 = vrot.lane.b32.xlu2 %v6089_v33, %s4402_s24 }
 0x7f0   : > { %2582 = vrot.lane.b32.xlu1 %v6075_v32, %s4403_s25 }
 0x7f7   : > { %2704 = vrot.lane.b32.xlu0 %v6073_v9, %s4407_s29  ;;  %2770 = vrot.lane.b32.xlu2 %v6089_v33, %s4409_s6 }
 0x7f8   : > { %2798 = vrot.lane.b32.xlu1 %v6097_v27, %s4402_s24 }
 0x7ff   : > { %2740 = vrot.lane.b32.xlu2 %v6089_v33, %s4408_s30  ;;  %2796 = vrot.lane.b32.xlu0 %v6075_v32, %s4402_s24 }
 0x800   : > { %2768 = vrot.lane.b32.xlu1 %v6097_v27, %s4409_s6 }
 0x807   : > { %2710 = vrot.lane.b32.xlu2 %v6089_v33, %s4407_s29  ;;  %2642 = vrot.lane.b32.xlu0 %v6075_v32, %s4405_s27 }
 0x808   : > { %2738 = vrot.lane.b32.xlu1 %v6097_v27, %s4408_s30 }
 0x80f   : > { %2646 = vrot.lane.b32.xlu2 %v6089_v33, %s4405_s27  ;;  %2706 = vrot.lane.b32.xlu0 %v6075_v32, %s4407_s29 }
 0x810   : > { %2708 = vrot.lane.b32.xlu1 %v6097_v27, %s4407_s29 }
 0x817   : > { %2614 = vrot.lane.b32.xlu2 %v6097_v27, %s4404_s26  ;;  %2674 = vrot.lane.b32.xlu0 %v6097_v27, %s4406_s28 }
 0x818   : > { %2676 = vrot.lane.b32.xlu1 %v6089_v33, %s4406_s28 }
 0x81f   : > { %2584 = vrot.lane.b32.xlu2 %v6097_v27, %s4403_s25  ;;  %2616 = vrot.lane.b32.xlu0 %v6089_v33, %s4404_s26 }
 0x820   : > { %2644 = vrot.lane.b32.xlu1 %v6097_v27, %s4405_s27 }
 0x827   : > { %2640 = vrot.lane.b32.xlu2 %v6073_v9, %s4405_s27  ;;  %2586 = vrot.lane.b32.xlu0 %v6089_v33, %s4403_s25 }
 0x828   : > { %2670 = vrot.lane.b32.xlu1 %v6073_v9, %s4406_s28 }
 0x82f   : > { %2864 = vperm.xlu2 %4392, %v2861_v8   ;;  %2610 = vrot.lane.b32.xlu0 %v6073_v9, %s4404_s26 }
 0x830   : > { %2580 = vrot.lane.b32.xlu1 %v6073_v9, %s4403_s25 }
 0x839   : > { %v6148_v30 = vpop.permute.xlu2 %2672 }
 0x841   : > { %v6150_v22 = vpop.permute.xlu2 %2736 }
 0x849   : > { %v2801_v55 = vpop.permute.xlu2 %2800 }
 0x851   : > { %v2795_v37 = vpop.permute.xlu0 %2794  ;;  %v2771_v53 = vpop.permute.xlu2 %2770 }
 0x852   : > { %v2805_v24 = vsel %vm564_vm1, %v2801_v55, %v2795_v37  ;;  %v2767_v59 = vpop.permute.xlu1 %2766 }
 0x853   : > { %v6157_v13 = vmul.f32 %v2811_v2, %v2805_v24  ;;  %v4340_v2 = vld [vmem:[%s7286_s4 + $0x6] ss:$8 sm:$0xf] }
 0x854   : > { %v2751_v14 = vperm.slane %v4340_v2, 3 }
 0x855   : > { %7584 = vst [vmem:[#allocation130_spill] sm:$0xff] %v6157_v13  ;;  %2937 = vmatpush.msra.mxu3 %v6157_v13 }
 0x859   : > { %v2765_v8 = vpop.permute.xlu0 %2764  ;;  %v2741_v24 = vpop.permute.xlu2 %2740 }
 0x85a   : > { %v2775_v61 = vsel %vm522_vm11, %v2771_v53, %v2765_v8  ;;  %v6165_v16 = vpop.permute.xlu1 %2612 }
 0x85b   : > { %v6167_v54 = vmul.f32 %v2781_v62, %v2775_v61  ;;  %v6182_v61 = vld [vmem:[%s7286_s4 + $0x5] ss:$8 sm:$0xf] }
 0x85c   : > { %v2721_v62 = vperm.slane %v6182_v61, 3 }
 0x85d   : > { %7585 = vst [vmem:[#allocation131_spill] sm:$0xff] %v6167_v54  ;;  %2938 = vmatpush.msra.mxu3 %v6167_v54  ;;  %v2810_v54 = vperm.slane %v4342_v1, 2 }
 0x861   : > { %v2735_v60 = vpop.permute.xlu0 %2734  ;;  %v2711_v43 = vpop.permute.xlu2 %2710 }
 0x862   : > { %v2745_v13 = vsel %vm480_vm10, %v2741_v24, %v2735_v60  ;;  %v6175_v18 = vpop.permute.xlu1 %2582 }
 0x863   : > { %v6177_v23 = vmul.f32 %v2751_v14, %v2745_v13 }
 0x865   : > { %7586 = vst [vmem:[#allocation132_spill] sm:$0xff] %v6177_v23  ;;  %2939 = vmatpush.msra.mxu3 %v6177_v23  ;;  %v2808_v23 = vperm.slane %v4342_v1, 0 }
 0x869   : > { %v2705_v10 = vpop.permute.xlu0 %2704 }
 0x86a   : > { %v2715_v7 = vsel %vm438_vm9, %v2711_v43, %v2705_v10  ;;  %v2799_v35 = vpop.permute.xlu1 %2798 }
 0x86b   : > { %v6188_v34 = vmul.f32 %v2721_v62, %v2715_v7  ;;  %v2802_v14 = vsel %vm564_vm1, %v2799_v35, %v2801_v55  ;;  %v2774_v7 = vsel %vm522_vm11, %v2765_v8, %v2767_v59  ;;  %v2779_v62 = vperm.slane %v4341_v36, 1 }
 0x86c   : > { %v6192_v13 = vmul.f32 %v2810_v54, %v2802_v14  ;;  %v2748_v14 = vperm.slane %v4340_v2, 0  ;;  %v2744_v36 = vsel %vm480_vm10, %v2735_v60, %v6150_v22  ;;  %v2749_v60 = vperm.slane %v4340_v2, 1 }
 0x86d   : > { %7587 = vst [vmem:[#allocation133_spill] sm:$0xff] %v6188_v34  ;;  %2940 = vmatpush.msra.mxu3 %v6188_v34 }
 0x86e   : > { %7588 = vst [vmem:[#allocation134_spill] sm:$0xff] %v6192_v13  ;;  %2917 = vmatpush.msra.mxu2 %v6192_v13 }
 0x86f   : > { %2941 = vmatpush.msra.mxu3 %v6089_v33 }
 0x871   : > { %v2797_v51 = vpop.permute.xlu0 %2796 }
 0x872   : > { %v2769_v19 = vpop.permute.xlu1 %2768  ;;  %v2803_v54 = vsel %vm564_vm1, %v2797_v51, %v2799_v35  ;;  %v2804_v55 = vsel %vm564_vm1, %v2795_v37, %v2797_v51  ;;  %v6216_v35 = vmul.f32 %v2778_v11, %v2774_v7  ;;  %v2718_v7 = vperm.slane %v6182_v61, 0 }
 0x873   : > { %v2772_v33 = vsel %vm522_vm11, %v2769_v19, %v2771_v53  ;;  %v2773_v1 = vsel %vm522_vm11, %v2767_v59, %v2769_v19  ;;  %v6207_v34 = vmul.f32 %v2808_v23, %v2804_v55  ;;  %v6214_v13 = vmul.f32 %v2809_v40, %v2803_v54  ;;  %v6227_v40 = vpop.permute.xlu2 %2646 }
 0x874   : > { %v6212_v8 = vmul.f32 %v2780_v47, %v2772_v33  ;;  %v6219_v51 = vmul.f32 %v2779_v62, %v2773_v1  ;;  %v6223_v19 = vmul.f32 %v2748_v14, %v2744_v36  ;;  %v2750_v47 = vperm.slane %v4340_v2, 2 }
 0x875   : > { %7590 = vst [vmem:[#allocation136_spill] sm:$0xff] %v6214_v13  ;;  %2877 = vmatpush.msra.mxu0 %v6207_v34  ;;  %2897 = vmatpush.msra.mxu1 %v6214_v13  ;;  %v2720_v2 = vperm.slane %v6182_v61, 2  ;;  %v2719_v62 = vperm.slane %v6182_v61, 1  ;;  %v4338_v61 = vld [vmem:[%s7286_s4 + $0x3] ss:$8 sm:$0xf] }
 0x876   : > { %7589 = vst [vmem:[#allocation135_spill] sm:$0xff] %v6212_v8  ;;  %2918 = vmatpush.msra.mxu2 %v6212_v8 }
 0x877   : > { %7591 = vst [vmem:[#allocation137_spill] sm:$0xff] %v6219_v51  ;;  %2878 = vmatpush.msra.mxu0 %v6216_v35  ;;  %2898 = vmatpush.msra.mxu1 %v6219_v51 }
 0x879   : > { %2879 = vmatpush.msra.mxu0 %v6223_v19  ;;  %v6230_v11 = vpop.permute.xlu0 %2642 }
 0x87a   : > { %v2739_v23 = vpop.permute.xlu1 %2738 }
 0x87b   : > { %v2742_v33 = vsel %vm480_vm10, %v2739_v23, %v2741_v24  ;;  %v2743_v37 = vsel %vm480_vm10, %v6150_v22, %v2739_v23  ;;  %v2615_v22 = vpop.permute.xlu2 %2614 }
 0x87c   : > { %v6237_v59 = vmul.f32 %v2749_v60, %v2743_v37  ;;  %v6239_v53 = vmul.f32 %v2750_v47, %v2742_v33 }
 0x87e   : > { %7592 = vst [vmem:[#allocation138_spill] sm:$0xff] %v6237_v59  ;;  %2899 = vmatpush.msra.mxu1 %v6237_v59  ;;  %2919 = vmatpush.msra.mxu2 %v6239_v53 }
 0x87f   : > { %7593 = vst [vmem:[#allocation139_spill] sm:$0xff] %v6239_v53 }
 0x881   : > { %v2707_v54 = vpop.permute.xlu0 %2706 }
 0x882   : > { %v2709_v24 = vpop.permute.xlu1 %2708  ;;  %v2714_v55 = vsel %vm438_vm9, %v2705_v10, %v2707_v54  ;;  %v2686_v10 = vperm.slane %v4338_v61, 2 }
 0x883   : > { %v2712_v14 = vsel %vm438_vm9, %v2709_v24, %v2711_v43  ;;  %v2713_v1 = vsel %vm438_vm9, %v2707_v54, %v2709_v24  ;;  %v6254_v60 = vmul.f32 %v2718_v7, %v2714_v55  ;;  %v2687_v43 = vperm.slane %v4338_v61, 3  ;;  %v2585_v54 = vpop.permute.xlu2 %2584  ;;  %v6281_v24 = vld [vmem:[%s7286_s4 + $0x1] ss:$8 sm:$0xf] }
 0x884   : > { %v6252_v36 = vmul.f32 %v2720_v2, %v2712_v14  ;;  %v6256_v47 = vmul.f32 %v2719_v62, %v2713_v1  ;;  %v4337_v55 = vld [vmem:[%s7286_s4 + $0x2] ss:$8 sm:$0xf] }
 0x885   : > { %2880 = vmatpush.msra.mxu0 %v6254_v60  ;;  %v2656_v14 = vperm.slane %v4337_v55, 2  ;;  %v2657_v1 = vperm.slane %v4337_v55, 3 }
 0x886   : > { %7594 = vst [vmem:[#allocation140_spill] sm:$0xff] %v6252_v36  ;;  %2900 = vmatpush.msra.mxu1 %v6256_v47  ;;  %2920 = vmatpush.msra.mxu2 %v6252_v36 }
 0x887   : > { %7595 = vst [vmem:[#allocation141_spill] sm:$0xff] %v6256_v47  ;;  %2881 = vmatpush.msra.mxu0 %v6073_v9  ;;  %v2589_v47 = vsel %vm262_vm2, %v6175_v18, %v2585_v54 }
 0x888   : > { %2901 = vmatpush.msra.mxu1 %v6075_v32  ;;  %2921 = vmatpush.msra.mxu2 %v6097_v27 }
 0x889   : > { %v2675_v23 = vpop.permute.xlu0 %2674 }
 0x88a   : > { %v2677_v33 = vpop.permute.xlu1 %2676  ;;  %v2679_v37 = vsel %vm393_vm8, %v6148_v30, %v2675_v23 }
 0x88b   : > { %v2678_v2 = vsel %vm393_vm8, %v2675_v23, %v2677_v33  ;;  %v6272_v7 = vmul.f32 %v2686_v10, %v2679_v37  ;;  %v2592_v10 = vld [vmem:[%s7286_s4] ss:$8 sm:$0xf]  ;;  %v2626_v23 = vperm.slane %v6281_v24, 2 }
 0x88c   : > { %v6274_v62 = vmul.f32 %v2687_v43, %v2678_v2  ;;  %v2627_v2 = vperm.slane %v6281_v24, 3  ;;  %v2596_v53 = vperm.slane %v2592_v10, 2  ;;  %v2597_v13 = vperm.slane %v2592_v10, 3 }
 0x88d   : > { %7596 = vst [vmem:[#allocation142_spill] sm:$0xff] %v6272_v7  ;;  %2922 = vmatpush.msra.mxu2 %v6272_v7 }
 0x88e   : > { %7597 = vst [vmem:[#allocation143_spill] sm:$0xff] %v6274_v62  ;;  %2942 = vmatpush.msra.mxu3 %v6274_v62  ;;  %v2619_v62 = vsel %vm309_vm6, %v6165_v16, %v2615_v22 }
 0x88f   : > { %v6309_v59 = vmul.f32 %v2626_v23, %v2619_v62  ;;  %v2860_v62 = vld [vmem:[%s7284_s2 + $0xc0] sm:$0xff] }
 0x891   : > { %v2617_v43 = vpop.permute.xlu0 %2616  ;;  %7600 = vst [vmem:[#allocation146_spill] sm:$0xff] %v6309_v59 }
 0x892   : > { %v2645_v37 = vpop.permute.xlu1 %2644  ;;  %v2618_v36 = vsel %vm309_vm6, %v2615_v22, %v2617_v43  ;;  %v6315_v22 = vmul.f32 %v2596_v53, %v2589_v47 }
 0x893   : > { %v2648_v7 = vsel %vm351_vm7, %v2645_v37, %v6227_v40  ;;  %v2649_v27 = vsel %vm351_vm7, %v6230_v11, %v2645_v37  ;;  %v6311_v51 = vmul.f32 %v2627_v2, %v2618_v36  ;;  %v2641_v37 = vpop.permute.xlu2 %2640 }
 0x894   : > { %v6302_v8 = vmul.f32 %v2656_v14, %v2649_v27  ;;  %v6304_v32 = vmul.f32 %v2657_v1, %v2648_v7  ;;  %7602 = vst [vmem:[#allocation148_spill] sm:$0xff] %v6315_v22  ;;  %v2684_v27 = vperm.slane %v4338_v61, 0  ;;  %v2685_v7 = vperm.slane %v4338_v61, 1 }
 0x895   : > { %7601 = vst [vmem:[#allocation147_spill] sm:$0xff] %v6311_v51  ;;  %v2654_v14 = vperm.slane %v4337_v55, 0  ;;  %v2655_v1 = vperm.slane %v4337_v55, 1  ;;  %v2650_v23 = vsel %vm351_vm7, %v2641_v37, %v6230_v11  ;;  %v2651_v47 = vsel %vm351_vm7, %v6227_v40, %v2641_v37 }
 0x896   : > { %7598 = vst [vmem:[#allocation144_spill] sm:$0xff] %v6302_v8  ;;  %2923 = vmatpush.msra.mxu2 %v6302_v8  ;;  %2943 = vmatpush.msra.mxu3 %v6304_v32  ;;  %v2595_v37 = vperm.slane %v2592_v10, 1 }
 0x897   : > { %7599 = vst [vmem:[#allocation145_spill] sm:$0xff] %v6304_v32  ;;  %v6346_v40 = vmul.f32 %v2655_v1, %v2650_v23 }
 0x898   : > { %2924 = vmatpush.msra.mxu2 %v6309_v59  ;;  %2944 = vmatpush.msra.mxu3 %v6311_v51 }
 0x899   : > { %v2587_v36 = vpop.permute.xlu0 %2586  ;;  %7607 = vst [vmem:[#allocation153_spill] sm:$0xff] %v6346_v40 }
 0x89a   : > { %v2671_v2 = vpop.permute.xlu1 %2670  ;;  %2925 = vmatpush.msra.mxu2 %v6315_v22  ;;  %v2588_v53 = vsel %vm262_vm2, %v2585_v54, %v2587_v36  ;;  %v6344_v54 = vmul.f32 %v2654_v14, %v2651_v47 }
 0x89b   : > { %v2680_v61 = vsel %vm393_vm8, %v2671_v2, %v6148_v30  ;;  %v2681_v55 = vsel %vm393_vm8, %v2677_v33, %v2671_v2  ;;  %v6336_v51 = vmul.f32 %v2597_v13, %v2588_v53  ;;  %4345 = vmatmul.msk.f32.vlgmr.msra.gmra.mxu2 %vm996_vm13, %v2860_v62  ;;  %v2624_v30 = vperm.slane %v6281_v24, 0 }
 0x89c   : > { %v6339_v11 = vmul.f32 %v2684_v27, %v2681_v55  ;;  %v6341_v32 = vmul.f32 %v2685_v7, %v2680_v61  ;;  %7606 = vst [vmem:[#allocation152_spill] sm:$0xff] %v6344_v54  ;;  %v2625_v13 = vperm.slane %v6281_v24, 1  ;;  %v2594_v33 = vperm.slane %v2592_v10, 0 }
 0x89d   : > { %7603 = vst [vmem:[#allocation149_spill] sm:$0xff] %v6336_v51  ;;  %2945 = vmatpush.msra.mxu3 %v6336_v51 }
 0x89e   : > { %7604 = vst [vmem:[#allocation150_spill] sm:$0xff] %v6339_v11  ;;  %2882 = vmatpush.msra.mxu0 %v6339_v11  ;;  %2902 = vmatpush.msra.mxu1 %v6341_v32 }
 0x89f   : > { %7605 = vst [vmem:[#allocation151_spill] sm:$0xff] %v6341_v32  ;;  %4346 = vmatmul.msk.f32.vlgmr.msra.gmra.mxu3 %vm996_vm13, %v2860_v62 }
 0x8a0   : > { %2883 = vmatpush.msra.mxu0 %v6344_v54  ;;  %2903 = vmatpush.msra.mxu1 %v6346_v40  ;;  %v6479_v40 = vld [vmem:[%s7286_s4 + $0x6] ss:$8 sm:$0xf] }
 0x8a1   : > { %v2611_v27 = vpop.permute.xlu0 %2610  ;;  %v3122_v49 = vperm.slane %v6479_v40, 0 }
 0x8a2   : > { %v2581_v7 = vpop.permute.xlu1 %2580  ;;  %v2620_v14 = vsel %vm309_vm6, %v2611_v27, %v6165_v16  ;;  %v2621_v1 = vsel %vm309_vm6, %v2617_v43, %v2611_v27  ;;  %v2865_v16 = vpop.permute.xlu2 %2864 }
 0x8a3   : > { %v2590_v23 = vsel %vm262_vm2, %v2581_v7, %v6175_v18  ;;  %v2591_v24 = vsel %vm262_vm2, %v2587_v36, %v2581_v7  ;;  %v6365_v2 = vmul.f32 %v2624_v30, %v2621_v1  ;;  %v6367_v53 = vmul.f32 %v2625_v13, %v2620_v14  ;;  %v3235_v14 = vld [vmem:[%s7285_s3 + $0x38] sm:$0xff] }
 0x8a4   : > { %v6369_v10 = vmul.f32 %v2594_v33, %v2591_v24  ;;  %v6371_v47 = vmul.f32 %v2595_v37, %v2590_v23 }
 0x8a5   : > { %7608 = vst [vmem:[#allocation154_spill] sm:$0xff] %v6365_v2  ;;  %2884 = vmatpush.msra.mxu0 %v6365_v2  ;;  %2904 = vmatpush.msra.mxu1 %v6367_v53 }
 0x8a6   : > { %7609 = vst [vmem:[#allocation155_spill] sm:$0xff] %v6367_v53 }
 0x8a7   : > { %7610 = vst [vmem:[#allocation156_spill] sm:$0xff] %v6369_v10  ;;  %2885 = vmatpush.msra.mxu0 %v6369_v10  ;;  %2905 = vmatpush.msra.mxu1 %v6371_v47 }
 0x8a8   : > { %7611 = vst [vmem:[#allocation157_spill] sm:$0xff] %v6371_v47  ;;  %4343 = vmatmul.msk.f32.vlgmr.msra.gmra.mxu0 %vm996_vm13, %v2860_v62  ;;  %4344 = vmatmul.msk.f32.vlgmr.msra.gmra.mxu1 %vm996_vm13, %v2860_v62 }
 0x91e   : > { %v2927_v30 = vpop.f32.mrf.mxu2 }
 0x91f   : > { %v2928_v13 = vadd.f32 %v2927_v30, %v2865_v16 }
 0x921   : > { %v6407_v33 = vmax.f32 %v2928_v13, 0.0 }
 0x922   : > { %v2947_v37 = vpop.f32.mrf.mxu3 }
 0x923   : > { %7613 = vst [vmem:[#allocation159_spill] sm:$0xff] %v6407_v33  ;;  %v2948_v27 = vadd.f32 %v2947_v37, %v2865_v16 }
 0x925   : > { %v2887_v18 = vpop.f32.mrf.mxu0  ;;  %v2907_v61 = vpop.f32.mrf.mxu1  ;;  %v6415_v7 = vmax.f32 %v2948_v27, 0.0  ;;  %v4353_v27 = vld [vmem:[%s7286_s4 + $0x20] ss:$8 sm:$0xf] }
 0x926   : > { %v2888_v43 = vadd.f32 %v2887_v18, %v2865_v16  ;;  %v2908_v62 = vadd.f32 %v2907_v61, %v2865_v16  ;;  %v3182_v51 = vperm.slane %v4353_v27, 0  ;;  %v3183_v22 = vperm.slane %v4353_v27, 1 }
 0x927   : > { %7614 = vst [vmem:[#allocation160_spill] sm:$0xff] %v6415_v7 }
 0x928   : > { %v6379_v36 = vmax.f32 %v2888_v43, 0.0  ;;  %v6393_v55 = vmax.f32 %v2908_v62, 0.0 }
 0x92a   : > { %7612 = vst [vmem:[#allocation158_spill] sm:$0xff] %v6379_v36  ;;  %3108 = vrot.lane.b32.xlu2 %v6379_v36, %s4408_s30  ;;  %3138 = vrot.lane.b32.xlu1 %v6379_v36, %s4409_s6 }
 0x92b   : > { %3168 = vrot.lane.b32.xlu0 %v6379_v36, %s4402_s24 }
 0x932   : > { %3014 = vrot.lane.b32.xlu2 %v6379_v36, %s4405_s27  ;;  %3044 = vrot.lane.b32.xlu1 %v6379_v36, %s4406_s28 }
 0x933   : > { %3078 = vrot.lane.b32.xlu0 %v6379_v36, %s4407_s29 }
 0x93a   : > { %2954 = vrot.lane.b32.xlu1 %v6379_v36, %s4403_s25  ;;  %3140 = vrot.lane.b32.xlu2 %v6393_v55, %s4409_s6 }
 0x93b   : > { %2984 = vrot.lane.b32.xlu0 %v6379_v36, %s4404_s26 }
 0x942   : > { %3046 = vrot.lane.b32.xlu2 %v6393_v55, %s4406_s28  ;;  %3170 = vrot.lane.b32.xlu1 %v6393_v55, %s4402_s24 }
 0x943   : > { %3110 = vrot.lane.b32.xlu0 %v6393_v55, %s4408_s30 }
 0x94a   : > { %3172 = vrot.lane.b32.xlu2 %v6407_v33, %s4402_s24  ;;  %3080 = vrot.lane.b32.xlu1 %v6393_v55, %s4407_s29 }
 0x94b   : > { %3016 = vrot.lane.b32.xlu0 %v6393_v55, %s4405_s27 }
 0x952   : > { %3114 = vrot.lane.b32.xlu2 %v6415_v7, %s4408_s30  ;;  %2986 = vrot.lane.b32.xlu1 %v6393_v55, %s4404_s26 }
 0x953   : > { %3174 = vrot.lane.b32.xlu0 %v6415_v7, %s4402_s24 }
 0x95a   : > { %3082 = vrot.lane.b32.xlu2 %v6407_v33, %s4407_s29  ;;  %3144 = vrot.lane.b32.xlu1 %v6415_v7, %s4409_s6 }
 0x95b   : > { %3142 = vrot.lane.b32.xlu0 %v6407_v33, %s4409_s6 }
 0x962   : > { %3020 = vrot.lane.b32.xlu2 %v6415_v7, %s4405_s27  ;;  %3112 = vrot.lane.b32.xlu1 %v6407_v33, %s4408_s30 }
 0x963   : > { %3084 = vrot.lane.b32.xlu0 %v6415_v7, %s4407_s29 }
 0x96a   : > { %2988 = vrot.lane.b32.xlu2 %v6407_v33, %s4404_s26  ;;  %3050 = vrot.lane.b32.xlu1 %v6415_v7, %s4406_s28 }
 0x96b   : > { %3048 = vrot.lane.b32.xlu0 %v6407_v33, %s4406_s28 }
 0x972   : > { %2956 = vrot.lane.b32.xlu2 %v6393_v55, %s4403_s25  ;;  %3018 = vrot.lane.b32.xlu1 %v6407_v33, %s4405_s27 }
 0x973   : > { %2990 = vrot.lane.b32.xlu0 %v6415_v7, %s4404_s26 }
 0x97a   : > { %3238 = vperm.xlu2 %4392, %v3235_v14   ;;  %2960 = vrot.lane.b32.xlu1 %v6415_v7, %s4403_s25  ;;  %v4352_v14 = vld [vmem:[%s7286_s4 + $0x7] ss:$8 sm:$0xf] }
 0x97b   : > { %2958 = vrot.lane.b32.xlu0 %v6407_v33, %s4403_s25  ;;  %v3152_v59 = vperm.slane %v4352_v14, 0 }
 0x984   : > { %v3109_v1 = vpop.permute.xlu2 %3108 }
 0x98c   : > { %v6454_v23 = vpop.permute.xlu2 %3014 }
 0x994   : > { %v3141_v24 = vpop.permute.xlu2 %3140 }
 0x99c   : > { %v3139_v16 = vpop.permute.xlu1 %3138  ;;  %v6456_v43 = vpop.permute.xlu2 %3046 }
 0x99d   : > { %v3169_v18 = vpop.permute.xlu0 %3168  ;;  %v3148_v53 = vsel %vm522_vm11, %v3139_v16, %v3141_v24 }
 0x99e   : > { %v6500_v48 = vmul.f32 %v3152_v59, %v3148_v53 }
 0x9a0   : > { %7617 = vst [vmem:[#allocation163_spill] sm:$0xff] %v6500_v48 }
 0x9a4   : > { %v6458_v61 = vpop.permute.xlu1 %3044  ;;  %v3173_v30 = vpop.permute.xlu2 %3172 }
 0x9a5   : > { %v6460_v62 = vpop.permute.xlu0 %3078 }
 0x9ac   : > { %v6462_v13 = vpop.permute.xlu1 %2954  ;;  %v6472_v8 = vpop.permute.xlu2 %3114 }
 0x9ad   : > { %v6464_v37 = vpop.permute.xlu0 %2984 }
 0x9b4   : > { %v3171_v47 = vpop.permute.xlu1 %3170  ;;  %v3083_v53 = vpop.permute.xlu2 %3082 }
 0x9b5   : > { %v6481_v32 = vpop.permute.xlu0 %3110  ;;  %v3177_v17 = vsel %vm564_vm1, %v3171_v47, %v3173_v30  ;;  %v3178_v10 = vsel %vm564_vm1, %v3169_v18, %v3171_v47 }
 0x9b6   : > { %v6488_v2 = vmul.f32 %v3182_v51, %v3178_v10  ;;  %v6490_v6 = vmul.f32 %v3183_v22, %v3177_v17  ;;  %v3118_v54 = vsel %vm480_vm10, %v3109_v1, %v6481_v32  ;;  %v3092_v17 = vperm.slane %v6498_v29, 0 }
 0x9b7   : > { %v6504_v47 = vmul.f32 %v3122_v49, %v3118_v54  ;;  %v3184_v49 = vperm.slane %v4353_v27, 2  ;;  %v3185_v54 = vperm.slane %v4353_v27, 3  ;;  %v3155_v27 = vperm.slane %v4352_v14, 3 }
 0x9b8   : > { %7615 = vst [vmem:[#allocation161_spill] sm:$0xff] %v6488_v2  ;;  %3251 = vmatpush.msrb.mxu0 %v6488_v2  ;;  %3271 = vmatpush.msrb.mxu1 %v6490_v6 }
 0x9b9   : > { %7616 = vst [vmem:[#allocation162_spill] sm:$0xff] %v6490_v6 }
 0x9ba   : > { %7618 = vst [vmem:[#allocation164_spill] sm:$0xff] %v6504_v47  ;;  %3252 = vmatpush.msrb.mxu0 %v6500_v48 }
 0x9bc   : > { %3253 = vmatpush.msrb.mxu0 %v6504_v47  ;;  %v3081_v51 = vpop.permute.xlu1 %3080 }
 0x9bd   : > { %v6509_v22 = vpop.permute.xlu0 %3016  ;;  %v3088_v59 = vsel %vm438_vm9, %v6460_v62, %v3081_v51 }
 0x9be   : > { %v6514_v10 = vmul.f32 %v3092_v17, %v3088_v59  ;;  %v6528_v17 = vpop.permute.xlu2 %3020  ;;  %v3153_v59 = vperm.slane %v4352_v14, 1 }
 0x9c0   : > { %7619 = vst [vmem:[#allocation165_spill] sm:$0xff] %v6514_v10  ;;  %3254 = vmatpush.msrb.mxu0 %v6514_v10  ;;  %v3125_v10 = vperm.slane %v6479_v40, 3 }
 0x9c2   : > { %3255 = vmatpush.msrb.mxu0 %v6379_v36  ;;  %v3154_v36 = vperm.slane %v4352_v14, 2 }
 0x9c4   : > { %v6518_v6 = vpop.permute.xlu1 %2986 }
 0x9c5   : > { %v3175_v48 = vpop.permute.xlu0 %3174 }
 0x9c6   : > { %v3176_v47 = vsel %vm564_vm1, %v3173_v30, %v3175_v48  ;;  %v3179_v2 = vsel %vm564_vm1, %v3175_v48, %v3169_v18  ;;  %v3119_v48 = vsel %vm480_vm10, %v6472_v8, %v3109_v1  ;;  %v6553_v1 = vpop.permute.xlu2 %2988 }
 0x9c7   : > { %v6524_v11 = vmul.f32 %v3184_v49, %v3176_v47  ;;  %v6526_v56 = vmul.f32 %v3185_v54, %v3179_v2 }
 0x9c9   : > { %7620 = vst [vmem:[#allocation166_spill] sm:$0xff] %v6524_v11  ;;  %3291 = vmatpush.msrb.mxu2 %v6524_v11  ;;  %3311 = vmatpush.msrb.mxu3 %v6526_v56 }
 0x9ca   : > { %7621 = vst [vmem:[#allocation167_spill] sm:$0xff] %v6526_v56  ;;  %v6548_v56 = vmul.f32 %v3125_v10, %v3119_v48  ;;  %v3094_v10 = vperm.slane %v6498_v29, 2  ;;  %v3087_v48 = vsel %vm438_vm9, %v3081_v51, %v3083_v53  ;;  %v6584_v51 = vld [vmem:[%s7286_s4 + $0x2] ss:$8 sm:$0xf] }
 0x9cc   : > { %v3145_v44 = vpop.permute.xlu1 %3144  ;;  %7624 = vst [vmem:[#allocation170_spill] sm:$0xff] %v6548_v56 }
 0x9cd   : > { %v3143_v18 = vpop.permute.xlu0 %3142  ;;  %v3149_v2 = vsel %vm522_vm11, %v3145_v44, %v3139_v16  ;;  %v3095_v16 = vperm.slane %v6498_v29, 3 }
 0x9ce   : > { %v3147_v30 = vsel %vm522_vm11, %v3141_v24, %v3143_v18  ;;  %v3146_v47 = vsel %vm522_vm11, %v3143_v18, %v3145_v44  ;;  %v6542_v49 = vmul.f32 %v3155_v27, %v3149_v2  ;;  %v3123_v44 = vperm.slane %v6479_v40, 1 }
 0x9cf   : > { %v6544_v14 = vmul.f32 %v3153_v59, %v3147_v30  ;;  %v6546_v54 = vmul.f32 %v3154_v36, %v3146_v47  ;;  %v3124_v24 = vperm.slane %v6479_v40, 2  ;;  %v3093_v36 = vperm.slane %v6498_v29, 1  ;;  %v4349_v59 = vld [vmem:[%s7286_s4 + $0x3] ss:$8 sm:$0xf] }
 0x9d0   : > { %7622 = vst [vmem:[#allocation168_spill] sm:$0xff] %v6542_v49  ;;  %3312 = vmatpush.msrb.mxu3 %v6542_v49  ;;  %v3059_v49 = vperm.slane %v4349_v59, 1 }
 0x9d1   : > { %7623 = vst [vmem:[#allocation169_spill] sm:$0xff] %v6546_v54  ;;  %3272 = vmatpush.msrb.mxu1 %v6544_v14  ;;  %3292 = vmatpush.msrb.mxu2 %v6546_v54 }
 0x9d2   : > { %3313 = vmatpush.msrb.mxu3 %v6548_v56 }
 0x9d4   : > { %v3113_v27 = vpop.permute.xlu1 %3112 }
 0x9d5   : > { %v3085_v18 = vpop.permute.xlu0 %3084  ;;  %v3116_v2 = vsel %vm480_vm10, %v3113_v27, %v6472_v8  ;;  %v3117_v40 = vsel %vm480_vm10, %v6481_v32, %v3113_v27  ;;  %v6588_v32 = vmul.f32 %v3093_v36, %v3087_v48  ;;  %v3024_v36 = vsel %vm351_vm7, %v6454_v23, %v6509_v22 }
 0x9d6   : > { %v3086_v29 = vsel %vm438_vm9, %v3083_v53, %v3085_v18  ;;  %v3089_v30 = vsel %vm438_vm9, %v3085_v18, %v6460_v62  ;;  %v6577_v47 = vmul.f32 %v3123_v44, %v3117_v40  ;;  %v6579_v56 = vmul.f32 %v3124_v24, %v3116_v2  ;;  %v6601_v53 = vld [vmem:[%s7286_s4 + $0x1] ss:$8 sm:$0xf]  ;;  %v6608_v24 = vld [vmem:[%s7286_s4] ss:$8 sm:$0xf] }
 0x9d7   : > { %v6586_v8 = vmul.f32 %v3095_v16, %v3089_v30  ;;  %v6590_v27 = vmul.f32 %v3094_v10, %v3086_v29  ;;  %v3054_v62 = vsel %vm393_vm8, %v6458_v61, %v6456_v43  ;;  %v3029_v44 = vperm.slane %v6584_v51, 1  ;;  %v2957_v29 = vpop.permute.xlu2 %2956 }
 0x9d8   : > { %7625 = vst [vmem:[#allocation171_spill] sm:$0xff] %v6579_v56  ;;  %3273 = vmatpush.msrb.mxu1 %v6577_v47  ;;  %3293 = vmatpush.msrb.mxu2 %v6579_v56  ;;  %v3058_v16 = vperm.slane %v4349_v59, 0  ;;  %v3060_v10 = vperm.slane %v4349_v59, 2  ;;  %v3061_v48 = vperm.slane %v4349_v59, 3  ;;  %v6617_v18 = vmul.f32 %v3059_v49, %v3054_v62 }
 0x9d9   : > { %7626 = vst [vmem:[#allocation172_spill] sm:$0xff] %v6586_v8  ;;  %3314 = vmatpush.msrb.mxu3 %v6586_v8  ;;  %v3028_v2 = vperm.slane %v6584_v51, 0  ;;  %v2999_v40 = vperm.slane %v6601_v53, 1  ;;  %v3025_v8 = vsel %vm351_vm7, %v6528_v17, %v6454_v23  ;;  %v2994_v49 = vsel %vm309_vm6, %v6464_v37, %v6518_v6 }
 0x9da   : > { %7627 = vst [vmem:[#allocation173_spill] sm:$0xff] %v6590_v27  ;;  %3274 = vmatpush.msrb.mxu1 %v6588_v32  ;;  %3294 = vmatpush.msrb.mxu2 %v6590_v27  ;;  %v2969_v59 = vperm.slane %v6608_v24, 1  ;;  %v6635_v27 = vmul.f32 %v3029_v44, %v3024_v36  ;;  %v2964_v54 = vsel %vm262_vm2, %v6462_v13, %v2957_v29 }
 0x9db   : > { %3315 = vmatpush.msrb.mxu3 %v6415_v7  ;;  %v3036_v44 = vmul.f32 %v3028_v2, %v3025_v8  ;;  %v6652_v36 = vmul.f32 %v2999_v40, %v2994_v49  ;;  %v3234_v8 = vld [vmem:[%s7284_s2 + $0xe0] sm:$0xff]  ;;  %v3001_v2 = vperm.slane %v6601_v53, 3 }
 0x9dc   : > { %3275 = vmatpush.msrb.mxu1 %v6393_v55  ;;  %3295 = vmatpush.msrb.mxu2 %v6407_v33  ;;  %v3051_v30 = vpop.permute.xlu1 %3050 }
 0x9dd   : > { %v3049_v62 = vpop.permute.xlu0 %3048  ;;  %v3055_v7 = vsel %vm393_vm8, %v3051_v30, %v6458_v61 }
 0x9de   : > { %v3053_v33 = vsel %vm393_vm8, %v6456_v43, %v3049_v62  ;;  %v3052_v23 = vsel %vm393_vm8, %v3049_v62, %v3051_v30  ;;  %v6642_v56 = vmul.f32 %v3058_v16, %v3055_v7  ;;  %3276 = vmatpush.msrb.mxu1 %v6617_v18  ;;  %v6658_v7 = vmul.f32 %v2969_v59, %v2964_v54 }
 0x9df   : > { %v6648_v11 = vmul.f32 %v3060_v10, %v3053_v33  ;;  %v6650_v61 = vmul.f32 %v3061_v48, %v3052_v23  ;;  %v3030_v33 = vperm.slane %v6584_v51, 2  ;;  %v3031_v43 = vperm.slane %v6584_v51, 3 }
 0x9e0   : > { %3256 = vmatpush.msrb.mxu0 %v6642_v56  ;;  %3277 = vmatpush.msrb.mxu1 %v6635_v27  ;;  %v2998_v16 = vperm.slane %v6601_v53, 0  ;;  %v3000_v10 = vperm.slane %v6601_v53, 2  ;;  %v2993_v54 = vsel %vm309_vm6, %v6518_v6, %v6553_v1 }
 0x9e1   : > { %3296 = vmatpush.msrb.mxu2 %v6648_v11  ;;  %3316 = vmatpush.msrb.mxu3 %v6650_v61 }
 0x9e2   : > { %3257 = vmatpush.msrb.mxu0 %v3036_v44  ;;  %3278 = vmatpush.msrb.mxu1 %v6652_v36  ;;  %v6692_v62 = vmul.f32 %v3000_v10, %v2993_v54  ;;  %v7659_v54 = vld [vmem:[#allocation77_spill] sm:$0xff] }
 0x9e4   : > { %3279 = vmatpush.msrb.mxu1 %v6658_v7  ;;  %v3019_v48 = vpop.permute.xlu1 %3018 }
 0x9e5   : > { %v2991_v40 = vpop.permute.xlu0 %2990  ;;  %v3022_v51 = vsel %vm351_vm7, %v3019_v48, %v6528_v17  ;;  %v3023_v30 = vsel %vm351_vm7, %v6509_v22, %v3019_v48  ;;  %4355 = vmatmul.msk.f32.vlgmr.msrb.gmra.mxu1 %vm996_vm13, %v3234_v8  ;;  %v7658_v48 = vld [vmem:[#allocation155_spill] sm:$0xff] }
 0x9e6   : > { %v2992_v49 = vsel %vm309_vm6, %v6553_v1, %v2991_v40  ;;  %v2995_v6 = vsel %vm309_vm6, %v2991_v40, %v6464_v37  ;;  %v6687_v53 = vmul.f32 %v3030_v33, %v3023_v30  ;;  %v6689_v59 = vmul.f32 %v3031_v43, %v3022_v51  ;;  %3857 = vmatpush.msra.mxu1 %v5767_v39  ;;  %v7661_v40 = vld [vmem:[#allocation79_spill] sm:$0xff]  ;;  %v7662_v51 = vld [vmem:[#allocation106_spill] sm:$0xff]  ;;  %v7663_v30 = vld [vmem:[#allocation80_spill] sm:$0xff] }
 0x9e7   : > { %v3006_v17 = vmul.f32 %v2998_v16, %v2995_v6  ;;  %v6696_v22 = vmul.f32 %v3001_v2, %v2992_v49  ;;  %v2968_v37 = vperm.slane %v6608_v24, 0  ;;  %v2970_v39 = vperm.slane %v6608_v24, 2  ;;  %v7660_v2 = vld [vmem:[#allocation157_spill] sm:$0xff]  ;;  %v7664_v49 = vld [vmem:[#allocation108_spill] sm:$0xff]  ;;  %v7665_v6 = vld [vmem:[#allocation83_spill] sm:$0xff] }
 0x9e8   : > { %3858 = vmatpush.msra.mxu1 %v6033_v5  ;;  %3297 = vmatpush.msrb.mxu2 %v6687_v53  ;;  %v2971_v1 = vperm.slane %v6608_v24, 3 }
 0x9e9   : > { %3258 = vmatpush.msrb.mxu0 %v3006_v17  ;;  %3317 = vmatpush.msrb.mxu3 %v6689_v59 }
 0x9ea   : > { %3859 = vmatpush.msra.mxu1 %v6038_v63  ;;  %3298 = vmatpush.msrb.mxu2 %v6692_v62 }
 0x9eb   : > { %3318 = vmatpush.msrb.mxu3 %v6696_v22 }
 0x9ec   : > { %3860 = vmatpush.msra.mxu1 %v6059_v58  ;;  %v2961_v5 = vpop.permute.xlu1 %2960  ;;  %v6769_v58 = vld [vmem:[%s7284_s2 + $0x100] sm:$0xf] }
 0x9ed   : > { %v2959_v23 = vpop.permute.xlu0 %2958  ;;  %v2965_v33 = vsel %vm262_vm2, %v2961_v5, %v6462_v13  ;;  %v7651_v13 = vld [vmem:[#allocation123_spill] sm:$0xff] }
 0x9ee   : > { %v2963_v63 = vsel %vm262_vm2, %v2957_v29, %v2959_v23  ;;  %v2962_v43 = vsel %vm262_vm2, %v2959_v23, %v2961_v5  ;;  %v2976_v16 = vmul.f32 %v2968_v37, %v2965_v33  ;;  %3861 = vmatpush.msra.mxu1 %v6063_v20  ;;  %v7646_v20 = vld [vmem:[#allocation138_spill] sm:$0xff]  ;;  %v7653_v29 = vld [vmem:[#allocation124_spill] sm:$0xff]  ;;  %v7667_v37 = vld [vmem:[#allocation69_spill] sm:$0xff] }
 0x9ef   : > { %v6714_v10 = vmul.f32 %v2970_v39, %v2963_v63  ;;  %v6716_v24 = vmul.f32 %v2971_v1, %v2962_v43  ;;  %v7668_v39 = vld [vmem:[#allocation114_spill] sm:$0xff]  ;;  %v7669_v1 = vld [vmem:[#allocation92_spill] sm:$0xff]  ;;  %v7670_v5 = vld [vmem:[#allocation93_spill] sm:$0xff] }
 0x9f0   : > { %3862 = vmatpush.msra.mxu1 %v5595_v38  ;;  %3259 = vmatpush.msrb.mxu0 %v2976_v16  ;;  %v7638_v38 = vld [vmem:[#allocation32_spill] sm:$0xff]  ;;  %v7671_v23 = vld [vmem:[#allocation94_spill] sm:$0xff]  ;;  %v7672_v33 = vld [vmem:[#allocation95_spill] sm:$0xff] }
 0x9f1   : > { %3299 = vmatpush.msrb.mxu2 %v6714_v10  ;;  %3319 = vmatpush.msrb.mxu3 %v6716_v24  ;;  %v7673_v63 = vld [vmem:[#allocation49_spill] sm:$0xff]  ;;  %v7674_v43 = vld [vmem:[#allocation52_spill] sm:$0xff] }
 0x9f2   : > { %4354 = vmatmul.msk.f32.vlgmr.msrb.gmra.mxu0 %vm996_vm13, %v3234_v8  ;;  %4356 = vmatmul.msk.f32.vlgmr.msrb.gmra.mxu2 %vm996_vm13, %v3234_v8 }
 0x9f3   : > { %4357 = vmatmul.msk.f32.vlgmr.msrb.gmra.mxu3 %vm996_vm13, %v3234_v8  ;;  %3837 = vmatpush.msra.mxu0 %v5313_v25  ;;  %v7631_v25 = vld [vmem:[#allocation18_spill] sm:$0xff] }
 0x9f4   : > { %3863 = vmatpush.msra.mxu1 %v5605_v46  ;;  %3877 = vmatpush.msra.mxu2 %v3036_v44  ;;  %v7639_v46 = vld [vmem:[#allocation104_spill] sm:$0xff]  ;;  %v7654_v44 = vld [vmem:[#allocation151_spill] sm:$0xff]  ;;  %v7657_v8 = vld [vmem:[#allocation126_spill] sm:$0xff] }
 0x9f5   : > { %3838 = vmatpush.msra.mxu0 %v5340_v26  ;;  %v7632_v26 = vld [vmem:[#allocation51_spill] sm:$0xff] }
 0x9f6   : > { %3864 = vmatpush.msra.mxu1 %v5612_v28  ;;  %3878 = vmatpush.msra.mxu2 %v3006_v17  ;;  %v7640_v28 = vld [vmem:[#allocation136_spill] sm:$0xff]  ;;  %v7666_v17 = vld [vmem:[#allocation110_spill] sm:$0xff] }
 0x9f7   : > { %3839 = vmatpush.msra.mxu0 %v5161_v0  ;;  %v7629_v0 = vld [vmem:[#allocation48_spill] sm:$0xff] }
 0x9f8   : > { %3865 = vmatpush.msra.mxu1 %v5642_v57  ;;  %3879 = vmatpush.msra.mxu2 %v2976_v16  ;;  %v7641_v57 = vld [vmem:[#allocation34_spill] sm:$0xff] }
 0x9f9   : > { %3840 = vmatpush.msra.mxu0 %v5423_v3  ;;  %v7630_v3 = vld [vmem:[#allocation150_spill] sm:$0xff] }
 0x9fa   : > { %3866 = vmatpush.msra.mxu1 %v5461_v31  ;;  %3880 = vmatpush.msra.mxu2 %v6207_v34  ;;  %v7628_v34 = vld [vmem:[#allocation16_spill] sm:$0xff]  ;;  %v7675_v16 = vld [vmem:[#allocation134_spill] sm:$0xff] }
 0x9fb   : > { %3841 = vmatpush.msra.mxu0 %v5430_v52  ;;  %v7633_v52 = vld [vmem:[#allocation152_spill] sm:$0xff] }
 0x9fc   : > { %3867 = vmatpush.msra.mxu1 %v5727_v42  ;;  %3881 = vmatpush.msra.mxu2 %v6216_v35  ;;  %v7637_v31 = vld [vmem:[#allocation156_spill] sm:$0xff]  ;;  %v7642_v42 = vld [vmem:[#allocation107_spill] sm:$0xff]  ;;  %v7648_v35 = vld [vmem:[#allocation113_spill] sm:$0xff] }
 0x9fd   : > { %3842 = vmatpush.msra.mxu0 %v5447_v15  ;;  %v7634_v15 = vld [vmem:[#allocation21_spill] sm:$0xff] }
 0x9fe   : > { %3868 = vmatpush.msra.mxu1 %v5732_v50  ;;  %3882 = vmatpush.msra.mxu2 %v6223_v19  ;;  %v7643_v50 = vld [vmem:[#allocation137_spill] sm:$0xff]  ;;  %v7649_v19 = vld [vmem:[#allocation96_spill] sm:$0xff] }
 0x9ff   : > { %3843 = vmatpush.msra.mxu0 %v5453_v21  ;;  %v7636_v21 = vld [vmem:[#allocation5_spill] sm:$0xff] }
 0xa00   : > { %3869 = vmatpush.msra.mxu1 %v5753_v4  ;;  %3883 = vmatpush.msra.mxu2 %v6254_v60  ;;  %v7644_v4 = vld [vmem:[#allocation36_spill] sm:$0xff]  ;;  %v7650_v60 = vld [vmem:[#allocation141_spill] sm:$0xff] }
 0xa01   : > { %3844 = vmatpush.msra.mxu0 %v4995_v41  ;;  %v7635_v41 = vld [vmem:[#allocation154_spill] sm:$0xff] }
 0xa02   : > { %3870 = vmatpush.msra.mxu1 %v5757_v45  ;;  %3884 = vmatpush.msra.mxu2 %v6073_v9  ;;  %v7645_v45 = vld [vmem:[#allocation109_spill] sm:$0xff]  ;;  %v7647_v9 = vld [vmem:[#allocation38_spill] sm:$0xff] }
 0xa03   : > { %3845 = vmatpush.msra.mxu0 %v7628_v34  ;;  %v7676_v34 = vld [vmem:[#allocation135_spill] sm:$0xff] }
 0xa04   : > { %3871 = vmatpush.msra.mxu1 %v7629_v0  ;;  %3885 = vmatpush.msra.mxu2 %v7630_v3  ;;  %v7677_v0 = vld [vmem:[#allocation139_spill] sm:$0xff]  ;;  %v7678_v3 = vld [vmem:[#allocation140_spill] sm:$0xff] }
 0xa05   : > { %3846 = vmatpush.msra.mxu0 %v7631_v25  ;;  %v7679_v25 = vld [vmem:[#allocation129_spill] sm:$0xff] }
 0xa06   : > { %3872 = vmatpush.msra.mxu1 %v7632_v26  ;;  %3886 = vmatpush.msra.mxu2 %v7633_v52  ;;  %v7680_v26 = vld [vmem:[#allocation142_spill] sm:$0xff]  ;;  %v7681_v52 = vld [vmem:[#allocation144_spill] sm:$0xff] }
 0xa07   : > { %3847 = vmatpush.msra.mxu0 %v7634_v15  ;;  %v7682_v15 = vld [vmem:[#allocation146_spill] sm:$0xff] }
 0xa08   : > { %3957 = vmatpush.msrb.mxu1 %v6635_v27  ;;  %3887 = vmatpush.msra.mxu2 %v7635_v41  ;;  %v7652_v27 = vld [vmem:[#allocation127_spill] sm:$0xff] }
 0xa09   : > { %3848 = vmatpush.msra.mxu0 %v7636_v21  ;;  %v7686_v41 = vld [vmem:[#allocation111_spill] sm:$0xff]  ;;  %v7687_v21 = vld [vmem:[#allocation112_spill] sm:$0xff] }
 0xa0a   : > { %3958 = vmatpush.msrb.mxu1 %v6652_v36  ;;  %3888 = vmatpush.msra.mxu2 %v7637_v31  ;;  %v7655_v36 = vld [vmem:[#allocation125_spill] sm:$0xff]  ;;  %v3239_v31 = vpop.permute.xlu2 %3238 }
 0xa0b   : > { %3849 = vmatpush.msra.mxu0 %v7638_v38 }
 0xa0c   : > { %3959 = vmatpush.msrb.mxu1 %v6658_v7  ;;  %3889 = vmatpush.msra.mxu2 %v7639_v46  ;;  %v7656_v7 = vld [vmem:[#allocation153_spill] sm:$0xff] }
 0xa0d   : > { %3850 = vmatpush.msra.mxu0 %v7641_v57 }
 0xa0e   : > { %3960 = vmatpush.msrb.mxu1 %v7640_v28  ;;  %3890 = vmatpush.msra.mxu2 %v7642_v42 }
 0xa0f   : > { %3851 = vmatpush.msra.mxu0 %v7644_v4 }
 0xa10   : > { %3961 = vmatpush.msrb.mxu1 %v7643_v50  ;;  %3891 = vmatpush.msra.mxu2 %v7645_v45 }
 0xa11   : > { %3852 = vmatpush.msra.mxu0 %v7647_v9 }
 0xa12   : > { %3962 = vmatpush.msrb.mxu1 %v7646_v20  ;;  %3892 = vmatpush.msra.mxu2 %v7648_v35 }
 0xa13   : > { %3937 = vmatpush.msrb.mxu0 %v7649_v19 }
 0xa14   : > { %3963 = vmatpush.msrb.mxu1 %v7650_v60  ;;  %3853 = vmatmul.f32.vlgmr.msra.gmra.mxu0 %v6769_v58 }
 0xa15   : > { %3938 = vmatpush.msrb.mxu0 %v7651_v13 }
 0xa16   : > { %3964 = vmatpush.msrb.mxu1 %v7652_v27 }
 0xa17   : > { %3939 = vmatpush.msrb.mxu0 %v7653_v29 }
 0xa18   : > { %3965 = vmatpush.msrb.mxu1 %v7654_v44 }
 0xa19   : > { %3940 = vmatpush.msrb.mxu0 %v7655_v36 }
 0xa1a   : > { %3966 = vmatpush.msrb.mxu1 %v7656_v7 }
 0xa1b   : > { %3941 = vmatpush.msrb.mxu0 %v7657_v8 }
 0xa1c   : > { %3967 = vmatpush.msrb.mxu1 %v7658_v48 }
 0xa1d   : > { %3942 = vmatpush.msrb.mxu0 %v7659_v54 }
 0xa1e   : > { %3968 = vmatpush.msrb.mxu1 %v7660_v2 }
 0xa1f   : > { %3943 = vmatpush.msrb.mxu0 %v7661_v40 }
 0xa20   : > { %3969 = vmatpush.msrb.mxu1 %v7662_v51 }
 0xa21   : > { %3944 = vmatpush.msrb.mxu0 %v7663_v30  ;;  %v6914_v30 = vld [vmem:[%s7286_s4 + $0x20] ss:$8 sm:$0xf] }
 0xa22   : > { %3970 = vmatpush.msrb.mxu1 %v7664_v49  ;;  %v6919_v49 = vld [vmem:[%s7286_s4 + $0x7] ss:$8 sm:$0xf] }
 0xa23   : > { %3945 = vmatpush.msrb.mxu0 %v7665_v6  ;;  %v3556_v6 = vperm.slane %v6914_v30, 0 }
 0xa24   : > { %3971 = vmatpush.msrb.mxu1 %v7666_v17  ;;  %v3557_v17 = vperm.slane %v6914_v30, 1 }
 0xa25   : > { %3946 = vmatpush.msrb.mxu0 %v7667_v37  ;;  %v6926_v37 = vld [vmem:[%s7286_s4 + $0x6] ss:$8 sm:$0xf] }
 0xa26   : > { %3972 = vmatpush.msrb.mxu1 %v7668_v39  ;;  %v3526_v39 = vperm.slane %v6919_v49, 0 }
 0xa27   : > { %3947 = vmatpush.msrb.mxu0 %v7669_v1 }
 0xa29   : > { %3948 = vmatpush.msrb.mxu0 %v7670_v5  ;;  %v3527_v5 = vperm.slane %v6919_v49, 1 }
 0xa2b   : > { %3949 = vmatpush.msrb.mxu0 %v7671_v23 }
 0xa2d   : > { %3950 = vmatpush.msrb.mxu0 %v7672_v33 }
 0xa2f   : > { %3951 = vmatpush.msrb.mxu0 %v7673_v63 }
 0xa31   : > { %3952 = vmatpush.msrb.mxu0 %v7674_v43 }
 0xa33   : > { %4037 = vmatpush.msra.mxu0 %v6687_v53  ;;  %v7683_v53 = vld [vmem:[#allocation148_spill] sm:$0xff] }
 0xa35   : > { %4038 = vmatpush.msra.mxu0 %v6692_v62  ;;  %v7684_v62 = vld [vmem:[#allocation103_spill] sm:$0xff] }
 0xa37   : > { %4039 = vmatpush.msra.mxu0 %v6714_v10  ;;  %v7685_v10 = vld [vmem:[#allocation105_spill] sm:$0xff] }
 0xa39   : > { %4040 = vmatpush.msra.mxu0 %v7675_v16  ;;  %v3496_v16 = vperm.slane %v6926_v37, 0 }
 0xa3b   : > { %4041 = vmatpush.msra.mxu0 %v7676_v34 }
 0xa3d   : > { %4042 = vmatpush.msra.mxu0 %v7677_v0 }
 0xa3f   : > { %4043 = vmatpush.msra.mxu0 %v7678_v3 }
 0xa41   : > { %4044 = vmatpush.msra.mxu0 %v7679_v25 }
 0xa43   : > { %4045 = vmatpush.msra.mxu0 %v7680_v26 }
 0xa45   : > { %4046 = vmatpush.msra.mxu0 %v7681_v52  ;;  %v6953_v52 = vld [vmem:[%s7286_s4 + $0x5] ss:$8 sm:$0xf] }
 0xa47   : > { %4047 = vmatpush.msra.mxu0 %v7682_v15  ;;  %v6958_v15 = vld [vmem:[%s7284_s2 + $0x108] sm:$0xf] }
 0xa48   : > { %3873 = vmatmul.f32.vlgmr.msra.gmra.mxu1 %v6958_v15  ;;  %3953 = vmatmul.f32.vlgmr.msrb.gmra.mxu0 %v6958_v15 }
 0xa49   : > { %4048 = vmatpush.msra.mxu0 %v7683_v53 }
 0xa4b   : > { %4049 = vmatpush.msra.mxu0 %v7684_v62 }
 0xa4d   : > { %4050 = vmatpush.msra.mxu0 %v7685_v10 }
 0xa4f   : > { %4051 = vmatpush.msra.mxu0 %v7686_v41  ;;  %v3466_v41 = vperm.slane %v6953_v52, 0 }
 0xa51   : > { %4052 = vmatpush.msra.mxu0 %v7687_v21  ;;  %v6966_v21 = vld [vmem:[%s7286_s4 + $0x3] ss:$8 sm:$0xf] }
 0xa62   : > { %v3281_v57 = vpop.f32.mrf.mxu1 }
 0xa63   : > { %v3282_v42 = vadd.f32 %v3281_v57, %v3239_v31 }
 0xa65   : > { %v6825_v50 = vmax.f32 %v3282_v42, 0.0 }
 0xa6f   : > { %v3261_v38 = vpop.f32.mrf.mxu0 }
 0xa70   : > { %v3262_v46 = vadd.f32 %v3261_v38, %v3239_v31 }
 0xa72   : > { %v6817_v28 = vmax.f32 %v3262_v46, 0.0  ;;  %v6972_v46 = vld [vmem:[%s7286_s4 + $0x2] ss:$8 sm:$0xf] }
 0xa74   : > { %3482 = vrot.lane.b32.xlu1 %v6817_v28, %s4408_s30  ;;  %3512 = vrot.lane.b32.xlu2 %v6817_v28, %s4409_s6 }
 0xa75   : > { %3542 = vrot.lane.b32.xlu0 %v6817_v28, %s4402_s24  ;;  %v3301_v4 = vpop.f32.mrf.mxu2 }
 0xa76   : > { %v3302_v45 = vadd.f32 %v3301_v4, %v3239_v31  ;;  %v3321_v9 = vpop.f32.mrf.mxu3  ;;  %v3432_v4 = vperm.slane %v6966_v21, 0 }
 0xa77   : > { %v3322_v35 = vadd.f32 %v3321_v9, %v3239_v31  ;;  %v3497_v31 = vperm.slane %v6926_v37, 1 }
 0xa78   : > { %v6839_v20 = vmax.f32 %v3302_v45, 0.0 }
 0xa79   : > { %v6847_v19 = vmax.f32 %v3322_v35, 0.0 }
 0xa7c   : > { %3418 = vrot.lane.b32.xlu1 %v6817_v28, %s4406_s28  ;;  %3484 = vrot.lane.b32.xlu2 %v6825_v50, %s4408_s30 }
 0xa7d   : > { %3452 = vrot.lane.b32.xlu0 %v6817_v28, %s4407_s29 }
 0xa84   : > { %3388 = vrot.lane.b32.xlu1 %v6817_v28, %s4405_s27  ;;  %3420 = vrot.lane.b32.xlu2 %v6825_v50, %s4406_s28 }
 0xa85   : > { %3328 = vrot.lane.b32.xlu0 %v6817_v28, %s4403_s25 }
 0xa8c   : > { %3358 = vrot.lane.b32.xlu1 %v6817_v28, %s4404_s26  ;;  %3546 = vrot.lane.b32.xlu2 %v6839_v20, %s4402_s24 }
 0xa8d   : > { %3514 = vrot.lane.b32.xlu0 %v6825_v50, %s4409_s6 }
 0xa94   : > { %3544 = vrot.lane.b32.xlu1 %v6825_v50, %s4402_s24  ;;  %3424 = vrot.lane.b32.xlu2 %v6847_v19, %s4406_s28 }
 0xa95   : > { %3516 = vrot.lane.b32.xlu0 %v6839_v20, %s4409_s6 }
 0xa9c   : > { %3454 = vrot.lane.b32.xlu1 %v6825_v50, %s4407_s29  ;;  %3394 = vrot.lane.b32.xlu2 %v6847_v19, %s4405_s27 }
 0xa9d   : > { %3486 = vrot.lane.b32.xlu0 %v6839_v20, %s4408_s30 }
 0xaa4   : > { %3334 = vrot.lane.b32.xlu1 %v6847_v19, %s4403_s25  ;;  %3364 = vrot.lane.b32.xlu2 %v6847_v19, %s4404_s26 }
 0xaa5   : > { %3456 = vrot.lane.b32.xlu0 %v6839_v20, %s4407_s29 }
 0xaac   : > { %3360 = vrot.lane.b32.xlu1 %v6825_v50, %s4404_s26  ;;  %3330 = vrot.lane.b32.xlu2 %v6825_v50, %s4403_s25 }
 0xaad   : > { %3390 = vrot.lane.b32.xlu0 %v6825_v50, %s4405_s27 }
 0xab4   : > { %3518 = vrot.lane.b32.xlu1 %v6847_v19, %s4409_s6  ;;  %3488 = vrot.lane.b32.xlu2 %v6847_v19, %s4408_s30 }
 0xab5   : > { %3548 = vrot.lane.b32.xlu0 %v6847_v19, %s4402_s24 }
 0xabc   : > { %3422 = vrot.lane.b32.xlu1 %v6839_v20, %s4406_s28  ;;  %3392 = vrot.lane.b32.xlu2 %v6839_v20, %s4405_s27 }
 0xabd   : > { %3458 = vrot.lane.b32.xlu0 %v6847_v19, %s4407_s29 }
 0xac4   : > { %3332 = vrot.lane.b32.xlu1 %v6839_v20, %s4403_s25  ;;  %s4371_s25 = sshll.u32 %s7798_s19, 4 }
 0xac5   : > { %3362 = vrot.lane.b32.xlu0 %v6839_v20, %s4404_s26  ;;  %s236_s28 = scalar_lea.vmem %s7283_s1, %s4371_s25  ;;  %s241_s21 = scalar_lea.vmem %s7287_s5, %s4371_s25 }
 0xace   : > { %v6889_v60 = vpop.permute.xlu2 %3512 }
 0xad6   : > { %v3485_v13 = vpop.permute.xlu2 %3484 }
 0xade   : > { %v6895_v44 = vpop.permute.xlu2 %3420 }
 0xae6   : > { %v6891_v27 = vpop.permute.xlu1 %3482  ;;  %v6901_v8 = vpop.permute.xlu2 %3546 }
 0xae7   : > { %v6893_v29 = vpop.permute.xlu0 %3542  ;;  %v3492_v26 = vsel %vm480_vm10, %v6891_v27, %v3485_v13 }
 0xae8   : > { %v3504_v10 = vmul.f32 %v3496_v16, %v3492_v26  ;;  %v3467_v16 = vperm.slane %v6953_v52, 1 }
 0xaee   : > { %v6897_v36 = vpop.permute.xlu1 %3418  ;;  %v6907_v2 = vpop.permute.xlu2 %3424 }
 0xaef   : > { %v6899_v7 = vpop.permute.xlu0 %3452  ;;  %v3429_v35 = vsel %vm393_vm8, %v6907_v2, %v6897_v36 }
 0xaf6   : > { %v6903_v48 = vpop.permute.xlu1 %3388  ;;  %v6942_v34 = vpop.permute.xlu2 %3394 }
 0xaf7   : > { %v6905_v54 = vpop.permute.xlu0 %3328 }
 0xafe   : > { %v6909_v40 = vpop.permute.xlu1 %3358 }
 0xaff   : > { %v3515_v51 = vpop.permute.xlu0 %3514 }
 0xb00   : > { %v3522_v23 = vsel %vm522_vm11, %v6889_v60, %v3515_v51 }
 0xb01   : > { %v3534_v53 = vmul.f32 %v3526_v39, %v3522_v23  ;;  %v6993_v39 = vpop.permute.xlu2 %3364  ;;  %v7004_v23 = vld [vmem:[%s7284_s2 + $0x110] sm:$0xf] }
 0xb02   : > { %3893 = vmatmul.f32.vlgmr.msra.gmra.mxu2 %v7004_v23  ;;  %3973 = vmatmul.f32.vlgmr.msrb.gmra.mxu1 %v7004_v23 }
 0xb03   : > { %4053 = vmatmul.f32.vlgmr.msra.gmra.mxu0 %v7004_v23 }
 0xb06   : > { %v3545_v1 = vpop.permute.xlu1 %3544 }
 0xb07   : > { %v3551_v33 = vsel %vm564_vm1, %v3545_v1, %v6901_v8  ;;  %v3552_v63 = vsel %vm564_vm1, %v6893_v29, %v3545_v1  ;;  %v6939_v43 = vpop.permute.xlu0 %3516  ;;  %v3440_v1 = vmul.f32 %v3432_v4, %v3429_v35  ;;  %v7688_v35 = vld [vmem:[#allocation161_spill] sm:$0xff] }
 0xb08   : > { %v3564_v0 = vmul.f32 %v3556_v6, %v3552_v63  ;;  %v3565_v3 = vmul.f32 %v3557_v17, %v3551_v33  ;;  %v3521_v25 = vsel %vm522_vm11, %v3515_v51, %v6939_v43  ;;  %v6990_v51 = vld [vmem:[%s7286_s4 + $0x1] ss:$8 sm:$0xf]  ;;  %v3402_v17 = vperm.slane %v6972_v46, 0 }
 0xb09   : > { %v3535_v62 = vmul.f32 %v3527_v5, %v3521_v25  ;;  %v3372_v5 = vperm.slane %v6990_v51, 0  ;;  %v3369_v33 = vsel %vm309_vm6, %v6993_v39, %v6909_v40  ;;  %v7013_v63 = vld [vmem:[%s7286_s4] ss:$8 sm:$0xf] }
 0xb0a   : > { %3898 = vmatpush.msra.mxu3 %v3564_v0  ;;  %3978 = vmatpush.msrb.mxu2 %v3565_v3  ;;  %v3342_v0 = vperm.slane %v7013_v63, 0 }
 0xb0c   : > { %3899 = vmatpush.msra.mxu3 %v3534_v53  ;;  %3979 = vmatpush.msrb.mxu2 %v3535_v62  ;;  %v3380_v53 = vmul.f32 %v3372_v5, %v3369_v33 }
 0xb0e   : > { %v3455_v38 = vpop.permute.xlu1 %3454  ;;  %3900 = vmatpush.msra.mxu3 %v3504_v10  ;;  %v3433_v10 = vperm.slane %v6966_v21, 1 }
 0xb0f   : > { %v3462_v57 = vsel %vm438_vm9, %v6899_v7, %v3455_v38  ;;  %v6977_v42 = vpop.permute.xlu0 %3486 }
 0xb10   : > { %v3474_v45 = vmul.f32 %v3466_v41, %v3462_v57  ;;  %v3491_v9 = vsel %vm480_vm10, %v3485_v13, %v6977_v42  ;;  %v3399_v13 = vsel %vm351_vm7, %v6942_v34, %v6903_v48 }
 0xb11   : > { %v3505_v6 = vmul.f32 %v3497_v31, %v3491_v9  ;;  %v3428_v31 = vsel %vm393_vm8, %v6897_v36, %v6895_v44  ;;  %v3373_v36 = vperm.slane %v6990_v51, 1 }
 0xb12   : > { %3901 = vmatpush.msra.mxu3 %v3474_v45  ;;  %v3441_v4 = vmul.f32 %v3433_v10, %v3428_v31  ;;  %v7036_v45 = vpop.permute.xlu2 %3330  ;;  %v3528_v31 = vperm.slane %v6919_v49, 2 }
 0xb13   : > { %3980 = vmatpush.msrb.mxu2 %v3505_v6  ;;  %v3338_v33 = vsel %vm262_vm2, %v6905_v54, %v7036_v45 }
 0xb14   : > { %3902 = vmatpush.msra.mxu3 %v6817_v28  ;;  %v3410_v28 = vmul.f32 %v3402_v17, %v3399_v13  ;;  %v7689_v13 = vld [vmem:[#allocation163_spill] sm:$0xff] }
 0xb16   : > { %v7019_v3 = vpop.permute.xlu1 %3334  ;;  %3903 = vmatpush.msra.mxu3 %v3440_v1  ;;  %v3343_v1 = vperm.slane %v7013_v63, 1 }
 0xb17   : > { %v7022_v25 = vpop.permute.xlu0 %3456  ;;  %v3339_v26 = vsel %vm262_vm2, %v7019_v3, %v6905_v54  ;;  %v7069_v54 = vld [vmem:[%s7284_s2 + $0x118] sm:$0xf] }
 0xb18   : > { %v3461_v62 = vsel %vm438_vm9, %v3455_v38, %v7022_v25  ;;  %3904 = vmatpush.msra.mxu3 %v3410_v28  ;;  %v3350_v57 = vmul.f32 %v3342_v0, %v3339_v26  ;;  %v3403_v38 = vperm.slane %v6972_v46, 1  ;;  %v3351_v0 = vmul.f32 %v3343_v1, %v3338_v33  ;;  %v7695_v1 = vld [vmem:[#allocation55_spill] sm:$0xff] }
 0xb19   : > { %v3475_v41 = vmul.f32 %v3467_v16, %v3461_v62  ;;  %v7690_v16 = vld [vmem:[#allocation164_spill] sm:$0xff]  ;;  %v3559_v26 = vperm.slane %v6914_v30, 3  ;;  %v7692_v62 = vld [vmem:[#allocation158_spill] sm:$0xff] }
 0xb1a   : > { %3905 = vmatpush.msra.mxu3 %v3380_v53  ;;  %v3489_v10 = vpop.permute.xlu2 %3488 }
 0xb1b   : > { %3981 = vmatpush.msrb.mxu2 %v3475_v41 }
 0xb1c   : > { %3906 = vmatpush.msra.mxu3 %v3350_v57 }
 0xb1d   : > { %3982 = vmatpush.msrb.mxu2 %v6825_v50 }
 0xb1e   : > { %v7040_v9 = vpop.permute.xlu1 %3360  ;;  %3907 = vmatpush.msra.mxu3 %v7688_v35  ;;  %v3498_v35 = vperm.slane %v6926_v37, 2 }
 0xb1f   : > { %3983 = vmatpush.msrb.mxu2 %v3441_v4  ;;  %v7043_v6 = vpop.permute.xlu0 %3390  ;;  %v3368_v50 = vsel %vm309_vm6, %v6909_v40, %v7040_v9  ;;  %v3558_v40 = vperm.slane %v6914_v30, 2  ;;  %v3529_v4 = vperm.slane %v6919_v49, 3  ;;  %v3490_v49 = vsel %vm480_vm10, %v6977_v42, %v3489_v10 }
 0xb20   : > { %v3398_v17 = vsel %vm351_vm7, %v6903_v48, %v7043_v6  ;;  %3908 = vmatpush.msra.mxu3 %v7689_v13  ;;  %v3381_v28 = vmul.f32 %v3373_v36, %v3368_v50  ;;  %v7691_v48 = vld [vmem:[#allocation165_spill] sm:$0xff]  ;;  %v7693_v50 = vld [vmem:[#allocation162_spill] sm:$0xff]  ;;  %v3468_v42 = vperm.slane %v6953_v52, 2 }
 0xb21   : > { %v3411_v5 = vmul.f32 %v3403_v38, %v3398_v17  ;;  %v7694_v13 = vld [vmem:[#allocation53_spill] sm:$0xff] }
 0xb22   : > { %3909 = vmatpush.msra.mxu3 %v7690_v16  ;;  %v7696_v16 = vld [vmem:[#allocation40_spill] sm:$0xff] }
 0xb23   : > { %3984 = vmatpush.msrb.mxu2 %v3411_v5  ;;  %v3469_v5 = vperm.slane %v6953_v52, 3 }
 0xb24   : > { %3910 = vmatpush.msra.mxu3 %v7691_v48  ;;  %v3393_v48 = vpop.permute.xlu2 %3392 }
 0xb25   : > { %3985 = vmatpush.msrb.mxu2 %v3381_v28 }
 0xb26   : > { %v3519_v53 = vpop.permute.xlu1 %3518  ;;  %3911 = vmatpush.msra.mxu3 %v7692_v62  ;;  %v7698_v62 = vld [vmem:[#allocation66_spill] sm:$0xff] }
 0xb27   : > { %v3549_v41 = vpop.permute.xlu0 %3548  ;;  %3986 = vmatpush.msrb.mxu2 %v3351_v0  ;;  %v3520_v38 = vsel %vm522_vm11, %v6939_v43, %v3519_v53 }
 0xb28   : > { %v3550_v57 = vsel %vm564_vm1, %v6901_v8, %v3549_v41  ;;  %v3553_v30 = vsel %vm564_vm1, %v3549_v41, %v6893_v29  ;;  %3912 = vmatpush.msra.mxu3 %v6642_v56  ;;  %v3523_v8 = vsel %vm522_vm11, %v3519_v53, %v6889_v60  ;;  %v3499_v29 = vperm.slane %v6926_v37, 3  ;;  %v7700_v41 = vld [vmem:[#allocation54_spill] sm:$0xff] }
 0xb29   : > { %v3566_v36 = vmul.f32 %v3558_v40, %v3550_v57  ;;  %v3567_v17 = vmul.f32 %v3559_v26, %v3553_v30  ;;  %3987 = vmatpush.msrb.mxu2 %v7693_v50  ;;  %4365 = vmatmul.msk.f32.vlgmr.msra.gmra.mxu3 %vm3833_vm14, %v7069_v54  ;;  %v3493_v56 = vsel %vm480_vm10, %v3489_v10, %v6891_v27  ;;  %v7697_v40 = vld [vmem:[#allocation65_spill] sm:$0xff]  ;;  %v3434_v26 = vperm.slane %v6966_v21, 2  ;;  %v7701_v30 = vld [vmem:[#allocation68_spill] sm:$0xff]  ;;  %v7703_v50 = vld [vmem:[#allocation14_spill] sm:$0xff] }
 0xb2a   : > { %3917 = vmatpush.msrb.mxu3 %v7694_v13  ;;  %v3536_v43 = vmul.f32 %v3528_v31, %v3520_v38  ;;  %v3537_v60 = vmul.f32 %v3529_v4, %v3523_v8  ;;  %v3506_v37 = vmul.f32 %v3498_v35, %v3490_v49  ;;  %v3507_v33 = vmul.f32 %v3499_v29, %v3493_v56  ;;  %v7702_v4 = vld [vmem:[#allocation56_spill] sm:$0xff]  ;;  %v7704_v13 = vld [vmem:[#allocation42_spill] sm:$0xff]  ;;  %v7706_v49 = vld [vmem:[#allocation57_spill] sm:$0xff] }
 0xb2b   : > { %3988 = vmatpush.msrb.mxu2 %v6544_v14  ;;  %4058 = vmatpush.msra.mxu1 %v3566_v36  ;;  %v3435_v53 = vperm.slane %v6966_v21, 3  ;;  %v7699_v21 = vld [vmem:[#allocation67_spill] sm:$0xff] }
 0xb2c   : > { %4138 = vmatpush.msrb.mxu0 %v3567_v17  ;;  %3918 = vmatpush.msrb.mxu3 %v7695_v1  ;;  %v3345_v17 = vperm.slane %v7013_v63, 3  ;;  %v7708_v56 = vld [vmem:[#allocation59_spill] sm:$0xff]  ;;  %v7713_v1 = vld [vmem:[#allocation6_spill] sm:$0xff] }
 0xb2d   : > { %3989 = vmatpush.msrb.mxu2 %v6577_v47  ;;  %4059 = vmatpush.msra.mxu1 %v3536_v43  ;;  %v7711_v43 = vld [vmem:[#allocation166_spill] sm:$0xff] }
 0xb2e   : > { %4139 = vmatpush.msrb.mxu0 %v3537_v60  ;;  %3919 = vmatpush.msrb.mxu3 %v7696_v16  ;;  %v3423_v27 = vpop.permute.xlu1 %3422  ;;  %v7712_v60 = vld [vmem:[#allocation167_spill] sm:$0xff]  ;;  %v7718_v16 = vld [vmem:[#allocation13_spill] sm:$0xff] }
 0xb2f   : > { %v3459_v28 = vpop.permute.xlu0 %3458  ;;  %3990 = vmatpush.msrb.mxu2 %v6588_v32  ;;  %4060 = vmatpush.msra.mxu1 %v3506_v37  ;;  %v3405_v32 = vperm.slane %v6972_v46, 3  ;;  %v3426_v10 = vsel %vm393_vm8, %v3423_v27, %v6907_v2  ;;  %v7714_v37 = vld [vmem:[#allocation63_spill] sm:$0xff] }
 0xb30   : > { %v3460_v14 = vsel %vm438_vm9, %v7022_v25, %v3459_v28  ;;  %v3463_v47 = vsel %vm438_vm9, %v3459_v28, %v6899_v7  ;;  %4140 = vmatpush.msrb.mxu0 %v3507_v33  ;;  %3920 = vmatpush.msrb.mxu3 %v7697_v40  ;;  %v3427_v25 = vsel %vm393_vm8, %v6895_v44, %v3423_v27  ;;  %v7717_v33 = vld [vmem:[#allocation33_spill] sm:$0xff]  ;;  %v7719_v27 = vld [vmem:[#allocation171_spill] sm:$0xff]  ;;  %v7720_v28 = vld [vmem:[#allocation170_spill] sm:$0xff] }
 0xb31   : > { %v3476_v52 = vmul.f32 %v3468_v42, %v3460_v14  ;;  %v3477_v0 = vmul.f32 %v3469_v5, %v3463_v47  ;;  %3991 = vmatpush.msrb.mxu2 %v6393_v55  ;;  %v3396_v7 = vsel %vm351_vm7, %v3393_v48, %v6942_v34  ;;  %v3404_v55 = vperm.slane %v6972_v46, 2  ;;  %v7715_v42 = vld [vmem:[#allocation169_spill] sm:$0xff]  ;;  %v7716_v5 = vld [vmem:[#allocation168_spill] sm:$0xff]  ;;  %v7721_v14 = vld [vmem:[#allocation35_spill] sm:$0xff] }
 0xb32   : > { %3921 = vmatpush.msrb.mxu3 %v7698_v62  ;;  %v3397_v44 = vsel %vm351_vm7, %v7043_v6, %v3393_v48  ;;  %v3375_v34 = vperm.slane %v6990_v51, 3  ;;  %v3442_v31 = vmul.f32 %v3434_v26, %v3427_v25  ;;  %v3413_v46 = vmul.f32 %v3405_v32, %v3396_v7  ;;  %v7722_v47 = vld [vmem:[#allocation15_spill] sm:$0xff]  ;;  %v7723_v48 = vld [vmem:[#allocation173_spill] sm:$0xff]  ;;  %v7726_v40 = vld [vmem:[#allocation20_spill] sm:$0xff] }
 0xb33   : > { %3992 = vmatpush.msrb.mxu2 %v6617_v18  ;;  %4061 = vmatpush.msra.mxu1 %v3476_v52  ;;  %v3374_v18 = vperm.slane %v6990_v51, 2  ;;  %v3443_v57 = vmul.f32 %v3435_v53, %v3426_v10  ;;  %v3412_v38 = vmul.f32 %v3404_v55, %v3397_v44  ;;  %v7724_v52 = vld [vmem:[#allocation172_spill] sm:$0xff]  ;;  %v7727_v26 = vld [vmem:[#allocation159_spill] sm:$0xff]  ;;  %v7731_v62 = vld [vmem:[#allocation98_spill] sm:$0xff] }
 0xb34   : > { %4141 = vmatpush.msrb.mxu0 %v3477_v0  ;;  %3922 = vmatpush.msrb.mxu3 %v7699_v21  ;;  %v7725_v0 = vld [vmem:[#allocation37_spill] sm:$0xff]  ;;  %v7728_v32 = vld [vmem:[#allocation160_spill] sm:$0xff]  ;;  %v7729_v53 = vld [vmem:[#allocation39_spill] sm:$0xff] }
 0xb35   : > { %3997 = vmatpush.msra.mxu2 %v7700_v41  ;;  %4062 = vmatpush.msra.mxu1 %v6839_v20  ;;  %v3344_v20 = vperm.slane %v7013_v63, 2  ;;  %v7730_v25 = vld [vmem:[#allocation23_spill] sm:$0xff]  ;;  %v7732_v7 = vld [vmem:[#allocation8_spill] sm:$0xff]  ;;  %v7733_v55 = vld [vmem:[#allocation45_spill] sm:$0xff] }
 0xb36   : > { %4142 = vmatpush.msrb.mxu0 %v6847_v19  ;;  %v3333_v2 = vpop.permute.xlu1 %3332  ;;  %3923 = vmatpush.msrb.mxu3 %v7701_v30  ;;  %v7734_v10 = vld [vmem:[#allocation115_spill] sm:$0xff]  ;;  %v7735_v44 = vld [vmem:[#allocation24_spill] sm:$0xff]  ;;  %v7736_v21 = vld [vmem:[#allocation46_spill] sm:$0xff] }
 0xb37   : > { %3998 = vmatpush.msra.mxu2 %v7702_v4  ;;  %v3363_v6 = vpop.permute.xlu0 %3362  ;;  %4063 = vmatpush.msra.mxu1 %v3442_v31  ;;  %v3337_v8 = vsel %vm262_vm2, %v7036_v45, %v3333_v2  ;;  %v7707_v45 = vld [vmem:[#allocation19_spill] sm:$0xff]  ;;  %v7737_v41 = vld [vmem:[#allocation117_spill] sm:$0xff]  ;;  %v7742_v31 = vld [vmem:[#allocation58_spill] sm:$0xff] }
 0xb38   : > { %v3366_v35 = vsel %vm309_vm6, %v3363_v6, %v6993_v39  ;;  %v3367_v51 = vsel %vm309_vm6, %v7040_v9, %v3363_v6  ;;  %4143 = vmatpush.msrb.mxu0 %v3443_v57  ;;  %3924 = vmatpush.msrb.mxu3 %v7703_v50  ;;  %v3336_v39 = vsel %vm262_vm2, %v3333_v2, %v7019_v3  ;;  %v7705_v9 = vld [vmem:[#allocation17_spill] sm:$0xff]  ;;  %v7745_v57 = vld [vmem:[#allocation60_spill] sm:$0xff]  ;;  %v7748_v6 = vld [vmem:[#allocation62_spill] sm:$0xff] }
 0xb39   : > { %v3382_v19 = vmul.f32 %v3374_v18, %v3367_v51  ;;  %v3383_v36 = vmul.f32 %v3375_v34, %v3366_v35  ;;  %3999 = vmatpush.msra.mxu2 %v7704_v13  ;;  %4064 = vmatpush.msra.mxu1 %v3412_v38  ;;  %v3352_v29 = vmul.f32 %v3344_v20, %v3337_v8  ;;  %v7710_v3 = vld [vmem:[#allocation61_spill] sm:$0xff]  ;;  %v7738_v18 = vld [vmem:[#allocation26_spill] sm:$0xff]  ;;  %v7741_v34 = vld [vmem:[#allocation28_spill] sm:$0xff] }
 0xb3a   : > { %4144 = vmatpush.msrb.mxu0 %v3413_v46  ;;  %3925 = vmatpush.msrb.mxu3 %v7705_v9  ;;  %v3353_v63 = vmul.f32 %v3345_v17, %v3336_v39  ;;  %v7743_v2 = vld [vmem:[#allocation121_spill] sm:$0xff]  ;;  %v7744_v46 = vld [vmem:[#allocation30_spill] sm:$0xff]  ;;  %v7747_v4 = vld [vmem:[#allocation76_spill] sm:$0xff] }
 0xb3b   : > { %4000 = vmatpush.msra.mxu2 %v7706_v49  ;;  %4065 = vmatpush.msra.mxu1 %v3382_v19  ;;  %v7746_v30 = vld [vmem:[#allocation97_spill] sm:$0xff]  ;;  %v7749_v38 = vld [vmem:[#allocation116_spill] sm:$0xff]  ;;  %v7752_v51 = vld [vmem:[#allocation118_spill] sm:$0xff] }
 0xb3c   : > { %4145 = vmatpush.msrb.mxu0 %v3383_v36  ;;  %3926 = vmatpush.msrb.mxu3 %v7707_v45  ;;  %v7751_v35 = vld [vmem:[#allocation64_spill] sm:$0xff]  ;;  %v7753_v20 = vld [vmem:[#allocation81_spill] sm:$0xff]  ;;  %v7756_v17 = vld [vmem:[#allocation82_spill] sm:$0xff] }
 0xb3d   : > { %4001 = vmatpush.msra.mxu2 %v7708_v56  ;;  %4066 = vmatpush.msra.mxu1 %v3352_v29  ;;  %v7754_v19 = vld [vmem:[#allocation9_spill] sm:$0xff]  ;;  %v7755_v36 = vld [vmem:[#allocation120_spill] sm:$0xff]  ;;  %v7757_v8 = vld [vmem:[#allocation10_spill] sm:$0xff] }
 0xb3e   : > { %4146 = vmatpush.msrb.mxu0 %v3353_v63  ;;  %3927 = vmatpush.msrb.mxu3 %v7709_v12  ;;  %v7758_v50 = vld [vmem:[#allocation122_spill] sm:$0xff]  ;;  %v7759_v39 = vld [vmem:[#allocation71_spill] sm:$0xff]  ;;  %v7761_v9 = vld [vmem:[#allocation72_spill] sm:$0xff] }
 0xb3f   : > { %4002 = vmatpush.msra.mxu2 %v7710_v3  ;;  %4067 = vmatpush.msra.mxu1 %v7711_v43  ;;  %v7760_v13 = vld [vmem:[#allocation11_spill] sm:$0xff]  ;;  %v7762_v29 = vld [vmem:[#allocation84_spill] sm:$0xff]  ;;  %v7764_v63 = vld [vmem:[#allocation73_spill] sm:$0xff] }
 0xb40   : > { %4147 = vmatpush.msrb.mxu0 %v7712_v60  ;;  %3928 = vmatpush.msrb.mxu3 %v7713_v1  ;;  %v7763_v49 = vld [vmem:[#allocation12_spill] sm:$0xff]  ;;  %v7765_v45 = vld [vmem:[#allocation86_spill] sm:$0xff]  ;;  %v7766_v56 = vld [vmem:[#allocation7_spill] sm:$0xff] }
 0xb41   : > { %4003 = vmatpush.msra.mxu2 %v7714_v37  ;;  %4068 = vmatpush.msra.mxu1 %v7715_v42  ;;  %v7767_v12 = vld [vmem:[#allocation74_spill] sm:$0xff]  ;;  %v7768_v3 = vld [vmem:[#allocation88_spill] sm:$0xff]  ;;  %v7769_v43 = vld [vmem:[#allocation25_spill] sm:$0xff] }
 0xb42   : > { %4148 = vmatpush.msrb.mxu0 %v7716_v5  ;;  %3929 = vmatpush.msrb.mxu3 %v7717_v33  ;;  %v7770_v60 = vld [vmem:[#allocation75_spill] sm:$0xff]  ;;  %v7771_v1 = vld [vmem:[#allocation90_spill] sm:$0xff]  ;;  %v7775_v33 = vld [vmem:[#allocation29_spill] sm:$0xff] }
 0xb43   : > { %4004 = vmatpush.msra.mxu2 %v7718_v16  ;;  %4069 = vmatpush.msra.mxu1 %v7719_v27  ;;  %v7772_v37 = vld [vmem:[#allocation27_spill] sm:$0xff]  ;;  %v7773_v42 = vld [vmem:[#allocation70_spill] sm:$0xff]  ;;  %v7776_v16 = vld [vmem:[#allocation85_spill] sm:$0xff] }
 0xb44   : > { %4149 = vmatpush.msrb.mxu0 %v7720_v28  ;;  %3930 = vmatpush.msrb.mxu3 %v7721_v14  ;;  %v7774_v5 = vld [vmem:[#allocation47_spill] sm:$0xff]  ;;  %v7777_v27 = vld [vmem:[#allocation50_spill] sm:$0xff]  ;;  %v3828_v28 = vld [vmem:[%s7285_s3 + $0x40] sm:$0x1] }
 0xb45   : > { %4005 = vmatpush.msra.mxu2 %v7722_v47  ;;  %4070 = vmatpush.msra.mxu1 %v7723_v48  ;;  %v7778_v14 = vld [vmem:[#allocation31_spill] sm:$0xff]  ;;  %4373 = vpush %v3828_v28  ;;  %v7780_v48 = vld [vmem:[#allocation89_spill] sm:$0xff] }
 0xb46   : > { %4150 = vmatpush.msrb.mxu0 %v7724_v52  ;;  %3931 = vmatpush.msrb.mxu3 %v7725_v0  ;;  %v7779_v47 = vld [vmem:[#allocation87_spill] sm:$0xff]  ;;  %v7782_v0 = vld [vmem:[#allocation130_spill] sm:$0xff] }
 0xb47   : > { %4006 = vmatpush.msra.mxu2 %v7726_v40  ;;  %4071 = vmatpush.msra.mxu1 %v7727_v26  ;;  %v7781_v52 = vld [vmem:[#allocation91_spill] sm:$0xff]  ;;  %v7785_v26 = vld [vmem:[#allocation44_spill] sm:$0xff] }
 0xb48   : > { %4151 = vmatpush.msrb.mxu0 %v7728_v32  ;;  %3932 = vmatpush.msrb.mxu3 %v7729_v53  ;;  %v7783_v40 = vld [vmem:[#allocation43_spill] sm:$0xff]  ;;  %v7786_v32 = vld [vmem:[#allocation132_spill] sm:$0xff]  ;;  %v7790_v53 = vld [vmem:[#allocation145_spill] sm:$0xff] }
 0xb49   : > { %4007 = vmatpush.msra.mxu2 %v7730_v25  ;;  %3933 = vmatmul.f32.vlgmr.msrb.gmra.mxu3 %v6769_v58  ;;  %v7791_v25 = vld [vmem:[#allocation147_spill] sm:$0xff] }
 0xb4a   : > { %4017 = vmatpush.msra.mxu3 %v7731_v62  ;;  %4072 = vmatpush.msra.mxu1 %v6648_v11  ;;  %v7739_v11 = vld [vmem:[#allocation41_spill] sm:$0xff] }
 0xb4b   : > { %4152 = vmatpush.msrb.mxu0 %v6650_v61  ;;  %4008 = vmatpush.msra.mxu2 %v7732_v7  ;;  %v7740_v61 = vld [vmem:[#allocation119_spill] sm:$0xff]  ;;  %v7792_v62 = vld [vmem:[#allocation149_spill] sm:$0xff] }
 0xb4c   : > { %4077 = vmatpush.msrb.mxu1 %v7733_v55  ;;  %4018 = vmatpush.msra.mxu3 %v7734_v10  ;;  %v7793_v7 = vld [vmem:[#allocation99_spill] sm:$0xff]  ;;  %v7794_v55 = vld [vmem:[#allocation100_spill] sm:$0xff]  ;;  %v7795_v10 = vld [vmem:[#allocation101_spill] sm:$0xff] }
 0xb4d   : > { %4009 = vmatpush.msra.mxu2 %v7735_v44  ;;  %4367 = vmatmul.msk.f32.vlgmr.msra.gmra.mxu1 %vm3833_vm14, %v7069_v54  ;;  %v4157_v44 = vld [vmem:[%s236_s28] sm:$0xff] }
 0xb4e   : > { %4078 = vmatpush.msrb.mxu1 %v7736_v21  ;;  %4019 = vmatpush.msra.mxu3 %v7737_v41  ;;  %4161 = vst [vmem:[#allocation1] ss:$2 sm:$0xff] %v4157_v44  ;;  %v3854_v41 = vpop.f32.mrf.mxu0 }
 0xb4f   : > { %4010 = vmatpush.msra.mxu2 %v7738_v18  ;;  %4368 = vmatmul.msk.f32.vlgmr.msrb.gmra.mxu0 %vm3833_vm14, %v7069_v54  ;;  %v3874_v18 = vpop.f32.mrf.mxu1 }
 0xb50   : > { %4079 = vmatpush.msrb.mxu1 %v7739_v11  ;;  %4366 = vmatmul.msk.f32.vlgmr.msrb.gmra.mxu2 %vm3833_vm14, %v7069_v54  ;;  %v7750_v54 = vld [vmem:[#allocation78_spill] sm:$0xff] }
 0xb51   : > { %4020 = vmatpush.msra.mxu3 %v7740_v61  ;;  %4011 = vmatpush.msra.mxu2 %v7741_v34 }
 0xb52   : > { %4080 = vmatpush.msrb.mxu1 %v7742_v31 }
 0xb53   : > { %4021 = vmatpush.msra.mxu3 %v7743_v2  ;;  %4012 = vmatpush.msra.mxu2 %v7744_v46 }
 0xb54   : > { %4081 = vmatpush.msrb.mxu1 %v7745_v57 }
 0xb55   : > { %4097 = vmatpush.msrb.mxu2 %v7746_v30  ;;  %4022 = vmatpush.msra.mxu3 %v7747_v4 }
 0xb56   : > { %4082 = vmatpush.msrb.mxu1 %v7748_v6  ;;  %v3954_v46 = vpop.f32.mrf.mxu0 }
 0xb57   : > { %4098 = vmatpush.msrb.mxu2 %v7749_v38  ;;  %4023 = vmatpush.msra.mxu3 %v7750_v54  ;;  %v4165_v54 = vld.sshfl [vmem:[#allocation1 + $0x8] sm:$0xff pattern:$0x75316420] }
 0xb58   : > { %4083 = vmatpush.msrb.mxu1 %v7751_v35  ;;  %4013 = vmatmul.f32.vlgmr.msra.gmra.mxu2 %v6769_v58  ;;  %v4158_v35 = vld [vmem:[%s236_s28 + $0x8] sm:$0xff] }
 0xb59   : > { %4099 = vmatpush.msrb.mxu2 %v7752_v51  ;;  %4024 = vmatpush.msra.mxu3 %v7753_v20  ;;  %4163 = vst [vmem:[#allocation1 + $0x10] ss:$2 sm:$0xff] %v4158_v35 }
 0xb5a   : > { %4084 = vmatpush.msrb.mxu1 %v7754_v19  ;;  %v4164_v19 = vld.sshfl [vmem:[#allocation1] sm:$0xff pattern:$0x75316420] }
 0xb5b   : > { %4100 = vmatpush.msrb.mxu2 %v7755_v36  ;;  %4025 = vmatpush.msra.mxu3 %v7756_v17 }
 0xb5c   : > { %4085 = vmatpush.msrb.mxu1 %v7757_v8 }
 0xb5d   : > { %4101 = vmatpush.msrb.mxu2 %v7758_v50  ;;  %4026 = vmatpush.msra.mxu3 %v7759_v39 }
 0xb5e   : > { %4086 = vmatpush.msrb.mxu1 %v7760_v13 }
 0xb5f   : > { %4102 = vmatpush.msrb.mxu2 %v7761_v9  ;;  %4027 = vmatpush.msra.mxu3 %v7762_v29 }
 0xb60   : > { %4087 = vmatpush.msrb.mxu1 %v7763_v49 }
 0xb61   : > { %4103 = vmatpush.msrb.mxu2 %v7764_v63  ;;  %4028 = vmatpush.msra.mxu3 %v7765_v45 }
 0xb62   : > { %4088 = vmatpush.msrb.mxu1 %v7766_v56 }
 0xb63   : > { %4104 = vmatpush.msrb.mxu2 %v7767_v12  ;;  %4029 = vmatpush.msra.mxu3 %v7768_v3 }
 0xb64   : > { %4089 = vmatpush.msrb.mxu1 %v7769_v43 }
 0xb65   : > { %4105 = vmatpush.msrb.mxu2 %v7770_v60  ;;  %4030 = vmatpush.msra.mxu3 %v7771_v1 }
 0xb66   : > { %4090 = vmatpush.msrb.mxu1 %v7772_v37 }
 0xb67   : > { %4106 = vmatpush.msrb.mxu2 %v7773_v42  ;;  %4031 = vmatpush.msra.mxu3 %v7774_v5  ;;  %v4167_v42 = vld.sshfl [vmem:[#allocation1 + $0x18] sm:$0xff pattern:$0x75316420] }
 0xb68   : > { %4091 = vmatpush.msrb.mxu1 %v7775_v33 }
 0xb69   : > { %4107 = vmatpush.msrb.mxu2 %v7776_v16  ;;  %4032 = vmatpush.msra.mxu3 %v7777_v27  ;;  %v4166_v16 = vld.sshfl [vmem:[#allocation1 + $0x10] sm:$0xff pattern:$0x75316420] }
 0xb6a   : > { %4092 = vmatpush.msrb.mxu1 %v7778_v14  ;;  %4033 = vmatmul.f32.vlgmr.msra.gmra.mxu3 %v6958_v15 }
 0xb6b   : > { %4117 = vmatpush.msrb.mxu3 %v6689_v59  ;;  %4108 = vmatpush.msrb.mxu2 %v7779_v47  ;;  %v7784_v59 = vld [vmem:[#allocation131_spill] sm:$0xff] }
 0xb6c   : > { %4093 = vmatmul.f32.vlgmr.msrb.gmra.mxu1 %v6769_v58  ;;  %v7788_v58 = vld [vmem:[#allocation128_spill] sm:$0xff] }
 0xb6d   : > { %4118 = vmatpush.msrb.mxu3 %v6696_v22  ;;  %4109 = vmatpush.msrb.mxu2 %v7780_v48  ;;  %v7787_v22 = vld [vmem:[#allocation133_spill] sm:$0xff] }
 0xb6f   : > { %4119 = vmatpush.msrb.mxu3 %v6716_v24  ;;  %4110 = vmatpush.msrb.mxu2 %v7781_v52  ;;  %v7789_v24 = vld [vmem:[#allocation143_spill] sm:$0xff] }
 0xb71   : > { %4120 = vmatpush.msrb.mxu3 %v7782_v0  ;;  %4111 = vmatpush.msrb.mxu2 %v7783_v40 }
 0xb73   : > { %4121 = vmatpush.msrb.mxu3 %v7784_v59  ;;  %4112 = vmatpush.msrb.mxu2 %v7785_v26 }
 0xb74   : > { %4113 = vmatmul.f32.vlgmr.msrb.gmra.mxu2 %v6958_v15  ;;  %v7796_v15 = vld [vmem:[#allocation102_spill] sm:$0xff] }
 0xb75   : > { %4122 = vmatpush.msrb.mxu3 %v7786_v32 }
 0xb76   : > { %s4374_s29 = spop %4373 }
 0xb77   : > { %4123 = vmatpush.msrb.mxu3 %v7787_v22  ;;  %v3831_v11 = vstv %s4374_s29 }
 0xb78   : > { %v3855_v61 = vadd.f32 %v3854_v41, %v3831_v11 }
 0xb79   : > { %4124 = vmatpush.msrb.mxu3 %v7788_v58 }
 0xb7a   : > { %v3875_v31 = vadd.f32 %v3874_v18, %v3855_v61 }
 0xb7b   : > { %4125 = vmatpush.msrb.mxu3 %v7789_v24 }
 0xb7d   : > { %4126 = vmatpush.msrb.mxu3 %v7790_v53 }
 0xb7f   : > { %4127 = vmatpush.msrb.mxu3 %v7791_v25 }
 0xb80   : > { %v4054_v63 = vpop.f32.mrf.mxu0 }
 0xb81   : > { %4128 = vmatpush.msrb.mxu3 %v7792_v62 }
 0xb83   : > { %4129 = vmatpush.msrb.mxu3 %v7793_v7 }
 0xb85   : > { %4130 = vmatpush.msrb.mxu3 %v7794_v55  ;;  %v3894_v34 = vpop.f32.mrf.mxu2 }
 0xb86   : > { %v3895_v4 = vadd.f32 %v3894_v34, %v3875_v31 }
 0xb87   : > { %4131 = vmatpush.msrb.mxu3 %v7795_v10 }
 0xb89   : > { %4132 = vmatpush.msrb.mxu3 %v7796_v15 }
 0xb8a   : > { %4133 = vmatmul.f32.vlgmr.msrb.gmra.mxu3 %v7004_v23  ;;  %v3974_v23 = vpop.f32.mrf.mxu1 }
 0xbac   : > { %v3914_v21 = vpop.f32.mrf.mxu3 }
 0xbad   : > { %v3915_v51 = vadd.f32 %v3914_v21, %v3895_v4 }
 0xbaf   : > { %v4172_v17 = vadd.f32 %v4164_v19, %v3915_v51 }
 0xbca   : > { %v4074_v39 = vpop.f32.mrf.mxu1 }
 0xbcc   : > { %v3934_v2 = vpop.f32.mrf.mxu3  ;;  %v4154_v1 = vpop.f32.mrf.mxu0 }
 0xbcd   : > { %v3935_v57 = vadd.f32 %v3934_v2, %v3831_v11 }
 0xbcf   : > { %v3955_v30 = vadd.f32 %v3954_v46, %v3935_v57 }
 0xbd1   : > { %v3975_v6 = vadd.f32 %v3974_v23, %v3955_v30 }
 0xbd3   : > { %v3994_v38 = vpop.f32.mrf.mxu2 }
 0xbd4   : > { %v3995_v20 = vadd.f32 %v3994_v38, %v3975_v6 }
 0xbd6   : > { %v4173_v36 = vadd.f32 %v4165_v54, %v3995_v20 }
 0xbd8   : > { %v4180_v8 = vrot.slane %v4173_v36, 4 }
 0xbda   : > { %v4183_v50 = vsel %vm4182_vm15, %v4172_v17, %v4180_v8 }
 0xbdb   : > { %4187 = vst [vmem:[%s241_s21] sm:$0xff] %v4183_v50  ;;  %v4014_v13 = vpop.f32.mrf.mxu2 }
 0xbdc   : > { %v4015_v29 = vadd.f32 %v4014_v13, %v3831_v11 }
 0xbe9   : > { %v4094_v9 = vpop.f32.mrf.mxu1 }
 0xbea   : > { %v4095_v45 = vadd.f32 %v4094_v9, %v3831_v11 }
 0xbed   : > { %v4034_v49 = vpop.f32.mrf.mxu3 }
 0xbee   : > { %v4035_v12 = vadd.f32 %v4034_v49, %v4015_v29 }
 0xbf0   : > { %v4055_v43 = vadd.f32 %v4054_v63, %v4035_v12 }
 0xbf2   : > { %v4075_v5 = vadd.f32 %v4074_v39, %v4055_v43 }
 0xbf4   : > { %v4174_v28 = vadd.f32 %v4166_v16, %v4075_v5 }
 0xbf7   : > { %v4114_v56 = vpop.f32.mrf.mxu2 }
 0xbf8   : > { %v4115_v3 = vadd.f32 %v4114_v56, %v4095_v45 }
 0xc0d   : > { %v4134_v60 = vpop.f32.mrf.mxu3 }
 0xc0e   : > { %v4135_v37 = vadd.f32 %v4134_v60, %v4115_v3 }
 0xc10   : > { %v4155_v33 = vadd.f32 %v4154_v1, %v4135_v37 }
 0xc12   : > { %v4175_v27 = vadd.f32 %v4167_v42, %v4155_v33 }
 0xc14   : > { %v4181_v14 = vrot.slane %v4175_v27, 4 }
 0xc16   : > { %v4184_v47 = vsel %vm4182_vm15, %v4174_v28, %v4181_v14 }
 0xc17   : > { %4188 = vst [vmem:[%s241_s21 + $0x8] sm:$0xff] %v4184_v47 }
 0xc18 PF: > { %s15_s18 = sadd.s32 1, %s4400_s18  }
 0xc19   : > { %p12_p4 = scmp.ge.s32.totalorder %s15_s18, 4  }
 0xc1b   :  { %14 = sbr.rel (!%p12_p4) target bundleno = 1 (0x1), region = 89 }

</bundles_post_ra>
